<compile_context>
chip_gen: v7x
topology: tpu7x:2x2x1
jax: 0.10.0
libtpu: 0.0.40
codegen_flags: <defaults>
</compile_context>

<pallas_src>
import functools

import jax
import jax.numpy as jnp
from jax.experimental import pallas as pl
from jax.experimental.pallas import tpu as pltpu


def _pick_tile(n):
    """Point-axis tile: full N when small / non-divisible, else 128 (v5e/v7x safe)."""
    if n <= 128 or n % 128 != 0:
        return n
    return 128


# --------------------------------------------------------------------------
# Fused kNN (streaming top-k) + EdgeConv for one point tile.
# Layout: candidates j on sublanes, queries i on lanes -> all matmuls are in
# natural (K on lhs-last / rhs-first) orientation, outputs lane-dense in TN.
# --------------------------------------------------------------------------

def _knn_edgeconv_tile(xf, xt, wd, wcd, b, *, k, tn):
    """out[:, i] = max_{j in topk_i} leaky( Wd x_j + (Wc - Wd) x_i + b )

    xf:  (C, N)   all points of this batch element (gather source)
    xt:  (C, TN)  center points of this tile
    wd:  (Cout, C)   weight applied to (x_j - x_i)
    wcd: (Cout, C)   = Wc - Wd (precomputed in the wrapper)
    b:   (Cout, 1)
    returns (Cout, TN) float32.
    """
    f32 = jnp.float32
    c, n = xf.shape
    cout = wd.shape[0]

    # kNN scores: scores[j, i] = 2 <x_i, x_j> - ||x_j||^2
    # (row-constant -||x_i||^2 dropped: cannot change per-query top-k order).
    inner = jax.lax.dot_general(xf, xt, (((0,), (0,)), ((), ())),
                                preferred_element_type=f32)          # (N, TN)
    sq_col = jax.lax.dot_general(xf * xf, jnp.ones((c, 1), f32),
                                 (((0,), (0,)), ((), ())),
                                 preferred_element_type=f32)         # (N, 1)
    scores = 2.0 * inner - sq_col                                    # (N, TN)

    # Neighbor term gathered *after* projection: Wd x_j = (Wd X)[:, j].
    # bf16 operands for the gather matmuls (one-hot exactly representable).
    xwd = jnp.dot(wd, xf, preferred_element_type=f32).astype(jnp.bfloat16)  # (Cout, N)
    # Center term, independent of k, hoisted out of the neighbor loop.
    base = jnp.dot(wcd, xt, preferred_element_type=f32) + b          # (Cout, TN)

    # (N, 1) iota only (not (N, TN)); float so all reductions are f32 min/max.
    rows = jax.lax.broadcasted_iota(jnp.int32, (n, 1), 0).astype(f32)
    big = jnp.float32(n)

    def leaky(y):
        return jnp.maximum(y, 0.2 * y)

    def select(s):
        """One-hot of the current per-query argmax (first index on ties) and
        the score matrix with that entry masked out."""
        m = jnp.max(s, axis=0, keepdims=True)                        # (1, TN)
        eq = s == m                                                  # (N, TN)
        first = jnp.min(jnp.where(eq, rows, big), axis=0, keepdims=True)  # (1, TN)
        oh = rows == first                                           # (N, TN) strict
        return oh, jnp.where(oh, -jnp.inf, s)

    def gathered(oh_bf16):
        return jnp.dot(xwd, oh_bf16, preferred_element_type=f32)     # (Cout, .)

    acc0 = jnp.full((cout, tn), -jnp.inf, f32)

    def pair_body(_, carry):
        s, acc = carry
        oh_a, s = select(s)
        oh_b, s = select(s)
        # Pair two neighbors into one (Cout, N) @ (N, 2*TN) matmul (MXU occupancy
        # on the 256-wide v6e/v7x MXU).
        oh2 = jnp.concatenate([oh_a.astype(jnp.bfloat16),
                               oh_b.astype(jnp.bfloat16)], axis=1)    # (N, 2TN)
        nbr = gathered(oh2)                                           # (Cout, 2TN)
        ya = leaky(nbr[:, :tn] + base)
        yb = leaky(nbr[:, tn:] + base)
        acc = jnp.maximum(acc, jnp.maximum(ya, yb))
        return s, acc

    if k >= 2:
        scores, acc = jax.lax.fori_loop(0, k // 2, pair_body, (scores, acc0))
    else:
        acc = acc0
    if k % 2:                                                         # leftover neighbor
        oh, scores = select(scores)
        acc = jnp.maximum(acc, leaky(gathered(oh.astype(jnp.bfloat16)) + base))
    return acc


def _tile_of(x_ref, tn):
    """Slice this grid step's point tile out of the full (1, C, N) block."""
    n = x_ref.shape[-1]
    xf = x_ref[0]                                                    # (C, N)
    if n == tn:                                                      # single tile
        return xf, xf
    start = pl.multiple_of(pl.program_id(1) * tn, tn)                # lane-aligned
    return xf, x_ref[0, :, pl.ds(start, tn)]                         # (C, TN)


# --------------------------------------------------------------------------
# Layer 1: fused kNN + EdgeConv  ->  h1 (B, 64, N)
# --------------------------------------------------------------------------

def _edgeconv_layer_kernel(x_ref, wd_ref, wcd_ref, b_ref, h_ref, *, k, tn):
    xf, xt = _tile_of(x_ref, tn)
    h_ref[0] = _knn_edgeconv_tile(xf, xt, wd_ref[...], wcd_ref[...],
                                  b_ref[...], k=k, tn=tn)


def edgeconv_layer(x, wd, wcd, b, *, k):
    B, C, N = x.shape
    Cout = wd.shape[0]
    TN = _pick_tile(N)
    kern = functools.partial(_edgeconv_layer_kernel, k=k, tn=TN)
    return pl.pallas_call(
        kern,
        out_shape=jax.ShapeDtypeStruct((B, Cout, N), jnp.float32),
        grid=(B, N // TN),
        in_specs=[
            pl.BlockSpec((1, C, N), lambda bi, ti: (bi, 0, 0)),
            pl.BlockSpec((Cout, C), lambda bi, ti: (0, 0)),
            pl.BlockSpec((Cout, C), lambda bi, ti: (0, 0)),
            pl.BlockSpec((Cout, 1), lambda bi, ti: (0, 0)),
        ],
        out_specs=pl.BlockSpec((1, Cout, TN), lambda bi, ti: (bi, 0, ti)),
        compiler_params=pltpu.CompilerParams(
            dimension_semantics=("parallel", "parallel"),
            vmem_limit_bytes=32 * 1024 * 1024),
    )(x, wd, wcd, b)


# --------------------------------------------------------------------------
# Layer 2: fused kNN + EdgeConv + final 1x1 conv (split weights, no concat)
#          + LeakyReLU + global max pool (running max over point tiles)
# --------------------------------------------------------------------------

def _edgeconv_pool_kernel(h1_ref, wd_ref, wcd_ref, b_ref,
                          wc1_ref, wc2_ref, bc_ref, pooled_ref, *, k, tn):
    ti = pl.program_id(1)
    hf, ht = _tile_of(h1_ref, tn)                                    # (64,N),(64,TN)
    h2t = _knn_edgeconv_tile(hf, ht, wd_ref[...], wcd_ref[...],
                             b_ref[...], k=k, tn=tn)                 # (64, TN)
    cf = (((0,), (0,)), ((), ()))                                    # contract channels
    z = (jax.lax.dot_general(ht, wc1_ref[...], cf, preferred_element_type=jnp.float32)
         + jax.lax.dot_general(h2t, wc2_ref[...], cf, preferred_element_type=jnp.float32)
         + bc_ref[...])                                              # (TN, E) lane-dense
    z = jnp.maximum(z, 0.2 * z)                                      # LeakyReLU(0.2)
    cur = jnp.max(z, axis=0, keepdims=True)                          # (1, E) tile max

    @pl.when(ti == 0)
    def _():
        pooled_ref[0] = cur

    @pl.when(ti > 0)
    def _():
        pooled_ref[0] = jnp.maximum(pooled_ref[0], cur)


def edgeconv_pool_layer(h1, wd, wcd, b, wc1, wc2, bc, *, k):
    B, C, N = h1.shape
    Cout = wd.shape[0]
    E = wc1.shape[1]
    TN = _pick_tile(N)
    kern = functools.partial(_edgeconv_pool_kernel, k=k, tn=TN)
    return pl.pallas_call(
        kern,
        out_shape=jax.ShapeDtypeStruct((B, 1, E), jnp.float32),
        grid=(B, N // TN),
        in_specs=[
            pl.BlockSpec((1, C, N), lambda bi, ti: (bi, 0, 0)),
            pl.BlockSpec((Cout, C), lambda bi, ti: (0, 0)),
            pl.BlockSpec((Cout, C), lambda bi, ti: (0, 0)),
            pl.BlockSpec((Cout, 1), lambda bi, ti: (0, 0)),
            pl.BlockSpec((C, E), lambda bi, ti: (0, 0)),
            pl.BlockSpec((Cout, E), lambda bi, ti: (0, 0)),
            pl.BlockSpec((1, E), lambda bi, ti: (0, 0)),
        ],
        out_specs=pl.BlockSpec((1, 1, E), lambda bi, ti: (bi, 0, 0)),
        compiler_params=pltpu.CompilerParams(
            dimension_semantics=("parallel", "arbitrary"),   # pool reduces over ti
            vmem_limit_bytes=32 * 1024 * 1024),
    )(h1, wd, wcd, b, wc1, wc2, bc)


# --------------------------------------------------------------------------
# Batched head: fc_latent + decoder (2-layer MLP) + fc_projection over all B
# --------------------------------------------------------------------------

def _fc_head_kernel(feat_ref, wlat_ref, blat_ref, wproj_ref, bproj_ref,
                    wd1_ref, bd1_ref, wd2_ref, bd2_ref,
                    lat_ref, proj_ref, rec_ref):
    f = feat_ref[...]                                                # (B, E)
    lat = jnp.dot(f, wlat_ref[...], preferred_element_type=jnp.float32) + blat_ref[...]
    lat_ref[...] = lat
    proj_ref[...] = (jnp.dot(f, wproj_ref[...], preferred_element_type=jnp.float32)
                     + bproj_ref[...])
    hdec = jnp.maximum(jnp.dot(lat, wd1_ref[...], preferred_element_type=jnp.float32)
                       + bd1_ref[...], 0.0)                          # ReLU
    rec_ref[...] = (jnp.dot(hdec, wd2_ref[...], preferred_element_type=jnp.float32)
                    + bd2_ref[...])


def fc_head(feat, p):
    B, E = feat.shape
    L = p["wlat"].shape[1]
    PD = p["wproj"].shape[1]
    OUT = p["wd2"].shape[1]
    full = lambda a: pl.BlockSpec(a.shape, lambda i: (0,) * a.ndim)
    return pl.pallas_call(
        _fc_head_kernel,
        out_shape=(jax.ShapeDtypeStruct((B, L), jnp.float32),
                   jax.ShapeDtypeStruct((B, PD), jnp.float32),
                   jax.ShapeDtypeStruct((B, OUT), jnp.float32)),
        grid=(1,),
        in_specs=[full(feat), full(p["wlat"]), full(p["blat"]),
                  full(p["wproj"]), full(p["bproj"]),
                  full(p["wd1"]), full(p["bd1"]),
                  full(p["wd2"]), full(p["bd2"])],
        out_specs=(pl.BlockSpec((B, L), lambda i: (0, 0)),
                   pl.BlockSpec((B, PD), lambda i: (0, 0)),
                   pl.BlockSpec((B, OUT), lambda i: (0, 0))),
        compiler_params=pltpu.CompilerParams(dimension_semantics=("arbitrary",)),
    )(feat, p["wlat"], p["blat"], p["wproj"], p["bproj"],
      p["wd1"], p["bd1"], p["wd2"], p["bd2"])


# --------------------------------------------------------------------------
# Forward pass (ContrastiveAE.forward): 3 pallas_calls total
# --------------------------------------------------------------------------

def contrastive_ae_forward(x, p, *, k):
    """x: (B, 3, N) NCW point cloud.  Returns (reconstructed, latent, projected)."""
    B = x.shape[0]
    # Edge feature [x_j - x_i, x_i]: Wd(x_j - x_i) + Wc x_i = Wd x_j + (Wc - Wd) x_i.
    wcd1 = p["wc_e1"] - p["wd_e1"]        # precomputed once per call (tiny)
    wcd2 = p["wc_e2"] - p["wd_e2"]
    # Layer 1: fused kNN + EdgeConv (dynamic graph recomputed on h1 below).
    h1 = edgeconv_layer(x, p["wd_e1"], wcd1, p["b_e1"], k=k)         # (B, 64, N)
    # Layer 2: fused kNN + EdgeConv + final conv + LeakyReLU + global max pool.
    pooled = edgeconv_pool_layer(h1, p["wd_e2"], wcd2, p["b_e2"],
                                 p["wc1"], p["wc2"], p["bc"], k=k)   # (B, 1, E)
    feat = pooled.reshape(B, -1)                                     # (B, E)
    # Batched FCs: fc_latent, decoder, fc_projection (projection reuses the
    # deterministic eval-mode encoder features instead of re-running it).
    lat, proj, rec = fc_head(feat, p)
    return rec.reshape(B, 3, -1), lat, proj


# --------------------------------------------------------------------------
# Deterministic parameter init (PyTorch-style uniform(-1/sqrt(fan_in), ...))
# --------------------------------------------------------------------------

def init_params(key, *, emb_dims, latent_dim, projection_dim,
                num_points, dec_hidden):
    keys = iter(jax.random.split(key, 17))

    def u(shape, fan_in):
        bound = 1.0 / float(fan_in) ** 0.5
        return jax.random.uniform(next(keys), shape, jnp.float32, -bound, bound)

    p = {}
    # EdgeConv1: Conv2d(2*3 -> 64, k=1) split into (x_j - x_i) / x_i halves,
    # output-major (Cout, Cin) for W @ x with channels-first features.
    p["wd_e1"], p["wc_e1"], p["b_e1"] = u((64, 3), 6), u((64, 3), 6), u((64, 1), 6)
    # EdgeConv2: Conv2d(2*64 -> 64, k=1)
    p["wd_e2"], p["wc_e2"], p["b_e2"] = (u((64, 64), 128), u((64, 64), 128),
                                         u((64, 1), 128))
    # Final 1x1 conv (128 -> emb_dims), input-major, split into h1/h2 halves.
    p["wc1"], p["wc2"], p["bc"] = (u((64, emb_dims), 128), u((64, emb_dims), 128),
                                   u((1, emb_dims), 128))
    # fc_latent / fc_projection (input-major: y = x @ W + b)
    p["wlat"], p["blat"] = u((emb_dims, latent_dim), emb_dims), u((1, latent_dim), emb_dims)
    p["wproj"], p["bproj"] = (u((emb_dims, projection_dim), emb_dims),
                              u((1, projection_dim), emb_dims))
    # SimpleTestDecoder: latent -> hidden (ReLU) -> 3*num_points
    p["wd1"], p["bd1"] = u((latent_dim, dec_hidden), latent_dim), u((1, dec_hidden), latent_dim)
    p["wd2"], p["bd2"] = (u((dec_hidden, 3 * num_points), dec_hidden),
                          u((1, 3 * num_points), dec_hidden))
    return p


# --------------------------------------------------------------------------

if __name__ == "__main__":
    B, N_PTS, K = 2, 128, 8
    EMB_DIMS, LATENT_DIM, PROJ_DIM = 64, 32, 16
    NUM_POINTS, DEC_HIDDEN = 128, 128

    key = jax.random.PRNGKey(0)
    kp, kx = jax.random.split(key)
    params = init_params(kp, emb_dims=EMB_DIMS, latent_dim=LATENT_DIM,
                         projection_dim=PROJ_DIM, num_points=NUM_POINTS,
                         dec_hidden=DEC_HIDDEN)
    x = jax.random.normal(kx, (B, 3, N_PTS), jnp.float32)   # (B, C=3, N) NCW

    fwd = jax.jit(functools.partial(contrastive_ae_forward, k=K))
    reconstructed, latent, projected = fwd(x, params)
    jax.block_until_ready((reconstructed, latent, projected))

    assert reconstructed.shape == (B, 3, NUM_POINTS)
    assert latent.shape == (B, LATENT_DIM)
    assert projected.shape == (B, PROJ_DIM)
    assert jnp.all(jnp.isfinite(reconstructed))
    assert jnp.all(jnp.isfinite(latent))
    assert jnp.all(jnp.isfinite(projected))
    print("KERNEL_OK")
</pallas_src>

<mosaic_0001>
module attributes {stable_mosaic.version = 11 : i64} {
  func.func @_edgeconv_layer_kernel(%arg0: i32, %arg1: i32, %arg2: memref<1x3x128xf32, #tpu.memory_space<vmem>>, %arg3: memref<64x3xf32, #tpu.memory_space<vmem>>, %arg4: memref<64x3xf32, #tpu.memory_space<vmem>>, %arg5: memref<64x1xf32, #tpu.memory_space<vmem>>, %arg6: memref<1x64x128xf32, #tpu.memory_space<vmem>>) attributes {dimension_semantics = [#tpu.dimension_semantics<parallel>, #tpu.dimension_semantics<parallel>], iteration_bounds = array<i64: 2, 1>, scalar_prefetch = 0 : i64, scratch_operands = 0 : i64, tpu.core_type = #tpu.core_type<tc>, window_params = [{transform_indices = @transform_0, window_bounds = array<i64: 1, 3, 128>}, {pipeline_mode = #tpu.pipeline_mode<synchronous>, transform_indices = @transform_1, window_bounds = array<i64: 64, 3>}, {pipeline_mode = #tpu.pipeline_mode<synchronous>, transform_indices = @transform_2, window_bounds = array<i64: 64, 3>}, {pipeline_mode = #tpu.pipeline_mode<synchronous>, transform_indices = @transform_3, window_bounds = array<i64: 64, 1>}, {transform_indices = @transform_4, window_bounds = array<i64: 1, 64, 128>}]} {
    %c0 = arith.constant 0 : index
    %c0_0 = arith.constant 0 : index
    %c0_1 = arith.constant 0 : index
    %0 = vector.load %arg2[%c0, %c0_0, %c0_1] : memref<1x3x128xf32, #tpu.memory_space<vmem>>, vector<1x3x128xf32>
    %1 = vector.shape_cast %0 : vector<1x3x128xf32> to vector<3x128xf32>
    %c0_2 = arith.constant 0 : index
    %c0_3 = arith.constant 0 : index
    %2 = vector.load %arg3[%c0_2, %c0_3] : memref<64x3xf32, #tpu.memory_space<vmem>>, vector<64x3xf32>
    %c0_4 = arith.constant 0 : index
    %c0_5 = arith.constant 0 : index
    %3 = vector.load %arg4[%c0_4, %c0_5] : memref<64x3xf32, #tpu.memory_space<vmem>>, vector<64x3xf32>
    %c0_6 = arith.constant 0 : index
    %c0_7 = arith.constant 0 : index
    %4 = vector.load %arg5[%c0_6, %c0_7] : memref<64x1xf32, #tpu.memory_space<vmem>>, vector<64x1xf32>
    %cst = arith.constant dense<0.000000e+00> : vector<128x128xf32>
    %5 = tpu.matmul %1, %1, %cst {dimension_numbers = #tpu.dot_dimension_numbers<[0], [0], [1], [1], [0, 1, 1, 1], [], []>} : vector<3x128xf32>, vector<3x128xf32>, vector<128x128xf32> -> vector<128x128xf32>
    %6 = arith.mulf %1, %1 : vector<3x128xf32>
    %cst_8 = arith.constant 1.000000e+00 : f32
    %7 = vector.broadcast %cst_8 : f32 to vector<3x1xf32>
    %cst_9 = arith.constant dense<0.000000e+00> : vector<128x1xf32>
    %8 = tpu.matmul %6, %7, %cst_9 {dimension_numbers = #tpu.dot_dimension_numbers<[0], [0], [1], [1], [0, 1, 1, 1], [], []>} : vector<3x128xf32>, vector<3x1xf32>, vector<128x1xf32> -> vector<128x1xf32>
    %cst_10 = arith.constant 2.000000e+00 : f32
    %9 = vector.broadcast %cst_10 : f32 to vector<128x128xf32>
    %10 = arith.mulf %9, %5 : vector<128x128xf32>
    %11 = vector.broadcast %8 : vector<128x1xf32> to vector<128x128xf32>
    %12 = arith.subf %10, %11 : vector<128x128xf32>
    %cst_11 = arith.constant dense<0.000000e+00> : vector<64x128xf32>
    %13 = tpu.matmul %2, %1, %cst_11 {dimension_numbers = #tpu.dot_dimension_numbers<[1], [0], [0], [1], [0, 0, 1, 1], [], []>} : vector<64x3xf32>, vector<3x128xf32>, vector<64x128xf32> -> vector<64x128xf32>
    %14 = arith.truncf %13 : vector<64x128xf32> to vector<64x128xbf16>
    %cst_12 = arith.constant dense<0.000000e+00> : vector<64x128xf32>
    %15 = tpu.matmul %3, %1, %cst_12 {dimension_numbers = #tpu.dot_dimension_numbers<[1], [0], [0], [1], [0, 0, 1, 1], [], []>} : vector<64x3xf32>, vector<3x128xf32>, vector<64x128xf32> -> vector<64x128xf32>
    %16 = vector.broadcast %4 : vector<64x1xf32> to vector<64x128xf32>
    %17 = arith.addf %15, %16 : vector<64x128xf32>
    %18 = tpu.iota {dimensions = array<i32: 0>} : vector<128x1xi32>
    %19 = arith.sitofp %18 : vector<128x1xi32> to vector<128x1xf32>
    %cst_13 = arith.constant 0xFF800000 : f32
    %20 = vector.broadcast %cst_13 : f32 to vector<64x128xf32>
    %cst_14 = arith.constant 1.280000e+02 : f32
    %c0_i32 = arith.constant 0 : i32
    %c4_i32 = arith.constant 4 : i32
    %21 = arith.addi %c0_i32, %c4_i32 : i32
    %c1_i32 = arith.constant 1 : i32
    %22:2 = scf.for %arg7 = %c0_i32 to %21 step %c1_i32 iter_args(%arg8 = %12, %arg9 = %20) -> (vector<128x128xf32>, vector<64x128xf32>)  : i32 {
      %cst_18 = arith.constant dense<0xFF800000> : vector<128xf32>
      %26 = vector.multi_reduction <maximumf>, %arg8, %cst_18 [0] : vector<128x128xf32> to vector<128xf32>
      %27 = vector.shape_cast %26 : vector<128xf32> to vector<1x128xf32>
      %28 = vector.broadcast %27 : vector<1x128xf32> to vector<128x128xf32>
      %29 = arith.cmpf oeq, %arg8, %28 : vector<128x128xf32>
      %30 = vector.shape_cast %19 : vector<128x1xf32> to vector<128x1xf32>
      %31 = vector.broadcast %30 : vector<128x1xf32> to vector<128x128xf32>
      %32 = vector.broadcast %cst_14 : f32 to vector<128x128xf32>
      %33 = arith.select %29, %31, %32 : vector<128x128xi1>, vector<128x128xf32>
      %cst_19 = arith.constant dense<0x7F800000> : vector<128xf32>
      %34 = vector.multi_reduction <minimumf>, %33, %cst_19 [0] : vector<128x128xf32> to vector<128xf32>
      %35 = vector.shape_cast %34 : vector<128xf32> to vector<1x128xf32>
      %36 = vector.broadcast %19 : vector<128x1xf32> to vector<128x128xf32>
      %37 = vector.broadcast %35 : vector<1x128xf32> to vector<128x128xf32>
      %38 = arith.cmpf oeq, %36, %37 : vector<128x128xf32>
      %cst_20 = arith.constant 0xFF800000 : f32
      %39 = vector.broadcast %cst_20 : f32 to vector<128x128xf32>
      %40 = arith.select %38, %39, %arg8 : vector<128x128xi1>, vector<128x128xf32>
      %cst_21 = arith.constant dense<0xFF800000> : vector<128xf32>
      %41 = vector.multi_reduction <maximumf>, %40, %cst_21 [0] : vector<128x128xf32> to vector<128xf32>
      %42 = vector.shape_cast %41 : vector<128xf32> to vector<1x128xf32>
      %43 = vector.broadcast %42 : vector<1x128xf32> to vector<128x128xf32>
      %44 = arith.cmpf oeq, %40, %43 : vector<128x128xf32>
      %45 = vector.shape_cast %19 : vector<128x1xf32> to vector<128x1xf32>
      %46 = vector.broadcast %45 : vector<128x1xf32> to vector<128x128xf32>
      %47 = vector.broadcast %cst_14 : f32 to vector<128x128xf32>
      %48 = arith.select %44, %46, %47 : vector<128x128xi1>, vector<128x128xf32>
      %cst_22 = arith.constant dense<0x7F800000> : vector<128xf32>
      %49 = vector.multi_reduction <minimumf>, %48, %cst_22 [0] : vector<128x128xf32> to vector<128xf32>
      %50 = vector.shape_cast %49 : vector<128xf32> to vector<1x128xf32>
      %51 = vector.broadcast %19 : vector<128x1xf32> to vector<128x128xf32>
      %52 = vector.broadcast %50 : vector<1x128xf32> to vector<128x128xf32>
      %53 = arith.cmpf oeq, %51, %52 : vector<128x128xf32>
      %cst_23 = arith.constant 0xFF800000 : f32
      %54 = vector.broadcast %cst_23 : f32 to vector<128x128xf32>
      %55 = arith.select %53, %54, %40 : vector<128x128xi1>, vector<128x128xf32>
      %56 = arith.extui %38 : vector<128x128xi1> to vector<128x128xi32>
      %57 = arith.sitofp %56 : vector<128x128xi32> to vector<128x128xf32>
      %58 = arith.truncf %57 : vector<128x128xf32> to vector<128x128xbf16>
      %59 = arith.extui %53 : vector<128x128xi1> to vector<128x128xi32>
      %60 = arith.sitofp %59 : vector<128x128xi32> to vector<128x128xf32>
      %61 = arith.truncf %60 : vector<128x128xf32> to vector<128x128xbf16>
      %62 = tpu.concatenate %58, %61 in 1 : vector<128x128xbf16>, vector<128x128xbf16> -> vector<128x256xbf16>
      %cst_24 = arith.constant dense<0.000000e+00> : vector<64x256xf32>
      %63 = tpu.matmul %14, %62, %cst_24 {dimension_numbers = #tpu.dot_dimension_numbers<[1], [0], [0], [1], [0, 0, 1, 1], [], []>} : vector<64x128xbf16>, vector<128x256xbf16>, vector<64x256xf32> -> vector<64x256xf32>
      %64 = vector.extract_strided_slice %63 {offsets = [0, 0], sizes = [64, 128], strides = [1, 1]} : vector<64x256xf32> to vector<64x128xf32>
      %65 = arith.addf %64, %17 : vector<64x128xf32>
      %cst_25 = arith.constant 2.000000e-01 : f32
      %66 = vector.broadcast %cst_25 : f32 to vector<64x128xf32>
      %67 = arith.mulf %66, %65 : vector<64x128xf32>
      %68 = arith.maximumf %65, %67 : vector<64x128xf32>
      %69 = vector.extract_strided_slice %63 {offsets = [0, 128], sizes = [64, 128], strides = [1, 1]} : vector<64x256xf32> to vector<64x128xf32>
      %70 = arith.addf %69, %17 : vector<64x128xf32>
      %cst_26 = arith.constant 2.000000e-01 : f32
      %71 = vector.broadcast %cst_26 : f32 to vector<64x128xf32>
      %72 = arith.mulf %71, %70 : vector<64x128xf32>
      %73 = arith.maximumf %70, %72 : vector<64x128xf32>
      %74 = arith.maximumf %68, %73 : vector<64x128xf32>
      %75 = arith.maximumf %arg9, %74 : vector<64x128xf32>
      scf.yield %55, %75 : vector<128x128xf32>, vector<64x128xf32>
    }
    %c0_15 = arith.constant 0 : index
    %c0_16 = arith.constant 0 : index
    %c0_17 = arith.constant 0 : index
    %23 = vector.load %arg6[%c0_15, %c0_16, %c0_17] : memref<1x64x128xf32, #tpu.memory_space<vmem>>, vector<1x64x128xf32>
    %24 = vector.shape_cast %23 : vector<1x64x128xf32> to vector<64x128xf32>
    %25 = vector.shape_cast %22#1 : vector<64x128xf32> to vector<1x64x128xf32>
    tpu.vector_store %arg6[%c0_15, %c0_16, %c0_17], %25 {strides = array<i32>} : memref<1x64x128xf32, #tpu.memory_space<vmem>>, vector<1x64x128xf32>,
    return
  }
  func.func @transform_0(%arg0: i32, %arg1: i32) -> (i32, i32, i32) {
    %c0_i32 = arith.constant 0 : i32
    %c0_i32_0 = arith.constant 0 : i32
    %c0_i32_1 = arith.constant 0 : i32
    return %arg0, %c0_i32, %c0_i32_0 : i32, i32, i32
  }
  func.func @transform_1(%arg0: i32, %arg1: i32) -> (i32, i32) {
    %c0_i32 = arith.constant 0 : i32
    %c0_i32_0 = arith.constant 0 : i32
    %c0_i32_1 = arith.constant 0 : i32
    return %c0_i32, %c0_i32_0 : i32, i32
  }
  func.func @transform_2(%arg0: i32, %arg1: i32) -> (i32, i32) {
    %c0_i32 = arith.constant 0 : i32
    %c0_i32_0 = arith.constant 0 : i32
    %c0_i32_1 = arith.constant 0 : i32
    return %c0_i32, %c0_i32_0 : i32, i32
  }
  func.func @transform_3(%arg0: i32, %arg1: i32) -> (i32, i32) {
    %c0_i32 = arith.constant 0 : i32
    %c0_i32_0 = arith.constant 0 : i32
    %c0_i32_1 = arith.constant 0 : i32
    return %c0_i32, %c0_i32_0 : i32, i32
  }
  func.func @transform_4(%arg0: i32, %arg1: i32) -> (i32, i32, i32) {
    %c0_i32 = arith.constant 0 : i32
    %c0_i32_0 = arith.constant 0 : i32
    return %arg0, %c0_i32, %arg1 : i32, i32, i32
  }
}

module attributes {stable_mosaic.version = 11 : i64} {
  func.func @_edgeconv_pool_kernel(%arg0: i32, %arg1: i32, %arg2: memref<1x64x128xf32, #tpu.memory_space<vmem>>, %arg3: memref<64x64xf32, #tpu.memory_space<vmem>>, %arg4: memref<64x64xf32, #tpu.memory_space<vmem>>, %arg5: memref<64x1xf32, #tpu.memory_space<vmem>>, %arg6: memref<64x64xf32, #tpu.memory_space<vmem>>, %arg7: memref<64x64xf32, #tpu.memory_space<vmem>>, %arg8: memref<1x64xf32, #tpu.memory_space<vmem>>, %arg9: memref<1x1x64xf32, #tpu.memory_space<vmem>>) attributes {dimension_semantics = [#tpu.dimension_semantics<parallel>, #tpu.dimension_semantics<arbitrary>], iteration_bounds = array<i64: 2, 1>, scalar_prefetch = 0 : i64, scratch_operands = 0 : i64, tpu.core_type = #tpu.core_type<tc>, window_params = [{transform_indices = @transform_0, window_bounds = array<i64: 1, 64, 128>}, {pipeline_mode = #tpu.pipeline_mode<synchronous>, transform_indices = @transform_1, window_bounds = array<i64: 64, 64>}, {pipeline_mode = #tpu.pipeline_mode<synchronous>, transform_indices = @transform_2, window_bounds = array<i64: 64, 64>}, {pipeline_mode = #tpu.pipeline_mode<synchronous>, transform_indices = @transform_3, window_bounds = array<i64: 64, 1>}, {pipeline_mode = #tpu.pipeline_mode<synchronous>, transform_indices = @transform_4, window_bounds = array<i64: 64, 64>}, {pipeline_mode = #tpu.pipeline_mode<synchronous>, transform_indices = @transform_5, window_bounds = array<i64: 64, 64>}, {pipeline_mode = #tpu.pipeline_mode<synchronous>, transform_indices = @transform_6, window_bounds = array<i64: 1, 64>}, {transform_indices = @transform_7, window_bounds = array<i64: 1, 1, 64>}]} {
    %c0 = arith.constant 0 : index
    %c0_0 = arith.constant 0 : index
    %c0_1 = arith.constant 0 : index
    %0 = vector.load %arg2[%c0, %c0_0, %c0_1] : memref<1x64x128xf32, #tpu.memory_space<vmem>>, vector<1x64x128xf32>
    %1 = vector.shape_cast %0 : vector<1x64x128xf32> to vector<64x128xf32>
    %c0_2 = arith.constant 0 : index
    %c0_3 = arith.constant 0 : index
    %2 = vector.load %arg3[%c0_2, %c0_3] : memref<64x64xf32, #tpu.memory_space<vmem>>, vector<64x64xf32>
    %c0_4 = arith.constant 0 : index
    %c0_5 = arith.constant 0 : index
    %3 = vector.load %arg4[%c0_4, %c0_5] : memref<64x64xf32, #tpu.memory_space<vmem>>, vector<64x64xf32>
    %c0_6 = arith.constant 0 : index
    %c0_7 = arith.constant 0 : index
    %4 = vector.load %arg5[%c0_6, %c0_7] : memref<64x1xf32, #tpu.memory_space<vmem>>, vector<64x1xf32>
    %cst = arith.constant dense<0.000000e+00> : vector<128x128xf32>
    %5 = tpu.matmul %1, %1, %cst {dimension_numbers = #tpu.dot_dimension_numbers<[0], [0], [1], [1], [0, 1, 1, 1], [], []>} : vector<64x128xf32>, vector<64x128xf32>, vector<128x128xf32> -> vector<128x128xf32>
    %6 = arith.mulf %1, %1 : vector<64x128xf32>
    %cst_8 = arith.constant 1.000000e+00 : f32
    %7 = vector.broadcast %cst_8 : f32 to vector<64x1xf32>
    %cst_9 = arith.constant dense<0.000000e+00> : vector<128x1xf32>
    %8 = tpu.matmul %6, %7, %cst_9 {dimension_numbers = #tpu.dot_dimension_numbers<[0], [0], [1], [1], [0, 1, 1, 1], [], []>} : vector<64x128xf32>, vector<64x1xf32>, vector<128x1xf32> -> vector<128x1xf32>
    %cst_10 = arith.constant 2.000000e+00 : f32
    %9 = vector.broadcast %cst_10 : f32 to vector<128x128xf32>
    %10 = arith.mulf %9, %5 : vector<128x128xf32>
    %11 = vector.broadcast %8 : vector<128x1xf32> to vector<128x128xf32>
    %12 = arith.subf %10, %11 : vector<128x128xf32>
    %cst_11 = arith.constant dense<0.000000e+00> : vector<64x128xf32>
    %13 = tpu.matmul %2, %1, %cst_11 {dimension_numbers = #tpu.dot_dimension_numbers<[1], [0], [0], [1], [0, 0, 1, 1], [], []>} : vector<64x64xf32>, vector<64x128xf32>, vector<64x128xf32> -> vector<64x128xf32>
    %14 = arith.truncf %13 : vector<64x128xf32> to vector<64x128xbf16>
    %cst_12 = arith.constant dense<0.000000e+00> : vector<64x128xf32>
    %15 = tpu.matmul %3, %1, %cst_12 {dimension_numbers = #tpu.dot_dimension_numbers<[1], [0], [0], [1], [0, 0, 1, 1], [], []>} : vector<64x64xf32>, vector<64x128xf32>, vector<64x128xf32> -> vector<64x128xf32>
    %16 = vector.broadcast %4 : vector<64x1xf32> to vector<64x128xf32>
    %17 = arith.addf %15, %16 : vector<64x128xf32>
    %18 = tpu.iota {dimensions = array<i32: 0>} : vector<128x1xi32>
    %19 = arith.sitofp %18 : vector<128x1xi32> to vector<128x1xf32>
    %cst_13 = arith.constant 0xFF800000 : f32
    %20 = vector.broadcast %cst_13 : f32 to vector<64x128xf32>
    %cst_14 = arith.constant 1.280000e+02 : f32
    %c0_i32 = arith.constant 0 : i32
    %c4_i32 = arith.constant 4 : i32
    %21 = arith.addi %c0_i32, %c4_i32 : i32
    %c1_i32 = arith.constant 1 : i32
    %22:2 = scf.for %arg10 = %c0_i32 to %21 step %c1_i32 iter_args(%arg11 = %12, %arg12 = %20) -> (vector<128x128xf32>, vector<64x128xf32>)  : i32 {
      %cst_29 = arith.constant dense<0xFF800000> : vector<128xf32>
      %42 = vector.multi_reduction <maximumf>, %arg11, %cst_29 [0] : vector<128x128xf32> to vector<128xf32>
      %43 = vector.shape_cast %42 : vector<128xf32> to vector<1x128xf32>
      %44 = vector.broadcast %43 : vector<1x128xf32> to vector<128x128xf32>
      %45 = arith.cmpf oeq, %arg11, %44 : vector<128x128xf32>
      %46 = vector.shape_cast %19 : vector<128x1xf32> to vector<128x1xf32>
      %47 = vector.broadcast %46 : vector<128x1xf32> to vector<128x128xf32>
      %48 = vector.broadcast %cst_14 : f32 to vector<128x128xf32>
      %49 = arith.select %45, %47, %48 : vector<128x128xi1>, vector<128x128xf32>
      %cst_30 = arith.constant dense<0x7F800000> : vector<128xf32>
      %50 = vector.multi_reduction <minimumf>, %49, %cst_30 [0] : vector<128x128xf32> to vector<128xf32>
      %51 = vector.shape_cast %50 : vector<128xf32> to vector<1x128xf32>
      %52 = vector.broadcast %19 : vector<128x1xf32> to vector<128x128xf32>
      %53 = vector.broadcast %51 : vector<1x128xf32> to vector<128x128xf32>
      %54 = arith.cmpf oeq, %52, %53 : vector<128x128xf32>
      %cst_31 = arith.constant 0xFF800000 : f32
      %55 = vector.broadcast %cst_31 : f32 to vector<128x128xf32>
      %56 = arith.select %54, %55, %arg11 : vector<128x128xi1>, vector<128x128xf32>
      %cst_32 = arith.constant dense<0xFF800000> : vector<128xf32>
      %57 = vector.multi_reduction <maximumf>, %56, %cst_32 [0] : vector<128x128xf32> to vector<128xf32>
      %58 = vector.shape_cast %57 : vector<128xf32> to vector<1x128xf32>
      %59 = vector.broadcast %58 : vector<1x128xf32> to vector<128x128xf32>
      %60 = arith.cmpf oeq, %56, %59 : vector<128x128xf32>
      %61 = vector.shape_cast %19 : vector<128x1xf32> to vector<128x1xf32>
      %62 = vector.broadcast %61 : vector<128x1xf32> to vector<128x128xf32>
      %63 = vector.broadcast %cst_14 : f32 to vector<128x128xf32>
      %64 = arith.select %60, %62, %63 : vector<128x128xi1>, vector<128x128xf32>
      %cst_33 = arith.constant dense<0x7F800000> : vector<128xf32>
      %65 = vector.multi_reduction <minimumf>, %64, %cst_33 [0] : vector<128x128xf32> to vector<128xf32>
      %66 = vector.shape_cast %65 : vector<128xf32> to vector<1x128xf32>
      %67 = vector.broadcast %19 : vector<128x1xf32> to vector<128x128xf32>
      %68 = vector.broadcast %66 : vector<1x128xf32> to vector<128x128xf32>
      %69 = arith.cmpf oeq, %67, %68 : vector<128x128xf32>
      %cst_34 = arith.constant 0xFF800000 : f32
      %70 = vector.broadcast %cst_34 : f32 to vector<128x128xf32>
      %71 = arith.select %69, %70, %56 : vector<128x128xi1>, vector<128x128xf32>
      %72 = arith.extui %54 : vector<128x128xi1> to vector<128x128xi32>
      %73 = arith.sitofp %72 : vector<128x128xi32> to vector<128x128xf32>
      %74 = arith.truncf %73 : vector<128x128xf32> to vector<128x128xbf16>
      %75 = arith.extui %69 : vector<128x128xi1> to vector<128x128xi32>
      %76 = arith.sitofp %75 : vector<128x128xi32> to vector<128x128xf32>
      %77 = arith.truncf %76 : vector<128x128xf32> to vector<128x128xbf16>
      %78 = tpu.concatenate %74, %77 in 1 : vector<128x128xbf16>, vector<128x128xbf16> -> vector<128x256xbf16>
      %cst_35 = arith.constant dense<0.000000e+00> : vector<64x256xf32>
      %79 = tpu.matmul %14, %78, %cst_35 {dimension_numbers = #tpu.dot_dimension_numbers<[1], [0], [0], [1], [0, 0, 1, 1], [], []>} : vector<64x128xbf16>, vector<128x256xbf16>, vector<64x256xf32> -> vector<64x256xf32>
      %80 = vector.extract_strided_slice %79 {offsets = [0, 0], sizes = [64, 128], strides = [1, 1]} : vector<64x256xf32> to vector<64x128xf32>
      %81 = arith.addf %80, %17 : vector<64x128xf32>
      %cst_36 = arith.constant 2.000000e-01 : f32
      %82 = vector.broadcast %cst_36 : f32 to vector<64x128xf32>
      %83 = arith.mulf %82, %81 : vector<64x128xf32>
      %84 = arith.maximumf %81, %83 : vector<64x128xf32>
      %85 = vector.extract_strided_slice %79 {offsets = [0, 128], sizes = [64, 128], strides = [1, 1]} : vector<64x256xf32> to vector<64x128xf32>
      %86 = arith.addf %85, %17 : vector<64x128xf32>
      %cst_37 = arith.constant 2.000000e-01 : f32
      %87 = vector.broadcast %cst_37 : f32 to vector<64x128xf32>
      %88 = arith.mulf %87, %86 : vector<64x128xf32>
      %89 = arith.maximumf %86, %88 : vector<64x128xf32>
      %90 = arith.maximumf %84, %89 : vector<64x128xf32>
      %91 = arith.maximumf %arg12, %90 : vector<64x128xf32>
      scf.yield %71, %91 : vector<128x128xf32>, vector<64x128xf32>
    }
    %c0_15 = arith.constant 0 : index
    %c0_16 = arith.constant 0 : index
    %23 = vector.load %arg6[%c0_15, %c0_16] : memref<64x64xf32, #tpu.memory_space<vmem>>, vector<64x64xf32>
    %cst_17 = arith.constant dense<0.000000e+00> : vector<128x64xf32>
    %24 = tpu.matmul %1, %23, %cst_17 {dimension_numbers = #tpu.dot_dimension_numbers<[0], [0], [1], [1], [0, 1, 1, 1], [], []>} : vector<64x128xf32>, vector<64x64xf32>, vector<128x64xf32> -> vector<128x64xf32>
    %c0_18 = arith.constant 0 : index
    %c0_19 = arith.constant 0 : index
    %25 = vector.load %arg7[%c0_18, %c0_19] : memref<64x64xf32, #tpu.memory_space<vmem>>, vector<64x64xf32>
    %cst_20 = arith.constant dense<0.000000e+00> : vector<128x64xf32>
    %26 = tpu.matmul %22#1, %25, %cst_20 {dimension_numbers = #tpu.dot_dimension_numbers<[0], [0], [1], [1], [0, 1, 1, 1], [], []>} : vector<64x128xf32>, vector<64x64xf32>, vector<128x64xf32> -> vector<128x64xf32>
    %27 = arith.addf %24, %26 : vector<128x64xf32>
    %c0_21 = arith.constant 0 : index
    %c0_22 = arith.constant 0 : index
    %28 = vector.load %arg8[%c0_21, %c0_22] : memref<1x64xf32, #tpu.memory_space<vmem>>, vector<1x64xf32>
    %29 = vector.broadcast %28 : vector<1x64xf32> to vector<128x64xf32>
    %30 = arith.addf %27, %29 : vector<128x64xf32>
    %cst_23 = arith.constant 2.000000e-01 : f32
    %31 = vector.broadcast %cst_23 : f32 to vector<128x64xf32>
    %32 = arith.mulf %31, %30 : vector<128x64xf32>
    %33 = arith.maximumf %30, %32 : vector<128x64xf32>
    %cst_24 = arith.constant dense<0xFF800000> : vector<64xf32>
    %34 = vector.multi_reduction <maximumf>, %33, %cst_24 [0] : vector<128x64xf32> to vector<64xf32>
    %35 = vector.shape_cast %34 : vector<64xf32> to vector<1x64xf32>
    %c0_i32_25 = arith.constant 0 : i32
    %36 = arith.cmpi eq, %arg1, %c0_i32_25 : i32
    %37 = arith.extui %36 : i1 to i32
    %c0_i32_26 = arith.constant 0 : i32
    %38 = arith.cmpi ne, %37, %c0_i32_26 : i32
    scf.if %38 {
      %c0_29 = arith.constant 0 : index
      %c0_30 = arith.constant 0 : index
      %c0_31 = arith.constant 0 : index
      %42 = vector.load %arg9[%c0_29, %c0_30, %c0_31] : memref<1x1x64xf32, #tpu.memory_space<vmem>>, vector<1x1x64xf32>
      %43 = vector.shape_cast %42 : vector<1x1x64xf32> to vector<1x64xf32>
      %44 = vector.shape_cast %35 : vector<1x64xf32> to vector<1x1x64xf32>
      tpu.vector_store %arg9[%c0_29, %c0_30, %c0_31], %44 {strides = array<i32>} : memref<1x1x64xf32, #tpu.memory_space<vmem>>, vector<1x1x64xf32>,
    } else {
    }
    %c0_i32_27 = arith.constant 0 : i32
    %39 = arith.cmpi sgt, %arg1, %c0_i32_27 : i32
    %40 = arith.extui %39 : i1 to i32
    %c0_i32_28 = arith.constant 0 : i32
    %41 = arith.cmpi ne, %40, %c0_i32_28 : i32
    scf.if %41 {
      %c0_29 = arith.constant 0 : index
      %c0_30 = arith.constant 0 : index
      %c0_31 = arith.constant 0 : index
      %42 = vector.load %arg9[%c0_29, %c0_30, %c0_31] : memref<1x1x64xf32, #tpu.memory_space<vmem>>, vector<1x1x64xf32>
      %43 = vector.shape_cast %42 : vector<1x1x64xf32> to vector<1x64xf32>
      %44 = arith.maximumf %43, %35 : vector<1x64xf32>
      %c0_32 = arith.constant 0 : index
      %c0_33 = arith.constant 0 : index
      %c0_34 = arith.constant 0 : index
      %45 = vector.load %arg9[%c0_32, %c0_33, %c0_34] : memref<1x1x64xf32, #tpu.memory_space<vmem>>, vector<1x1x64xf32>
      %46 = vector.shape_cast %45 : vector<1x1x64xf32> to vector<1x64xf32>
      %47 = vector.shape_cast %44 : vector<1x64xf32> to vector<1x1x64xf32>
      tpu.vector_store %arg9[%c0_32, %c0_33, %c0_34], %47 {strides = array<i32>} : memref<1x1x64xf32, #tpu.memory_space<vmem>>, vector<1x1x64xf32>,
    } else {
    }
    return
  }
  func.func @transform_0(%arg0: i32, %arg1: i32) -> (i32, i32, i32) {
    %c0_i32 = arith.constant 0 : i32
    %c0_i32_0 = arith.constant 0 : i32
    %c0_i32_1 = arith.constant 0 : i32
    return %arg0, %c0_i32, %c0_i32_0 : i32, i32, i32
  }
  func.func @transform_1(%arg0: i32, %arg1: i32) -> (i32, i32) {
    %c0_i32 = arith.constant 0 : i32
    %c0_i32_0 = arith.constant 0 : i32
    %c0_i32_1 = arith.constant 0 : i32
    return %c0_i32, %c0_i32_0 : i32, i32
  }
  func.func @transform_2(%arg0: i32, %arg1: i32) -> (i32, i32) {
    %c0_i32 = arith.constant 0 : i32
    %c0_i32_0 = arith.constant 0 : i32
    %c0_i32_1 = arith.constant 0 : i32
    return %c0_i32, %c0_i32_0 : i32, i32
  }
  func.func @transform_3(%arg0: i32, %arg1: i32) -> (i32, i32) {
    %c0_i32 = arith.constant 0 : i32
    %c0_i32_0 = arith.constant 0 : i32
    %c0_i32_1 = arith.constant 0 : i32
    return %c0_i32, %c0_i32_0 : i32, i32
  }
  func.func @transform_4(%arg0: i32, %arg1: i32) -> (i32, i32) {
    %c0_i32 = arith.constant 0 : i32
    %c0_i32_0 = arith.constant 0 : i32
    %c0_i32_1 = arith.constant 0 : i32
    return %c0_i32, %c0_i32_0 : i32, i32
  }
  func.func @transform_5(%arg0: i32, %arg1: i32) -> (i32, i32) {
    %c0_i32 = arith.constant 0 : i32
    %c0_i32_0 = arith.constant 0 : i32
    %c0_i32_1 = arith.constant 0 : i32
    return %c0_i32, %c0_i32_0 : i32, i32
  }
  func.func @transform_6(%arg0: i32, %arg1: i32) -> (i32, i32) {
    %c0_i32 = arith.constant 0 : i32
    %c0_i32_0 = arith.constant 0 : i32
    %c0_i32_1 = arith.constant 0 : i32
    return %c0_i32, %c0_i32_0 : i32, i32
  }
  func.func @transform_7(%arg0: i32, %arg1: i32) -> (i32, i32, i32) {
    %c0_i32 = arith.constant 0 : i32
    %c0_i32_0 = arith.constant 0 : i32
    %c0_i32_1 = arith.constant 0 : i32
    return %arg0, %c0_i32, %c0_i32_0 : i32, i32, i32
  }
}

module attributes {stable_mosaic.version = 11 : i64} {
  func.func @_fc_head_kernel(%arg0: i32, %arg1: memref<2x64xf32, #tpu.memory_space<vmem>>, %arg2: memref<64x32xf32, #tpu.memory_space<vmem>>, %arg3: memref<1x32xf32, #tpu.memory_space<vmem>>, %arg4: memref<64x16xf32, #tpu.memory_space<vmem>>, %arg5: memref<1x16xf32, #tpu.memory_space<vmem>>, %arg6: memref<32x128xf32, #tpu.memory_space<vmem>>, %arg7: memref<1x128xf32, #tpu.memory_space<vmem>>, %arg8: memref<128x384xf32, #tpu.memory_space<vmem>>, %arg9: memref<1x384xf32, #tpu.memory_space<vmem>>, %arg10: memref<2x32xf32, #tpu.memory_space<vmem>>, %arg11: memref<2x16xf32, #tpu.memory_space<vmem>>, %arg12: memref<2x384xf32, #tpu.memory_space<vmem>>) attributes {dimension_semantics = [#tpu.dimension_semantics<arbitrary>], iteration_bounds = array<i64: 1>, scalar_prefetch = 0 : i64, scratch_operands = 0 : i64, tpu.core_type = #tpu.core_type<tc>, window_params = [{pipeline_mode = #tpu.pipeline_mode<synchronous>, transform_indices = @transform_0, window_bounds = array<i64: 2, 64>}, {pipeline_mode = #tpu.pipeline_mode<synchronous>, transform_indices = @transform_1, window_bounds = array<i64: 64, 32>}, {pipeline_mode = #tpu.pipeline_mode<synchronous>, transform_indices = @transform_2, window_bounds = array<i64: 1, 32>}, {pipeline_mode = #tpu.pipeline_mode<synchronous>, transform_indices = @transform_3, window_bounds = array<i64: 64, 16>}, {pipeline_mode = #tpu.pipeline_mode<synchronous>, transform_indices = @transform_4, window_bounds = array<i64: 1, 16>}, {pipeline_mode = #tpu.pipeline_mode<synchronous>, transform_indices = @transform_5, window_bounds = array<i64: 32, 128>}, {pipeline_mode = #tpu.pipeline_mode<synchronous>, transform_indices = @transform_6, window_bounds = array<i64: 1, 128>}, {pipeline_mode = #tpu.pipeline_mode<synchronous>, transform_indices = @transform_7, window_bounds = array<i64: 128, 384>}, {pipeline_mode = #tpu.pipeline_mode<synchronous>, transform_indices = @transform_8, window_bounds = array<i64: 1, 384>}, {pipeline_mode = #tpu.pipeline_mode<synchronous>, transform_indices = @transform_9, window_bounds = array<i64: 2, 32>}, {pipeline_mode = #tpu.pipeline_mode<synchronous>, transform_indices = @transform_10, window_bounds = array<i64: 2, 16>}, {pipeline_mode = #tpu.pipeline_mode<synchronous>, transform_indices = @transform_11, window_bounds = array<i64: 2, 384>}]} {
    %c0 = arith.constant 0 : index
    %c0_0 = arith.constant 0 : index
    %0 = vector.load %arg1[%c0, %c0_0] : memref<2x64xf32, #tpu.memory_space<vmem>>, vector<2x64xf32>
    %c0_1 = arith.constant 0 : index
    %c0_2 = arith.constant 0 : index
    %1 = vector.load %arg2[%c0_1, %c0_2] : memref<64x32xf32, #tpu.memory_space<vmem>>, vector<64x32xf32>
    %cst = arith.constant dense<0.000000e+00> : vector<2x32xf32>
    %2 = tpu.matmul %0, %1, %cst {dimension_numbers = #tpu.dot_dimension_numbers<[1], [0], [0], [1], [0, 0, 1, 1], [], []>} : vector<2x64xf32>, vector<64x32xf32>, vector<2x32xf32> -> vector<2x32xf32>
    %c0_3 = arith.constant 0 : index
    %c0_4 = arith.constant 0 : index
    %3 = vector.load %arg3[%c0_3, %c0_4] : memref<1x32xf32, #tpu.memory_space<vmem>>, vector<1x32xf32>
    %4 = vector.broadcast %3 : vector<1x32xf32> to vector<2x32xf32>
    %5 = arith.addf %2, %4 : vector<2x32xf32>
    %c0_5 = arith.constant 0 : index
    %c0_6 = arith.constant 0 : index
    %6 = vector.load %arg10[%c0_5, %c0_6] : memref<2x32xf32, #tpu.memory_space<vmem>>, vector<2x32xf32>
    tpu.vector_store %arg10[%c0_5, %c0_6], %5 {strides = array<i32>} : memref<2x32xf32, #tpu.memory_space<vmem>>, vector<2x32xf32>,
    %c0_7 = arith.constant 0 : index
    %c0_8 = arith.constant 0 : index
    %7 = vector.load %arg4[%c0_7, %c0_8] : memref<64x16xf32, #tpu.memory_space<vmem>>, vector<64x16xf32>
    %cst_9 = arith.constant dense<0.000000e+00> : vector<2x16xf32>
    %8 = tpu.matmul %0, %7, %cst_9 {dimension_numbers = #tpu.dot_dimension_numbers<[1], [0], [0], [1], [0, 0, 1, 1], [], []>} : vector<2x64xf32>, vector<64x16xf32>, vector<2x16xf32> -> vector<2x16xf32>
    %c0_10 = arith.constant 0 : index
    %c0_11 = arith.constant 0 : index
    %9 = vector.load %arg5[%c0_10, %c0_11] : memref<1x16xf32, #tpu.memory_space<vmem>>, vector<1x16xf32>
    %10 = vector.broadcast %9 : vector<1x16xf32> to vector<2x16xf32>
    %11 = arith.addf %8, %10 : vector<2x16xf32>
    %c0_12 = arith.constant 0 : index
    %c0_13 = arith.constant 0 : index
    %12 = vector.load %arg11[%c0_12, %c0_13] : memref<2x16xf32, #tpu.memory_space<vmem>>, vector<2x16xf32>
    tpu.vector_store %arg11[%c0_12, %c0_13], %11 {strides = array<i32>} : memref<2x16xf32, #tpu.memory_space<vmem>>, vector<2x16xf32>,
    %c0_14 = arith.constant 0 : index
    %c0_15 = arith.constant 0 : index
    %13 = vector.load %arg6[%c0_14, %c0_15] : memref<32x128xf32, #tpu.memory_space<vmem>>, vector<32x128xf32>
    %cst_16 = arith.constant dense<0.000000e+00> : vector<2x128xf32>
    %14 = tpu.matmul %5, %13, %cst_16 {dimension_numbers = #tpu.dot_dimension_numbers<[1], [0], [0], [1], [0, 0, 1, 1], [], []>} : vector<2x32xf32>, vector<32x128xf32>, vector<2x128xf32> -> vector<2x128xf32>
    %c0_17 = arith.constant 0 : index
    %c0_18 = arith.constant 0 : index
    %15 = vector.load %arg7[%c0_17, %c0_18] : memref<1x128xf32, #tpu.memory_space<vmem>>, vector<1x128xf32>
    %16 = vector.broadcast %15 : vector<1x128xf32> to vector<2x128xf32>
    %17 = arith.addf %14, %16 : vector<2x128xf32>
    %cst_19 = arith.constant 0.000000e+00 : f32
    %18 = vector.broadcast %cst_19 : f32 to vector<2x128xf32>
    %19 = arith.maximumf %17, %18 : vector<2x128xf32>
    %c0_20 = arith.constant 0 : index
    %c0_21 = arith.constant 0 : index
    %20 = vector.load %arg8[%c0_20, %c0_21] : memref<128x384xf32, #tpu.memory_space<vmem>>, vector<128x384xf32>
    %cst_22 = arith.constant dense<0.000000e+00> : vector<2x384xf32>
    %21 = tpu.matmul %19, %20, %cst_22 {dimension_numbers = #tpu.dot_dimension_numbers<[1], [0], [0], [1], [0, 0, 1, 1], [], []>} : vector<2x128xf32>, vector<128x384xf32>, vector<2x384xf32> -> vector<2x384xf32>
    %c0_23 = arith.constant 0 : index
    %c0_24 = arith.constant 0 : index
    %22 = vector.load %arg9[%c0_23, %c0_24] : memref<1x384xf32, #tpu.memory_space<vmem>>, vector<1x384xf32>
    %23 = vector.broadcast %22 : vector<1x384xf32> to vector<2x384xf32>
    %24 = arith.addf %21, %23 : vector<2x384xf32>
    %c0_25 = arith.constant 0 : index
    %c0_26 = arith.constant 0 : index
    %25 = vector.load %arg12[%c0_25, %c0_26] : memref<2x384xf32, #tpu.memory_space<vmem>>, vector<2x384xf32>
    tpu.vector_store %arg12[%c0_25, %c0_26], %24 {strides = array<i32>} : memref<2x384xf32, #tpu.memory_space<vmem>>, vector<2x384xf32>,
    return
  }
  func.func @transform_0(%arg0: i32) -> (i32, i32) {
    %c0_i32 = arith.constant 0 : i32
    %c0_i32_0 = arith.constant 0 : i32
    %c0_i32_1 = arith.constant 0 : i32
    return %c0_i32, %c0_i32_0 : i32, i32
  }
  func.func @transform_1(%arg0: i32) -> (i32, i32) {
    %c0_i32 = arith.constant 0 : i32
    %c0_i32_0 = arith.constant 0 : i32
    %c0_i32_1 = arith.constant 0 : i32
    return %c0_i32, %c0_i32_0 : i32, i32
  }
  func.func @transform_2(%arg0: i32) -> (i32, i32) {
    %c0_i32 = arith.constant 0 : i32
    %c0_i32_0 = arith.constant 0 : i32
    %c0_i32_1 = arith.constant 0 : i32
    return %c0_i32, %c0_i32_0 : i32, i32
  }
  func.func @transform_3(%arg0: i32) -> (i32, i32) {
    %c0_i32 = arith.constant 0 : i32
    %c0_i32_0 = arith.constant 0 : i32
    %c0_i32_1 = arith.constant 0 : i32
    return %c0_i32, %c0_i32_0 : i32, i32
  }
  func.func @transform_4(%arg0: i32) -> (i32, i32) {
    %c0_i32 = arith.constant 0 : i32
    %c0_i32_0 = arith.constant 0 : i32
    %c0_i32_1 = arith.constant 0 : i32
    return %c0_i32, %c0_i32_0 : i32, i32
  }
  func.func @transform_5(%arg0: i32) -> (i32, i32) {
    %c0_i32 = arith.constant 0 : i32
    %c0_i32_0 = arith.constant 0 : i32
    %c0_i32_1 = arith.constant 0 : i32
    return %c0_i32, %c0_i32_0 : i32, i32
  }
  func.func @transform_6(%arg0: i32) -> (i32, i32) {
    %c0_i32 = arith.constant 0 : i32
    %c0_i32_0 = arith.constant 0 : i32
    %c0_i32_1 = arith.constant 0 : i32
    return %c0_i32, %c0_i32_0 : i32, i32
  }
  func.func @transform_7(%arg0: i32) -> (i32, i32) {
    %c0_i32 = arith.constant 0 : i32
    %c0_i32_0 = arith.constant 0 : i32
    %c0_i32_1 = arith.constant 0 : i32
    return %c0_i32, %c0_i32_0 : i32, i32
  }
  func.func @transform_8(%arg0: i32) -> (i32, i32) {
    %c0_i32 = arith.constant 0 : i32
    %c0_i32_0 = arith.constant 0 : i32
    %c0_i32_1 = arith.constant 0 : i32
    return %c0_i32, %c0_i32_0 : i32, i32
  }
  func.func @transform_9(%arg0: i32) -> (i32, i32) {
    %c0_i32 = arith.constant 0 : i32
    %c0_i32_0 = arith.constant 0 : i32
    %c0_i32_1 = arith.constant 0 : i32
    return %c0_i32, %c0_i32_0 : i32, i32
  }
  func.func @transform_10(%arg0: i32) -> (i32, i32) {
    %c0_i32 = arith.constant 0 : i32
    %c0_i32_0 = arith.constant 0 : i32
    %c0_i32_1 = arith.constant 0 : i32
    return %c0_i32, %c0_i32_0 : i32, i32
  }
  func.func @transform_11(%arg0: i32) -> (i32, i32) {
    %c0_i32 = arith.constant 0 : i32
    %c0_i32_0 = arith.constant 0 : i32
    %c0_i32_1 = arith.constant 0 : i32
    return %c0_i32, %c0_i32_0 : i32, i32
  }
}

</mosaic_0001>

<bundles_post_ra>
// kernel: sub.2
= control target key start
LH: loop header
LB: loop body
LE: loop exit
PB: predicated region body
PF: predicated region fallthrough
CT: control target
= control target key end

     0   :  { %s34_s0 = inlined_call_operand.vmem [shape: f32[64,3], index: 0, kind: input, shape index: {}]   ;;  %s35_s1 = inlined_call_operand.vmem [shape: f32[64,3], index: 1, kind: input, shape index: {}]   ;;  %s36_s2 = inlined_call_operand.vmem [shape: f32[64,3], index: 2, kind: output, shape index: {}]  }
   0x1   :  { %v3_v0 = vld [vmem:[%s34_s0] sm:$0x7] }
   0x2   :  { %v4_v1 = vld [vmem:[%s35_s1] sm:$0x7] }
   0x3   :  { %v7_v2 = vsub.f32 %v3_v0, %v4_v1 }
   0x5   :  { %9 = vst [vmem:[%s36_s2] sm:$0xf] %v7_v2 }

// kernel: sub.3
= control target key start
LH: loop header
LB: loop body
LE: loop exit
PB: predicated region body
PF: predicated region fallthrough
CT: control target
= control target key end

     0   :  { %s188_s0 = inlined_call_operand.vmem [shape: f32[64,64], index: 0, kind: input, shape index: {}]   ;;  %s189_s1 = inlined_call_operand.vmem [shape: f32[64,64], index: 1, kind: input, shape index: {}]   ;;  %s190_s2 = inlined_call_operand.vmem [shape: f32[64,64], index: 2, kind: output, shape index: {}]  }
   0x1   :  { %v3_v0 = vld [vmem:[%s188_s0] sm:$0xff]  ;;  %v80_v2 = vld [vmem:[%s188_s0 + $0x8] sm:$0xff]  ;;  %v83_v5 = vld [vmem:[%s188_s0 + $0x10] sm:$0xff] }
   0x2   :  { %v4_v1 = vld [vmem:[%s189_s1] sm:$0xff]  ;;  %v81_v4 = vld [vmem:[%s189_s1 + $0x8] sm:$0xff]  ;;  %v84_v6 = vld [vmem:[%s189_s1 + $0x10] sm:$0xff] }
   0x3   :  { %v7_v3 = vsub.f32 %v3_v0, %v4_v1  ;;  %v16_v7 = vsub.f32 %v80_v2, %v81_v4  ;;  %v26_v8 = vsub.f32 %v83_v5, %v84_v6  ;;  %v86_v9 = vld [vmem:[%s188_s0 + $0x18] sm:$0xff]  ;;  %v89_v11 = vld [vmem:[%s188_s0 + $0x20] sm:$0xff]  ;;  %v92_v14 = vld [vmem:[%s188_s0 + $0x28] sm:$0xff] }
   0x4   :  { %v87_v10 = vld [vmem:[%s189_s1 + $0x18] sm:$0xff]  ;;  %v90_v13 = vld [vmem:[%s189_s1 + $0x20] sm:$0xff]  ;;  %v93_v15 = vld [vmem:[%s189_s1 + $0x28] sm:$0xff] }
   0x5   :  { %9 = vst [vmem:[%s190_s2] sm:$0xff] %v7_v3  ;;  %v36_v12 = vsub.f32 %v86_v9, %v87_v10  ;;  %82 = vst [vmem:[%s190_s2 + $0x8] sm:$0xff] %v16_v7  ;;  %v46_v16 = vsub.f32 %v89_v11, %v90_v13  ;;  %v56_v17 = vsub.f32 %v92_v14, %v93_v15  ;;  %v95_v18 = vld [vmem:[%s188_s0 + $0x30] sm:$0xff]  ;;  %v98_v20 = vld [vmem:[%s188_s0 + $0x38] sm:$0xff] }
   0x6   :  { %85 = vst [vmem:[%s190_s2 + $0x10] sm:$0xff] %v26_v8  ;;  %v96_v19 = vld [vmem:[%s189_s1 + $0x30] sm:$0xff]  ;;  %v99_v22 = vld [vmem:[%s189_s1 + $0x38] sm:$0xff] }
   0x7   :  { %88 = vst [vmem:[%s190_s2 + $0x18] sm:$0xff] %v36_v12  ;;  %v66_v21 = vsub.f32 %v95_v18, %v96_v19  ;;  %91 = vst [vmem:[%s190_s2 + $0x20] sm:$0xff] %v46_v16  ;;  %v76_v23 = vsub.f32 %v98_v20, %v99_v22 }
   0x8   :  { %94 = vst [vmem:[%s190_s2 + $0x28] sm:$0xff] %v56_v17 }
   0x9   :  { %97 = vst [vmem:[%s190_s2 + $0x30] sm:$0xff] %v66_v21  ;;  %100 = vst [vmem:[%s190_s2 + $0x38] sm:$0xff] %v76_v23 }

// kernel: contrastive_ae_forward.5
= control target key start
LH: loop header
LB: loop body
LE: loop exit
PB: predicated region body
PF: predicated region fallthrough
CT: control target
= control target key end

     0   :  { %17 = vsyncpa [#allocation3], 0  ;;  %v863_v3 = vmov 0.0|0.0   ;;  %vm864_vm0 = vmmov 0   ;;  %v865_v6 = vmov 0.0   ;;  %s1214_s0 = inlined_call_operand.vmem [shape: f32[2,64], index: 0, kind: input, shape index: {}]   ;;  %s1215_s1 = inlined_call_operand.vmem [shape: f32[64,32], index: 1, kind: input, shape index: {}]   ;;  %s1216_s2 = inlined_call_operand.vmem [shape: f32[1,32], index: 2, kind: input, shape index: {}]   ;;  %s1217_s3 = inlined_call_operand.vmem [shape: f32[64,16], index: 3, kind: input, shape index: {}]   ;;  %s1218_s4 = inlined_call_operand.vmem [shape: f32[1,16], index: 4, kind: input, shape index: {}]   ;;  %s1219_s5 = inlined_call_operand.vmem [shape: f32[32,128], index: 5, kind: input, shape index: {}]   ;;  %s1220_s6 = inlined_call_operand.vmem [shape: f32[1,128], index: 6, kind: input, shape index: {}]   ;;  %s1221_s7 = inlined_call_operand.vmem [shape: f32[128,384], index: 7, kind: input, shape index: {}]   ;;  %s1222_s8 = inlined_call_operand.vmem [shape: f32[1,384], index: 8, kind: input, shape index: {}]   ;;  %s1223_s9 = inlined_call_operand.hbm [shape: f32[2,32], index: 9, kind: output, shape index: {0}]   ;;  %s1224_s10 = inlined_call_operand.hbm [shape: f32[2,16], index: 10, kind: output, shape index: {1}]   ;;  %s1225_s11 = inlined_call_operand.hbm [shape: f32[2,384], index: 11, kind: output, shape index: {2}]  }
   0x1   :  { %v38_v0 = vld [vmem:[%s1215_s1] sm:$0xff]  ;;  %v39_v1 = vld [vmem:[%s1215_s1 + $0x8] sm:$0xff]  ;;  %v40_v2 = vld [vmem:[%s1215_s1 + $0x10] sm:$0xff]  ;;  %700 = vmatprep.subr.bf16.mxu0 %v863_v3  ;;  %632 = vmatprep.mubr.msk.f32.mxu0 %vm864_vm0, %v865_v6 }
   0x2   :  { %v701_v4 = vpack.c.bf16 %v39_v1, %v38_v0  ;;  %v41_v5 = vld [vmem:[%s1215_s1 + $0x18] sm:$0xff]  ;;  %712 = vmatprep.subr.bf16.mxu1 %v863_v3  ;;  %651 = vmatprep.mubr.msk.f32.mxu1 %vm864_vm0, %v865_v6  ;;  %v42_v8 = vld [vmem:[%s1215_s1 + $0x20] sm:$0xff]  ;;  %v43_v9 = vld [vmem:[%s1215_s1 + $0x28] sm:$0xff] }
   0x3   :  { %v704_v7 = vpack.c.bf16 %v41_v5, %v40_v2 }
   0x4   :  { %702 = vmatpush3.bf16.msra.mxu0 %v701_v4 }
   0x5   :  { %703 = vmatprep.subr.bf16.mxu0 %v863_v3 }
   0x6   :  { %18 = vsyncpa [#allocation5], 0  ;;  %v707_v10 = vpack.c.bf16 %v43_v9, %v42_v8  ;;  %v44_v11 = vld [vmem:[%s1215_s1 + $0x30] sm:$0xff]  ;;  %v45_v12 = vld [vmem:[%s1215_s1 + $0x38] sm:$0xff]  ;;  %vm53_vm1 = vcmask 523264   ;;  %vm227_vm2 = vcmask 261120  }
   0x7   :  { %v710_v13 = vpack.c.bf16 %v45_v12, %v44_v11  ;;  %v216_v14 = vld [vmem:[%s1219_s5] sm:$0xff]  ;;  %v217_v15 = vld [vmem:[%s1219_s5 + $0x8] sm:$0xff]  ;;  %v218_v18 = vld [vmem:[%s1219_s5 + $0x10] sm:$0xff]  ;;  %vm127_vm3 = vcmask 254976   ;;  %vm214_vm4 = vcmask 123904   ;;  %s867_s24 = smov [#allocation2]  }
   0x8   :  { %705 = vmatpush3.bf16.msra.mxu0 %v704_v7  ;;  %v37_v16 = vld [vmem:[%s1214_s0] sm:$0x3]  ;;  %v725_v17 = vpack.c.bf16 %v217_v15, %v216_v14  ;;  %v219_v19 = vld [vmem:[%s1219_s5 + $0x18] sm:$0xff]  ;;  %v130_v22 = vld [vmem:[%s1217_s3 + $0x8] sm:$0xff]  ;;  %s535_s25 = sshll.u32 %s867_s24, 4  ;;  %s536_s25 = int_to_ptr.vmem [resolvable:$true] %s535_s25 }
   0x9   :  { %706 = vmatprep.subr.bf16.mxu0 %v863_v3  ;;  %v728_v20 = vpack.c.bf16 %v219_v19, %v218_v18  ;;  %v129_v21 = vld [vmem:[%s1217_s3] sm:$0xff]  ;;  %v131_v23 = vld [vmem:[%s1217_s3 + $0x10] sm:$0xff]  ;;  %v132_v25 = vld [vmem:[%s1217_s3 + $0x18] sm:$0xff] }
   0xa   :  { %v713_v24 = vpack.c.bf16 %v130_v22, %v129_v21  ;;  %v716_v26 = vpack.c.bf16 %v132_v25, %v131_v23  ;;  %v133_v27 = vld [vmem:[%s1217_s3 + $0x20] sm:$0xff]  ;;  %v134_v28 = vld [vmem:[%s1217_s3 + $0x28] sm:$0xff]  ;;  %v135_v30 = vld [vmem:[%s1217_s3 + $0x30] sm:$0xff] }
   0xb   :  { %v719_v29 = vpack.c.bf16 %v134_v28, %v133_v27  ;;  %v136_v31 = vld [vmem:[%s1217_s3 + $0x38] sm:$0xff]  ;;  %v303_v32 = vld [vmem:[%s1221_s7 + $0x8] sm:$0xff]  ;;  %v306_v33 = vld [vmem:[%s1221_s7 + $0x20] sm:$0xff] }
   0xc   :  { %708 = vmatpush3.bf16.msra.mxu0 %v707_v10  ;;  %714 = vmatpush3.bf16.msra.mxu1 %v713_v24  ;;  %v722_v34 = vpack.c.bf16 %v136_v31, %v135_v30  ;;  %v730_v35 = vpack.c.bf16 %v306_v33, %v303_v32  ;;  %v302_v36 = vld [vmem:[%s1221_s7] sm:$0xff]  ;;  %v305_v37 = vld [vmem:[%s1221_s7 + $0x18] sm:$0xff]  ;;  %v312_v39 = vld [vmem:[%s1221_s7 + $0x50] sm:$0xff] }
   0xd   :  { %709 = vmatprep.subr.bf16.mxu0 %v863_v3  ;;  %715 = vmatprep.subr.bf16.mxu1 %v863_v3  ;;  %v309_v38 = vld [vmem:[%s1221_s7 + $0x38] sm:$0xff]  ;;  %v732_v40 = vpack.c.bf16 %v305_v37, %v302_v36  ;;  %v308_v42 = vld [vmem:[%s1221_s7 + $0x30] sm:$0xff]  ;;  %v311_v43 = vld [vmem:[%s1221_s7 + $0x48] sm:$0xff] }
   0xe   :  { %v734_v41 = vpack.c.bf16 %v312_v39, %v309_v38  ;;  %v315_v44 = vld [vmem:[%s1221_s7 + $0x68] sm:$0xff]  ;;  %v318_v45 = vld [vmem:[%s1221_s7 + $0x80] sm:$0xff]  ;;  %v736_v46 = vpack.c.bf16 %v311_v43, %v308_v42  ;;  %v317_v49 = vld [vmem:[%s1221_s7 + $0x78] sm:$0xff] }
   0xf   :  { %v738_v47 = vpack.c.bf16 %v318_v45, %v315_v44  ;;  %v314_v48 = vld [vmem:[%s1221_s7 + $0x60] sm:$0xff]  ;;  %v321_v50 = vld [vmem:[%s1221_s7 + $0x98] sm:$0xff]  ;;  %v324_v51 = vld [vmem:[%s1221_s7 + $0xb0] sm:$0xff] }
  0x10   :  { %711 = vmatpush3.bf16.msra.mxu0 %v710_v13  ;;  %717 = vmatpush3.bf16.msra.mxu1 %v716_v26  ;;  %v740_v52 = vpack.c.bf16 %v317_v49, %v314_v48  ;;  %v742_v53 = vpack.c.bf16 %v324_v51, %v321_v50  ;;  %v320_v54 = vld [vmem:[%s1221_s7 + $0x90] sm:$0xff]  ;;  %v323_v55 = vld [vmem:[%s1221_s7 + $0xa8] sm:$0xff]  ;;  %v330_v57 = vld [vmem:[%s1221_s7 + $0xe0] sm:$0xff] }
  0x11   :  { %724 = vmatprep.subr.bf16.mxu0 %v863_v3  ;;  %718 = vmatprep.subr.bf16.mxu1 %v863_v3  ;;  %v327_v56 = vld [vmem:[%s1221_s7 + $0xc8] sm:$0xff]  ;;  %v744_v58 = vpack.c.bf16 %v323_v55, %v320_v54  ;;  %v326_v60 = vld [vmem:[%s1221_s7 + $0xc0] sm:$0xff]  ;;  %v329_v61 = vld [vmem:[%s1221_s7 + $0xd8] sm:$0xff] }
  0x12   :  { %v746_v59 = vpack.c.bf16 %v330_v57, %v327_v56  ;;  %v333_v62 = vld [vmem:[%s1221_s7 + $0xf8] sm:$0xff]  ;;  %v336_v63 = vld [vmem:[%s1221_s7 + $0x110] sm:$0xff]  ;;  %v748_v0 = vpack.c.bf16 %v329_v61, %v326_v60  ;;  %v335_v4 = vld [vmem:[%s1221_s7 + $0x108] sm:$0xff] }
  0x13   :  { %633 = vmatmul.mubr.msk.f32.vlgmr.msra.gmra.mrb[0].mxu0 %vm53_vm1, %v37_v16  ;;  %v750_v1 = vpack.c.bf16 %v336_v63, %v333_v62  ;;  %v332_v2 = vld [vmem:[%s1221_s7 + $0xf0] sm:$0xff]  ;;  %v339_v5 = vld [vmem:[%s1221_s7 + $0x128] sm:$0xff]  ;;  %v342_v7 = vld [vmem:[%s1221_s7 + $0x140] sm:$0xff] }
  0x14   :  { %726 = vmatpush3.bf16.msra.mxu0 %v725_v17  ;;  %662 = vmatprep.mubr.msk.f32.mxu0 %vm864_vm0, %v865_v6  ;;  %v752_v8 = vpack.c.bf16 %v335_v4, %v332_v2  ;;  %v754_v9 = vpack.c.bf16 %v342_v7, %v339_v5  ;;  %v338_v10 = vld [vmem:[%s1221_s7 + $0x120] sm:$0xff]  ;;  %v341_v11 = vld [vmem:[%s1221_s7 + $0x138] sm:$0xff]  ;;  %v304_v13 = vld [vmem:[%s1221_s7 + $0x10] sm:$0xff] }
  0x15   :  { %727 = vmatprep.subr.bf16.mxu0 %v863_v3  ;;  %720 = vmatpush3.bf16.msra.mxu1 %v719_v29  ;;  %v756_v12 = vpack.c.bf16 %v341_v11, %v338_v10  ;;  %v307_v14 = vld [vmem:[%s1221_s7 + $0x28] sm:$0xff]  ;;  %v570_v15 = vld [vmem:[%s1216_s2] ss:$0 sm:$0xff]  ;;  %v313_v21 = vld [vmem:[%s1221_s7 + $0x58] sm:$0xff] }
  0x16   :  { %721 = vmatprep.subr.bf16.mxu1 %v863_v3  ;;  %v763_v17 = vpack.c.bf16 %v307_v14, %v304_v13  ;;  %v316_v23 = vld [vmem:[%s1221_s7 + $0x70] sm:$0xff]  ;;  %v319_v24 = vld [vmem:[%s1221_s7 + $0x88] sm:$0xff]  ;;  %v322_v26 = vld [vmem:[%s1221_s7 + $0xa0] sm:$0xff] }
  0x17   :  { %v769_v25 = vpack.c.bf16 %v319_v24, %v316_v23  ;;  %v328_v28 = vld [vmem:[%s1221_s7 + $0xd0] sm:$0xff]  ;;  %v331_v29 = vld [vmem:[%s1221_s7 + $0xe8] sm:$0xff]  ;;  %v334_v31 = vld [vmem:[%s1221_s7 + $0x100] sm:$0xff] }
  0x18   :  { %729 = vmatpush3.bf16.msra.mxu0 %v728_v20  ;;  %v310_v20 = vld [vmem:[%s1221_s7 + $0x40] sm:$0xff]  ;;  %v775_v30 = vpack.c.bf16 %v331_v29, %v328_v28  ;;  %v337_v32 = vld [vmem:[%s1221_s7 + $0x118] sm:$0xff]  ;;  %v348_v38 = vld [vmem:[%s1221_s7 + $0x170] sm:$0xff] }
  0x19   :  { %762 = vmatprep.subr.bf16.mxu0 %v863_v3  ;;  %723 = vmatpush3.bf16.msra.mxu1 %v722_v34  ;;  %v766_v22 = vpack.c.bf16 %v313_v21, %v310_v20  ;;  %v778_v33 = vpack.c.bf16 %v337_v32, %v334_v31  ;;  %v340_v34 = vld [vmem:[%s1221_s7 + $0x130] sm:$0xff]  ;;  %v345_v37 = vld [vmem:[%s1221_s7 + $0x158] sm:$0xff] }
  0x1a   :  { %731 = vmatprep.subr.bf16.mxu1 %v730_v35  ;;  %v343_v35 = vld [vmem:[%s1221_s7 + $0x148] sm:$0xff]  ;;  %v758_v39 = vpack.c.bf16 %v348_v38, %v345_v37  ;;  %v349_v43 = vld [vmem:[%s1221_s7 + $0x178] sm:$0xff] }
  0x1b   :  { %v781_v36 = vpack.c.bf16 %v343_v35, %v340_v34 }
  0x1c   :  { %652 = vmatmul.mubr.msk.f32.vlgmr.msra.gmra.mrb[0].mxu1 %vm53_vm1, %v37_v16 }
  0x1d   :  { %733 = vmatpush1.bf16.msra.mxu1 %v732_v40  ;;  %431 = vmatprep.mubr.f32.mxu1 %v865_v6  ;;  %v344_v40 = vld [vmem:[%s1221_s7 + $0x150] sm:$0xff] }
  0x1e   :  { %735 = vmatprep.subr.bf16.mxu1 %v734_v41  ;;  %v347_v41 = vld [vmem:[%s1221_s7 + $0x168] sm:$0xff] }
  0x1f   :  { %v760_v42 = vpack.c.bf16 %v347_v41, %v344_v40 }
  0x21   :  { %737 = vmatpush1.bf16.msra.mxu1 %v736_v46 }
  0x22   :  { %739 = vmatprep.subr.bf16.mxu1 %v738_v47  ;;  %v574_v47 = vld [vmem:[%s1220_s6] ss:$0 sm:$0xff] }
  0x25   :  { %741 = vmatpush1.bf16.msra.mxu1 %v740_v52  ;;  %v572_v52 = vld [vmem:[%s1218_s4] ss:$0 sm:$0xff] }
  0x26   :  { %743 = vmatprep.subr.bf16.mxu1 %v742_v53 }
  0x29   :  { %745 = vmatpush1.bf16.msra.mxu1 %v744_v58 }
  0x2a   :  { %747 = vmatprep.subr.bf16.mxu1 %v746_v59 }
  0x2d   :  { %749 = vmatpush1.bf16.msra.mxu1 %v748_v0 }
  0x2e   :  { %751 = vmatprep.subr.bf16.mxu1 %v750_v1 }
  0x31   :  { %753 = vmatpush1.bf16.msra.mxu1 %v752_v8 }
  0x32   :  { %755 = vmatprep.subr.bf16.mxu1 %v754_v9 }
  0x35   :  { %757 = vmatpush1.bf16.msra.mxu1 %v756_v12 }
  0x36   :  { %759 = vmatprep.subr.bf16.mxu1 %v758_v39 }
  0x39   :  { %761 = vmatpush1.bf16.msra.mxu1 %v760_v42 }
  0xe6   :  { %v123_v16 = vpop.f32.mrb[0].mxu0 }
  0xe7   :  { %v124_v18 = vadd.f32 %v570_v15, %v123_v16  ;;  %v634_v19 = vpop.f32.mrb[1].mxu0 }
  0xe9   :  { %663 = vmatmul.mubr.msk.f32.vlgmr.msra.gmra.mrb[2].mxu0 %vm227_vm2, %v124_v18  ;;  %128 = vst.msk [vmem:[#allocation2] sm:$0x3] %vm127_vm3, %v124_v18 }
  0xea   :  { %764 = vmatpush3.bf16.msra.mxu0 %v763_v17  ;;  %697 = vmatprep.mubr.msk.f32.mxu0 %vm864_vm0, %v865_v6  ;;  %v325_v6 = vld [vmem:[%s1221_s7 + $0xb8] sm:$0xff] }
  0xeb   :  { %765 = vmatprep.subr.bf16.mxu0 %v863_v3  ;;  %v772_v27 = vpack.c.bf16 %v325_v6, %v322_v26 }
  0xee   :  { %767 = vmatpush3.bf16.msra.mxu0 %v766_v22 }
  0xef   :  { %768 = vmatprep.subr.bf16.mxu0 %v863_v3  ;;  %v210_v45 = vpop.f32.mrb[0].mxu1 }
  0xf0   :  { %v653_v46 = vpop.f32.mrb[1].mxu1  ;;  %v211_v53 = vadd.f32 %v572_v52, %v210_v45 }
  0xf2   :  { %770 = vmatpush3.bf16.msra.mxu0 %v769_v25  ;;  %215 = vst.msk [vmem:[#allocation4] sm:$0x3] %vm214_vm4, %v211_v53 }
  0xf3   :  { %771 = vmatprep.subr.bf16.mxu0 %v863_v3 }
  0xf6   :  { %773 = vmatpush3.bf16.msra.mxu0 %v772_v27 }
  0xf7   :  { %774 = vmatprep.subr.bf16.mxu0 %v863_v3 }
  0xfa   :  { %776 = vmatpush3.bf16.msra.mxu0 %v775_v30 }
  0xfb   :  { %777 = vmatprep.subr.bf16.mxu0 %v863_v3 }
  0xfe   :  { %779 = vmatpush3.bf16.msra.mxu0 %v778_v33 }
  0xff   :  { %780 = vmatprep.subr.bf16.mxu0 %v863_v3 }
 0x102   :  { %782 = vmatpush3.bf16.msra.mxu0 %v781_v36 }
 0x103   :  { %783 = vmatprep.subr.bf16.mxu0 %v863_v3  ;;  %v346_v3 = vld [vmem:[%s1221_s7 + $0x160] sm:$0xff]  ;;  %s866_s7 = smov [#allocation4]  }
 0x104   :  { %v784_v44 = vpack.c.bf16 %v349_v43, %v346_v3  ;;  %s545_s3 = sshll.u32 %s866_s7, 4  ;;  %s546_s3 = int_to_ptr.vmem [resolvable:$true] %s545_s3 }
 0x105   :  { %s793_s6 = scalar_lea.vmem %s546_s3, 32  ;;  %p798_p1 = scmp.lt.s32.totalorder %s546_s3, %s546_s3 }
 0x106   :  { %785 = vmatpush3.bf16.msra.mxu0 %v784_v44  ;;  %p794_p0 = scmp.ne.s32.totalorder %s546_s3, %s793_s6  ;;  %p799_p2 = scmp.lt.s32.totalorder %s793_s6, %s793_s6 }
 0x108   :  { %p800_p3 = por %p799_p2, %p798_p1 }
 0x10a   :  { %p801_p4 = pnand %p800_p3, %p794_p0 }
 0x1bc   :  { %v297_v48 = vpop.f32.mrb[2].mxu0 }
 0x1bd   :  { %v298_v49 = vadd.f32 %v574_v47, %v297_v48  ;;  %v664_v50 = vpop.f32.mrb[3].mxu0 }
 0x1bf   :  { %v301_v51 = vmax.f32 %v298_v49, 0.0 }
 0x1c1   :  { %432 = vmatmul.mubr.f32.vlgmr.msra.gmra.mrb[2].mxu1 %v301_v51  ;;  %698 = vmatmul.mubr.f32.vlgmr.msra.gmra.mrb[4].mxu0 %v301_v51 }
 0x1c2   :  { %804 = shalt.err (!%p801_p4)
}
 0x1c3   :  { %s805_s4 = scalar_lea.hbm %s1224_s10, 32 }
 0x1c4   :  { %p806_p5 = scmp.ne.s32.totalorder %s1224_s10, %s805_s4  ;;  %p809_p6 = scmp.lt.u32.totalorder %s805_s4, %s1224_s10 }
 0x1c6   :  { %p811_p7 = pnand %p809_p6, %p806_p5 }
 0x1c8   :  { %814 = shalt.err (!%p811_p7)
}
 0x1c9   :  { %548 = dma.vmem_to_hbm [thread:$0]  %s546_s3, 32, %s1224_s10, [#allocation5]  }
 0x1ca   :  { %s815_s14 = scalar_lea.vmem %s536_s25, 32  ;;  %p820_p9 = scmp.lt.s32.totalorder %s536_s25, %s536_s25 }
 0x1cb   :  { %p816_p8 = scmp.ne.s32.totalorder %s536_s25, %s815_s14  ;;  %p821_p10 = scmp.lt.s32.totalorder %s815_s14, %s815_s14 }
 0x1cd   :  { %p822_p11 = por %p821_p10, %p820_p9 }
 0x1cf   :  { %p823_p12 = pnand %p822_p11, %p816_p8 }
 0x1d1   :  { %826 = shalt.err (!%p823_p12)
}
 0x1d2   :  { %s827_s16 = scalar_lea.hbm %s1223_s9, 32 }
 0x1d3   :  { %p828_p13 = scmp.ne.s32.totalorder %s1223_s9, %s827_s16  ;;  %p831_p0 = scmp.lt.u32.totalorder %s827_s16, %s1223_s9 }
 0x1d5   :  { %p833_p1 = pnand %p831_p0, %p828_p13 }
 0x1d7   :  { %836 = shalt.err (!%p833_p1)
}
 0x1d8   :  { %538 = dma.vmem_to_hbm [thread:$0]  %s536_s25, 32, %s1223_s9, [#allocation3]   ;;  %v352_v54 = vlaneseq  ;;  %v350_v57 = vld [vmem:[%s1222_s8] sm:$0x7]  ;;  %v868_v59 = vmov 1983009808  }
 0x1d9   :  { %v513_v60 = vunpack.c.l.s4 %v868_v59  ;;  %s869_s9 = smov [#allocation6]  }
 0x1da   :  { %v353_v55 = vshrl.u32 %v352_v54, 7  ;;  %s555_s0 = sshll.u32 %s869_s9, 4  ;;  %s556_s0 = int_to_ptr.vmem [resolvable:$true] %s555_s0 }
 0x1db   :  { %v514_v0 = vunpack.c.0.s8 %v513_v60  ;;  %s837_s8 = scalar_lea.vmem %s556_s0, 96  ;;  %p842_p3 = scmp.lt.s32.totalorder %s556_s0, %s556_s0 }
 0x1dc   :  { %v354_v56 = vsub.s32 0, %v353_v55  ;;  %v362_v58 = vsub.s32 2, %v353_v55  ;;  %v358_v61 = vsub.s32 1, %v353_v55  ;;  %p838_p2 = scmp.ne.s32.totalorder %s556_s0, %s837_s8  ;;  %p843_p4 = scmp.lt.s32.totalorder %s837_s8, %s837_s8 }
 0x1dd   :  { %v517_v10 = vsub.s32 %v514_v0, %v353_v55 }
 0x1de   :  { %v355_v62 = vrot.slane %v350_v57, %v354_v56  ;;  %v363_v63 = vrot.slane %v350_v57, %v362_v58  ;;  %v359_v1 = vrot.slane %v350_v57, %v358_v61  ;;  %p844_p5 = por %p843_p4, %p842_p3 }
 0x1e0   :  { %p845_p6 = pnand %p844_p5, %p838_p2 }
 0x294   :  { %v433_v2 = vpop.f32.mrb[2].mxu1  ;;  %v504_v4 = vpop.f32.mrb[4].mxu0 }
 0x295   :  { %v434_v5 = vadd.f32 %v433_v2, %v355_v62  ;;  %v435_v7 = vpop.f32.mrb[3].mxu1  ;;  %v699_v8 = vpop.f32.mrb[5].mxu0  ;;  %v505_v9 = vadd.f32 %v504_v4, %v363_v63 }
 0x296   :  { %v436_v11 = vadd.f32 %v435_v7, %v359_v1 }
 0x297   :  { %v525_v13 = vrot.slane %v505_v9, %v517_v10 }
 0x298   :  { %v511_v12 = vcombine.low %v434_v5, %v436_v11 }
 0x29a   :  { %v518_v14 = vrot.slane %v511_v12, %v517_v10 }
 0x29c   :  { %v526_v15 = vcombine.low %v518_v14, %v525_v13 }
 0x29e   :  { %528 = vst [vmem:[#allocation6] sm:$0x3f] %v526_v15 }
 0x29f   :  { %848 = shalt.err (!%p845_p6)
}
 0x2a0   :  { %s849_s3 = scalar_lea.hbm %s1225_s11, 96 }
 0x2a1   :  { %p850_p7 = scmp.ne.s32.totalorder %s1225_s11, %s849_s3  ;;  %p853_p8 = scmp.lt.u32.totalorder %s849_s3, %s1225_s11 }
 0x2a3   :  { %p855_p9 = pnand %p853_p8, %p850_p7 }
 0x2a5   :  { %858 = shalt.err (!%p855_p9)
}
 0x2a6   :  { %558 = dma.vmem_to_hbm [thread:$0]  %s556_s0, 96, %s1225_s11, [#allocation5]  }
 0x2a7   :  { %859 = dma.done.wait [#allocation3], 32  }
 0x2a8   :  { %860 = vsyncadd [#allocation3], 4294967264 }
 0x2a9   :  { %861 = dma.done.wait [#allocation5], 128  }
 0x2aa   :  { %862 = vsyncadd [#allocation5], 4294967168 }
 0x2ab   :  { %568 = vsyncpa [#allocation3], 1 }
 0x2ac   :  { %569 = vsyncpa [#allocation5], 1 }

// kernel: contrastive_ae_forward.3
= control target key start
LH: loop header
LB: loop body
LE: loop exit
PB: predicated region body
PF: predicated region fallthrough
CT: control target
= control target key end

     0   :  { %s2527_s15 = smov 0   ;;  %s2529_s16 = smov 0   ;;  %s3555_s0 = inlined_call_operand.vmem [shape: f32[2,3,128], index: 0, kind: input, shape index: {}]   ;;  %s3556_s1 = inlined_call_operand.vmem [shape: f32[64,3], index: 1, kind: input, shape index: {}]   ;;  %s3557_s2 = inlined_call_operand.vmem [shape: f32[64,3], index: 2, kind: input, shape index: {}]   ;;  %s3558_s3 = inlined_call_operand.vmem [shape: f32[64,1], index: 3, kind: input, shape index: {}]   ;;  %s3559_s4 = inlined_call_operand.vmem [shape: f32[2,64,128], index: 4, kind: output, shape index: {}]  }
   0x1   :  { %s2531_s17 = smov 0  }
   0x2 LB: > { %s26_s18 = sadd.s32 1, %s2392_s16  ;;  %p1772_p0 = scmp.ge.s32.totalorder %s2396_s17, 1  ;;  %s2396_s17 = sphi %s2531_s17, %s14_s17   ;;  %s2392_s16 = sphi %s2529_s16, %s3719_s16   ;;  %s2388_s15 = sphi %s2527_s15, %s3718_s15  }
   0x3   : > { %p28_p1 = scmp.ge.s32.totalorder %s26_s18, 2  ;;  %p175_p2 = scmp.lt.s32.totalorder %s2396_s17, 3 }
   0x5   : > { %s3721_s18 = smov (%p28_p1, %s26_s18), 0  ;;  %p176_p3 = pnand %p1772_p0, %p175_p2 }
   0x7   : > { %179 = sbr.rel (%p176_p3) target bundleno = 944 (0x3b0), region = 36 }
   0xe   : > { %p203_p4 = scmp.lt.s32.totalorder %s2388_s15, 1  ;;  %vm322_vm0 = vcmask 1042432   ;;  %v2498_v2 = vmov 1.0   ;;  %v233_v3 = vld [vmem:[%s3558_s3] sm:$0xff]  ;;  %v2499_v4 = vmov 0   ;;  %v235_v5 = vld [vmem:[%s3558_s3 + $0x10] sm:$0xff] }
   0xf   : > { %1973 = vmatprep.subr.msk.mxu1 %vm322_vm0, %v2498_v2  ;;  %2272 = vset.pattern.permute.xlu1 %v2499_v4  ;;  %v236_v6 = vld [vmem:[%s3558_s3 + $0x18] sm:$0xff]  ;;  %vm273_vm1 = vcmask 23552   ;;  %v237_v8 = vld [vmem:[%s3558_s3 + $0x20] sm:$0xff]  ;;  %v238_v10 = vld [vmem:[%s3558_s3 + $0x28] sm:$0xff]  ;;  %s2842_s5 = smov 0  }
  0x10   : > { %s3723_s15 = smov (!%p203_p4, %s2388_s15), 1  ;;  %1974 = vmatpush3.msk.msra.mxu1 %vm322_vm0, %v2498_v2  ;;  %947 = vperm.xlu1 %2272, %v233_v3   ;;  %v239_v12 = vld [vmem:[%s3558_s3 + $0x30] sm:$0xff]  ;;  %v225_v25 = vld [vmem:[%s3557_s2] sm:$0xff]  ;;  %v226_v27 = vld [vmem:[%s3557_s2 + $0x8] sm:$0xff] }
  0x11   : > { %s1773_s19 = sshll.u32 %s3723_s15, 2  ;;  %s1894_s20 = sshll.u32 %s3723_s15, 6  ;;  %v227_v28 = vld [vmem:[%s3557_s2 + $0x10] sm:$0xff]  ;;  %v228_v30 = vld [vmem:[%s3557_s2 + $0x18] sm:$0xff]  ;;  %v229_v31 = vld [vmem:[%s3557_s2 + $0x20] sm:$0xff] }
  0x12   : > { %s206_s23 = scalar_lea.vmem %s3555_s0, %s1773_s19  ;;  %s2551_s26 = scalar_lea.vmem %s3559_s4, %s1894_s20  ;;  %v230_v33 = vld [vmem:[%s3557_s2 + $0x28] sm:$0xff]  ;;  %v231_v34 = vld [vmem:[%s3557_s2 + $0x30] sm:$0xff]  ;;  %v232_v36 = vld [vmem:[%s3557_s2 + $0x38] sm:$0xff] }
  0x13   : > { %v2553_v0 = vld [vmem:[%s206_s23] sm:$0x7]  ;;  %v218_v51 = vld [vmem:[%s3556_s1 + $0x8] sm:$0xff]  ;;  %v219_v52 = vld [vmem:[%s3556_s1 + $0x10] sm:$0xff] }
  0x14   : > { %v471_v1 = vmul.f32 %v2553_v0, %v2553_v0  ;;  %1947 = vmatprep.subr.msk.mxu0 %vm322_vm0, %v2553_v0  ;;  %2013 = vmatprep.subr.msk.mxu1 %vm322_vm0, %v2553_v0  ;;  %v217_v49 = vld [vmem:[%s3556_s1] sm:$0xff]  ;;  %v220_v53 = vld [vmem:[%s3556_s1 + $0x18] sm:$0xff]  ;;  %v222_v55 = vld [vmem:[%s3556_s1 + $0x28] sm:$0xff] }
  0x15   : > { %1948 = vmatpush3.msk.msra.mxu0 %vm322_vm0, %v2553_v0  ;;  %957 = vperm.xlu1 %2272, %v235_v5   ;;  %v221_v54 = vld [vmem:[%s3556_s1 + $0x20] sm:$0xff]  ;;  %v223_v56 = vld [vmem:[%s3556_s1 + $0x30] sm:$0xff]  ;;  %v234_v57 = vld [vmem:[%s3558_s3 + $0x8] sm:$0xff] }
  0x16   : > { %472 = vxpose.xlu0.b32.start.end [1/1] (short) %v471_v1, 128  ;;  %1999 = vmatprep.subr.msk.mxu0 %vm322_vm0, %v2553_v0  ;;  %v224_v58 = vld [vmem:[%s3556_s1 + $0x38] sm:$0xff] }
  0x19   : > { %962 = vperm.xlu1 %2272, %v236_v6  }
  0x1d   : > { %967 = vperm.xlu1 %2272, %v237_v8  }
  0x21   : > { %972 = vperm.xlu1 %2272, %v238_v10  }
  0x25   : > { %977 = vperm.xlu1 %2272, %v239_v12  }
  0x53   : > { %241 = vxpose.xlu0.b32.start.end [1/1] (short) %v2553_v0, 128 }
  0x7c   : > { %2273 = vset.pattern.permute.xlu0 %v2499_v4 }
  0x8f   : > { %v948_v5 = vpop.permute.xlu1 %947 }
  0x94   : > { %v958_v8 = vpop.permute.xlu1 %957 }
  0x96   : > { %v488_v7 = vpop.trf.xlu0 }
  0x97   : > { %1975 = vmatprep.mubr.msk.f32.mxu1 %vm273_vm1, %v488_v7 }
  0x9a   : > { %v489_v9 = vpop.trf.xlu0 }
  0x9b   : > { %1976 = vmatmul.mubr.msk.f32.vlgmr.msra.gmra.mrb[0].mxu1 %vm273_vm1, %v489_v9 }
  0x9c   : > { %2014 = vmatpush3.msk.msra.mxu1 %vm322_vm0, %v2553_v0 }
  0x9e   : > { %v490_v11 = vpop.trf.xlu0 }
  0x9f   : > { %1978 = vmatprep.mubr.msk.f32.mxu1 %vm273_vm1, %v490_v11  ;;  %v963_v11 = vpop.permute.xlu1 %962 }
  0xa2   : > { %v491_v13 = vpop.trf.xlu0 }
  0xa3   : > { %1979 = vmatmul.mubr.msk.f32.gmra.mrb[2].mxu1 %vm273_vm1, %v491_v13 }
  0xa6   : > { %v492_v14 = vpop.trf.xlu0 }
  0xa7   : > { %1981 = vmatprep.mubr.msk.f32.mxu1 %vm273_vm1, %v492_v14  ;;  %v968_v14 = vpop.permute.xlu1 %967 }
  0xaa   : > { %v493_v15 = vpop.trf.xlu0 }
  0xab   : > { %1982 = vmatmul.mubr.msk.f32.gmra.mrb[4].mxu1 %vm273_vm1, %v493_v15 }
  0xae   : > { %v494_v16 = vpop.trf.xlu0 }
  0xaf   : > { %1984 = vmatprep.mubr.msk.f32.mxu1 %vm273_vm1, %v494_v16  ;;  %v1114_v16 = vlaneseq }
  0xb2   : > { %v495_v17 = vpop.trf.xlu0 }
  0xb3   : > { %1985 = vmatmul.mubr.msk.f32.gmra.mrb[6].mxu1 %vm273_vm1, %v495_v17 }
  0xb6   : > { %v496_v18 = vpop.trf.xlu0 }
  0xb7   : > { %1987 = vmatprep.mubr.msk.f32.mxu1 %vm273_vm1, %v496_v18 }
  0xb8   : > { %952 = vperm.xlu0 %2273, %v234_v57  }
  0xba   : > { %v497_v19 = vpop.trf.xlu0 }
  0xbb   : > { %1988 = vmatmul.mubr.msk.f32.gmra.mrb[8].mxu1 %vm273_vm1, %v497_v19 }
  0xbe   : > { %v498_v20 = vpop.trf.xlu0 }
  0xbf   : > { %1990 = vmatprep.mubr.msk.f32.mxu1 %vm273_vm1, %v498_v20  ;;  %v1115_v20 = vshrl.u32 %v1114_v16, 7 }
  0xc2   : > { %v499_v21 = vpop.trf.xlu0 }
  0xc3   : > { %1991 = vmatmul.mubr.msk.f32.gmra.mrb[10].mxu1 %vm273_vm1, %v499_v21  ;;  %v240_v21 = vld [vmem:[%s3558_s3 + $0x38] sm:$0xff] }
  0xc6   : > { %v500_v22 = vpop.trf.xlu0 }
  0xc7   : > { %1993 = vmatprep.mubr.msk.f32.mxu1 %vm273_vm1, %v500_v22 }
  0xca   : > { %v501_v23 = vpop.trf.xlu0 }
  0xcb   : > { %1994 = vmatmul.mubr.msk.f32.gmra.mrb[12].mxu1 %vm273_vm1, %v501_v23  ;;  %v973_v23 = vpop.permute.xlu1 %972 }
  0xce   : > { %v502_v24 = vpop.trf.xlu0 }
  0xcf   : > { %1996 = vmatprep.mubr.msk.f32.mxu1 %vm273_vm1, %v502_v24  ;;  %v1116_v24 = vadd.s32 8, %v1115_v20 }
  0xd2   : > { %v503_v26 = vpop.trf.xlu0 }
  0xd3   : > { %1997 = vmatmul.mubr.msk.f32.gmra.mrb[14].mxu1 %vm273_vm1, %v503_v26 }
  0xd4   : > { %2015 = vmatprep.mubr.msk.f32.mxu1 %vm273_vm1, %v225_v25  ;;  %v1117_v25 = vadd.s32 16, %v1115_v20 }
  0xd6   : > { %v257_v29 = vpop.trf.xlu0 }
  0xd7   : > { %2016 = vmatmul.mubr.msk.f32.vlgmr.msra.gmra.mrb[16].mxu1 %vm273_vm1, %v226_v27  ;;  %1949 = vmatprep.mubr.msk.f32.mxu0 %vm273_vm1, %v257_v29  ;;  %v1119_v29 = vadd.s32 32, %v1115_v20 }
  0xd8   : > { %2018 = vmatprep.mubr.msk.f32.mxu1 %vm273_vm1, %v227_v28  ;;  %v1118_v28 = vadd.s32 24, %v1115_v20 }
  0xda   : > { %v258_v32 = vpop.trf.xlu0 }
  0xdb   : > { %2019 = vmatmul.mubr.msk.f32.gmra.mrb[18].mxu1 %vm273_vm1, %v228_v30  ;;  %1950 = vmatmul.mubr.msk.f32.vlgmr.msra.gmra.mrb[0].mxu0 %vm273_vm1, %v258_v32  ;;  %v1120_v30 = vadd.s32 40, %v1115_v20 }
  0xdc   : > { %2021 = vmatprep.mubr.msk.f32.mxu1 %vm273_vm1, %v229_v31  ;;  %2000 = vmatpush3.msk.msra.mxu0 %vm322_vm0, %v2553_v0  ;;  %v1121_v31 = vadd.s32 48, %v1115_v20 }
  0xde   : > { %v259_v35 = vpop.trf.xlu0 }
  0xdf   : > { %2022 = vmatmul.mubr.msk.f32.gmra.mrb[20].mxu1 %vm273_vm1, %v230_v33  ;;  %1952 = vmatprep.mubr.msk.f32.mxu0 %vm273_vm1, %v259_v35  ;;  %v1122_v35 = vadd.s32 56, %v1115_v20 }
  0xe0   : > { %2024 = vmatprep.mubr.msk.f32.mxu1 %vm273_vm1, %v231_v34 }
  0xe2   : > { %v260_v37 = vpop.trf.xlu0 }
  0xe3   : > { %2025 = vmatmul.mubr.msk.f32.gmra.mrb[22].mxu1 %vm273_vm1, %v232_v36  ;;  %1953 = vmatmul.mubr.msk.f32.gmra.mrb[2].mxu0 %vm273_vm1, %v260_v37  ;;  %v1123_v36 = vadd.s32 64, %v1115_v20  ;;  %v1124_v37 = vadd.s32 72, %v1115_v20 }
  0xe5   : > { %v2720_v57 = vcvt.s32.f32 %v1123_v36 }
  0xe6   : > { %v261_v38 = vpop.trf.xlu0 }
  0xe7   : > { %1955 = vmatprep.mubr.msk.f32.mxu0 %vm273_vm1, %v261_v38 }
  0xea   : > { %v262_v39 = vpop.trf.xlu0 }
  0xeb   : > { %1956 = vmatmul.mubr.msk.f32.gmra.mrb[4].mxu0 %vm273_vm1, %v262_v39  ;;  %v1125_v39 = vadd.s32 80, %v1115_v20 }
  0xee   : > { %v263_v40 = vpop.trf.xlu0 }
  0xef   : > { %1958 = vmatprep.mubr.msk.f32.mxu0 %vm273_vm1, %v263_v40  ;;  %v1126_v40 = vadd.s32 88, %v1115_v20 }
  0xf2   : > { %v264_v41 = vpop.trf.xlu0 }
  0xf3   : > { %1959 = vmatmul.mubr.msk.f32.gmra.mrb[6].mxu0 %vm273_vm1, %v264_v41  ;;  %v1127_v41 = vadd.s32 96, %v1115_v20 }
  0xf6   : > { %v265_v42 = vpop.trf.xlu0 }
  0xf7   : > { %1961 = vmatprep.mubr.msk.f32.mxu0 %vm273_vm1, %v265_v42  ;;  %v1128_v42 = vadd.s32 104, %v1115_v20 }
  0xfa   : > { %v266_v43 = vpop.trf.xlu0 }
  0xfb   : > { %1962 = vmatmul.mubr.msk.f32.gmra.mrb[8].mxu0 %vm273_vm1, %v266_v43  ;;  %v1129_v43 = vadd.s32 112, %v1115_v20 }
  0xfe   : > { %v267_v44 = vpop.trf.xlu0 }
  0xff   : > { %1964 = vmatprep.mubr.msk.f32.mxu0 %vm273_vm1, %v267_v44  ;;  %v1130_v44 = vadd.s32 120, %v1115_v20 }
 0x102   : > { %v268_v45 = vpop.trf.xlu0 }
 0x103   : > { %1965 = vmatmul.mubr.msk.f32.gmra.mrb[10].mxu0 %vm273_vm1, %v268_v45  ;;  %v2700_v45 = vcvt.s32.f32 %v1115_v20 }
 0x105   : > { %3608 = vst [vmem:[#allocation6_spill] sm:$0xff] %v2700_v45 }
 0x106   : > { %v269_v46 = vpop.trf.xlu0 }
 0x107   : > { %1967 = vmatprep.mubr.msk.f32.mxu0 %vm273_vm1, %v269_v46 }
 0x10a   : > { %v270_v47 = vpop.trf.xlu0 }
 0x10b   : > { %1968 = vmatmul.mubr.msk.f32.gmra.mrb[12].mxu0 %vm273_vm1, %v270_v47  ;;  %v2702_v47 = vcvt.s32.f32 %v1116_v24 }
 0x10d   : > { %3609 = vst [vmem:[#allocation7_spill] sm:$0xff] %v2702_v47 }
 0x10e   : > { %v271_v48 = vpop.trf.xlu0 }
 0x10f   : > { %1970 = vmatprep.mubr.msk.f32.mxu0 %vm273_vm1, %v271_v48  ;;  %v2704_v48 = vcvt.s32.f32 %v1117_v25 }
 0x111   : > { %3610 = vst [vmem:[#allocation8_spill] sm:$0xff] %v2704_v48 }
 0x112   : > { %v272_v50 = vpop.trf.xlu0 }
 0x113   : > { %1971 = vmatmul.mubr.msk.f32.gmra.mrb[14].mxu0 %vm273_vm1, %v272_v50  ;;  %v2708_v50 = vcvt.s32.f32 %v1119_v29 }
 0x114   : > { %2001 = vmatprep.mubr.msk.f32.mxu0 %vm273_vm1, %v217_v49  ;;  %v2706_v49 = vcvt.s32.f32 %v1118_v28 }
 0x117   : > { %2002 = vmatmul.mubr.msk.f32.vlgmr.msra.gmra.mrb[16].mxu0 %vm273_vm1, %v218_v51 }
 0x118   : > { %2004 = vmatprep.mubr.msk.f32.mxu0 %vm273_vm1, %v219_v52 }
 0x11b   : > { %2005 = vmatmul.mubr.msk.f32.gmra.mrb[18].mxu0 %vm273_vm1, %v220_v53  ;;  %v2712_v53 = vcvt.s32.f32 %v1120_v30 }
 0x11c   : > { %2007 = vmatprep.mubr.msk.f32.mxu0 %vm273_vm1, %v221_v54  ;;  %v2714_v54 = vcvt.s32.f32 %v1121_v31 }
 0x11f   : > { %2008 = vmatmul.mubr.msk.f32.gmra.mrb[20].mxu0 %vm273_vm1, %v222_v55  ;;  %v2716_v55 = vcvt.s32.f32 %v1122_v35 }
 0x120   : > { %2010 = vmatprep.mubr.msk.f32.mxu0 %vm273_vm1, %v223_v56 }
 0x123   : > { %2011 = vmatmul.mubr.msk.f32.gmra.mrb[22].mxu0 %vm273_vm1, %v224_v58  ;;  %v2722_v58 = vcvt.s32.f32 %v1124_v37 }
 0x137   : > { %v953_v15 = vpop.permute.xlu0 %952 }
 0x16e   : > { %v1977_v59 = vpop.f32.mrb[0].mxu1 }
 0x16f   : > { %723 = vperm.xlu1 %2272, %v1977_v59   ;;  %v621_v60 = vpop.f32.mrb[1].mxu1  ;;  %v2724_v59 = vcvt.s32.f32 %v1125_v39 }
 0x173   : > { %718 = vperm.xlu1 %2272, %v621_v60   ;;  %v978_v60 = vpop.permute.xlu1 %977 }
 0x176   : > { %v1980_v61 = vpop.f32.mrb[2].mxu1 }
 0x177   : > { %733 = vperm.xlu1 %2272, %v1980_v61   ;;  %v631_v62 = vpop.f32.mrb[3].mxu1  ;;  %v2726_v61 = vcvt.s32.f32 %v1126_v40 }
 0x17b   : > { %728 = vperm.xlu1 %2272, %v631_v62   ;;  %v2728_v62 = vcvt.s32.f32 %v1127_v41 }
 0x17e   : > { %v1983_v63 = vpop.f32.mrb[4].mxu1 }
 0x17f   : > { %743 = vperm.xlu1 %2272, %v1983_v63   ;;  %v641_v0 = vpop.f32.mrb[5].mxu1  ;;  %v2730_v63 = vcvt.s32.f32 %v1128_v42 }
 0x183   : > { %738 = vperm.xlu1 %2272, %v641_v0   ;;  %v2732_v0 = vcvt.s32.f32 %v1129_v43 }
 0x185   : > { %3613 = vst [vmem:[#allocation11_spill] sm:$0xff] %v2732_v0 }
 0x186   : > { %v1986_v1 = vpop.f32.mrb[6].mxu1 }
 0x187   : > { %753 = vperm.xlu1 %2272, %v1986_v1   ;;  %v651_v2 = vpop.f32.mrb[7].mxu1 }
 0x18b   : > { %748 = vperm.xlu1 %2272, %v651_v2  }
 0x18e   : > { %v1989_v3 = vpop.f32.mrb[8].mxu1 }
 0x18f   : > { %763 = vperm.xlu1 %2272, %v1989_v3   ;;  %v661_v4 = vpop.f32.mrb[9].mxu1  ;;  %v2736_v3 = vcvt.s32.f32 %v1130_v44 }
 0x191   : > { %3614 = vst [vmem:[#allocation12_spill] sm:$0xff] %v2736_v3 }
 0x193   : > { %758 = vperm.xlu1 %2272, %v661_v4  }
 0x196   : > { %v1992_v6 = vpop.f32.mrb[10].mxu1 }
 0x197   : > { %773 = vperm.xlu1 %2272, %v1992_v6   ;;  %v671_v7 = vpop.f32.mrb[11].mxu1 }
 0x19b   : > { %768 = vperm.xlu1 %2272, %v671_v7  }
 0x19e   : > { %v1995_v9 = vpop.f32.mrb[12].mxu1 }
 0x19f   : > { %783 = vperm.xlu1 %2272, %v1995_v9   ;;  %v681_v10 = vpop.f32.mrb[13].mxu1 }
 0x1a3   : > { %778 = vperm.xlu1 %2272, %v681_v10  }
 0x1a6   : > { %v1998_v12 = vpop.f32.mrb[14].mxu1 }
 0x1a7   : > { %793 = vperm.xlu1 %2272, %v1998_v12   ;;  %v691_v13 = vpop.f32.mrb[15].mxu1 }
 0x1aa   : > { %v2017_v17 = vpop.f32.mrb[16].mxu1 }
 0x1ab   : > { %788 = vperm.xlu1 %2272, %v691_v13   ;;  %v1075_v18 = vpop.f32.mrb[17].mxu1  ;;  %v2689_v19 = vadd.f32 %v2017_v17, %v953_v15 }
 0x1ac   : > { %v2694_v22 = vadd.f32 %v1075_v18, %v948_v5 }
 0x1ad   : > { %3604 = vst [vmem:[#allocation2_spill] sm:$0xff] %v2689_v19 }
 0x1ae   : > { %3605 = vst [vmem:[#allocation3_spill] sm:$0xff] %v2694_v22  ;;  %v2020_v26 = vpop.f32.mrb[18].mxu1  ;;  %v1951_v27 = vpop.f32.mrb[0].mxu0 }
 0x1af   : > { %982 = vperm.xlu1 %2272, %v240_v21   ;;  %v2696_v32 = vadd.f32 %v2020_v26, %v963_v11  ;;  %v1085_v33 = vpop.f32.mrb[19].mxu1  ;;  %v392_v34 = vpop.f32.mrb[1].mxu0  ;;  %v2746_v24 = vmul.f32 2.0, %v1951_v27 }
 0x1b0   : > { %v2698_v38 = vadd.f32 %v1085_v33, %v958_v8  ;;  %v2758_v31 = vmul.f32 2.0, %v392_v34 }
 0x1b1   : > { %3606 = vst [vmem:[#allocation4_spill] sm:$0xff] %v2696_v32 }
 0x1b2   : > { %3607 = vst [vmem:[#allocation5_spill] sm:$0xff] %v2698_v38  ;;  %v2023_v46 = vpop.f32.mrb[20].mxu1 }
 0x1b3   : > { %v2710_v51 = vadd.f32 %v2023_v46, %v973_v23  ;;  %v1095_v52 = vpop.f32.mrb[21].mxu1 }
 0x1b4   : > { %v2718_v56 = vadd.f32 %v1095_v52, %v968_v14 }
 0x1b5   : > { %3611 = vst [vmem:[#allocation9_spill] sm:$0xff] %v2710_v51 }
 0x1b6   : > { %3612 = vst [vmem:[#allocation10_spill] sm:$0xff] %v2718_v56  ;;  %v2734_v1 = vpop.f32.mrb[22].mxu1  ;;  %v1954_v2 = vpop.f32.mrb[2].mxu0 }
 0x1b7   : > { %v1105_v4 = vpop.f32.mrb[23].mxu1  ;;  %v402_v5 = vpop.f32.mrb[3].mxu0  ;;  %v2770_v39 = vmul.f32 2.0, %v1954_v2 }
 0x1b8   : > { %v2738_v6 = vadd.f32 %v1105_v4, %v978_v60  ;;  %v702_v44 = vmul.f32 2.0, %v402_v5 }
 0x1ba   : > { %3615 = vst [vmem:[#allocation13_spill] sm:$0xff] %v2738_v6 }
 0x1be   : > { %v1957_v7 = vpop.f32.mrb[4].mxu0 }
 0x1bf   : > { %v412_v8 = vpop.f32.mrb[5].mxu0  ;;  %v705_v60 = vmul.f32 2.0, %v1957_v7 }
 0x1c0   : > { %v704_v2 = vmul.f32 2.0, %v412_v8 }
 0x1c6   : > { %v1960_v9 = vpop.f32.mrb[6].mxu0 }
 0x1c7   : > { %v422_v10 = vpop.f32.mrb[7].mxu0  ;;  %v707_v27 = vmul.f32 2.0, %v1960_v9 }
 0x1c8   : > { %v706_v6 = vmul.f32 2.0, %v422_v10 }
 0x1ce   : > { %v1963_v11 = vpop.f32.mrb[8].mxu0 }
 0x1cf   : > { %v432_v12 = vpop.f32.mrb[9].mxu0  ;;  %v709_v51 = vmul.f32 2.0, %v1963_v11 }
 0x1d0   : > { %v708_v22 = vmul.f32 2.0, %v432_v12 }
 0x1d6   : > { %v1966_v13 = vpop.f32.mrb[10].mxu0 }
 0x1d7   : > { %v442_v14 = vpop.f32.mrb[11].mxu0 }
 0x1de   : > { %v1969_v15 = vpop.f32.mrb[12].mxu0 }
 0x1df   : > { %v452_v16 = vpop.f32.mrb[13].mxu0 }
 0x1e6   : > { %v1972_v17 = vpop.f32.mrb[14].mxu0 }
 0x1e7   : > { %v462_v18 = vpop.f32.mrb[15].mxu0 }
 0x1e8   : > { %v714_v11 = vmul.f32 2.0, %v462_v18  ;;  %v2799_v18 = vmov -inf  }
 0x1ea   : > { %v2740_v20 = vpop.f32.mrb[16].mxu0 }
 0x1eb   : > { %3616 = vst [vmem:[#allocation14_spill] sm:$0xff] %v2740_v20  ;;  %v2742_v21 = vpop.f32.mrb[17].mxu0 }
 0x1ec   : > { %3617 = vst [vmem:[#allocation15_spill] sm:$0xff] %v2742_v21 }
 0x1ee   : > { %v2748_v25 = vpop.permute.xlu1 %723  ;;  %v2750_v26 = vpop.f32.mrb[18].mxu0 }
 0x1ef   : > { %3618 = vst [vmem:[#allocation16_spill] sm:$0xff] %v2750_v26  ;;  %v2754_v29 = vpop.f32.mrb[19].mxu0 }
 0x1f0   : > { %3619 = vst [vmem:[#allocation17_spill] sm:$0xff] %v2754_v29 }
 0x1f2   : > { %v2760_v33 = vpop.permute.xlu1 %718  ;;  %v2762_v35 = vpop.f32.mrb[20].mxu0 }
 0x1f3   : > { %3620 = vst [vmem:[#allocation18_spill] sm:$0xff] %v2762_v35  ;;  %v2766_v36 = vpop.f32.mrb[21].mxu0 }
 0x1f4   : > { %3621 = vst [vmem:[#allocation19_spill] sm:$0xff] %v2766_v36 }
 0x1f6   : > { %v2772_v40 = vpop.permute.xlu1 %733  ;;  %v2774_v41 = vpop.f32.mrb[22].mxu0 }
 0x1f7   : > { %3622 = vst [vmem:[#allocation20_spill] sm:$0xff] %v2774_v41  ;;  %v2778_v42 = vpop.f32.mrb[23].mxu0 }
 0x1f8   : > { %3623 = vst [vmem:[#allocation21_spill] sm:$0xff] %v2778_v42  ;;  %v711_v42 = vmul.f32 2.0, %v1966_v13  ;;  %v2785_v13 = vmov -inf  }
 0x1fa   : > { %v729_v46 = vpop.permute.xlu1 %728 }
 0x1fb   : > { %v798_v52 = vsub.f32 %v702_v44, %v729_v46   ;;  %v710_v46 = vmul.f32 2.0, %v442_v14  ;;  %v2787_v14 = vmov -inf  }
 0x1fe   : > { %v744_v4 = vpop.permute.xlu1 %743 }
 0x1ff   : > { %v801_v30 = vsub.f32 %v705_v60, %v744_v4   ;;  %v713_v4 = vmul.f32 2.0, %v1969_v15  ;;  %v2789_v15 = vmov -inf  }
 0x202   : > { %v739_v37 = vpop.permute.xlu1 %738 }
 0x203   : > { %v800_v23 = vsub.f32 %v704_v2, %v739_v37   ;;  %v712_v2 = vmul.f32 2.0, %v452_v16  ;;  %v2793_v16 = vmov -inf  }
 0x206   : > { %v754_v28 = vpop.permute.xlu1 %753 }
 0x207   : > { %v803_v32 = vsub.f32 %v707_v27, %v754_v28   ;;  %v715_v27 = vmul.f32 2.0, %v1972_v17  ;;  %v2795_v17 = vmov -inf  }
 0x20a   : > { %v749_v38 = vpop.permute.xlu1 %748 }
 0x20b   : > { %v802_v34 = vsub.f32 %v706_v6, %v749_v38  }
 0x20e   : > { %v764_v19 = vpop.permute.xlu1 %763 }
 0x20f   : > { %v805_v56 = vsub.f32 %v709_v51, %v764_v19  }
 0x212   : > { %v759_v43 = vpop.permute.xlu1 %758 }
 0x213   : > { %v804_v5 = vsub.f32 %v708_v22, %v759_v43   ;;  %v2797_v43 = vmov -inf  }
 0x216   : > { %v774_v44 = vpop.permute.xlu1 %773 }
 0x217   : > { %v807_v7 = vsub.f32 %v711_v42, %v774_v44   ;;  %v2791_v42 = vmov -inf   ;;  %v3626_v44 = vsub.f32 %v2746_v24, %v2748_v25  }
 0x21a   : > { %v769_v60 = vpop.permute.xlu1 %768 }
 0x21b   : > { %v806_v8 = vsub.f32 %v710_v46, %v769_v60   ;;  %v3627_v46 = vsub.f32 %v2758_v31, %v2760_v33  }
 0x21e   : > { %v784_v37 = vpop.permute.xlu1 %783 }
 0x21f   : > { %v809_v9 = vsub.f32 %v713_v4, %v784_v37  }
 0x222   : > { %v779_v28 = vpop.permute.xlu1 %778 }
 0x223   : > { %v808_v10 = vsub.f32 %v712_v2, %v779_v28  }
 0x226   : > { %v794_v38 = vpop.permute.xlu1 %793 }
 0x227   : > { %v811_v6 = vsub.f32 %v715_v27, %v794_v38  }
 0x22a   : > { %v789_v19 = vpop.permute.xlu1 %788 }
 0x22b   : > { %v810_v51 = vsub.f32 %v714_v11, %v789_v19  }
 0x22e   : > { %v983_v12 = vpop.permute.xlu1 %982 }
 0x22f   : > { %v2783_v22 = vadd.f32 %v2734_v1, %v983_v12  ;;  %v3625_v1 = vsub.f32 %v2770_v39, %v2772_v40  }
 0x231   : > { %3624 = vst [vmem:[#allocation22_spill] sm:$0xff] %v2783_v22 }
 0x232 LB: >> { %v3628_v48 = vld [vmem:[#allocation8_spill] sm:$0xff]  ;;  %v3629_v47 = vld [vmem:[#allocation7_spill] sm:$0xff]  ;;  %v3630_v45 = vld [vmem:[#allocation6_spill] sm:$0xff]  ;;  %3633 = vst [vmem:[#allocation23_spill] sm:$0xff] %v2400_v13  ;;  %v1177_v24 = vmax.f32 %v2492_v46, %v2476_v23  ;;  %v1178_v25 = vmax.f32 %v2488_v44, %v2472_v30  ;;  %v1179_v31 = vmax.f32 %v2484_v52, %v2468_v34  ;;  %v1180_v33 = vmax.f32 %v2480_v1, %v2464_v32  ;;  %s1152_s5 = sadd.s32 1, %s2496_s5   ;;  %v2416_v16 = vphi %v2793_v16, %v3705_v16   ;;  %v2412_v42 = vphi %v2791_v42, %v3704_v42   ;;  %v2408_v15 = vphi %v2789_v15, %v3703_v15   ;;  %v2404_v14 = vphi %v2787_v14, %v3702_v14   ;;  %v2400_v13 = vphi %v2785_v13, %v3701_v13   ;;  %s2496_s5 = sphi %s2842_s5, %s1152_s5   ;;  %v2492_v46 = vphi %v3627_v46, %v3717_v46   ;;  %v2488_v44 = vphi %v3626_v44, %v3716_v44   ;;  %v2484_v52 = vphi %v798_v52, %v3715_v52   ;;  %v2480_v1 = vphi %v3625_v1, %v3714_v1   ;;  %v2476_v23 = vphi %v800_v23, %v3713_v23   ;;  %v2472_v30 = vphi %v801_v30, %v3712_v30   ;;  %v2468_v34 = vphi %v802_v34, %v3711_v34   ;;  %v2464_v32 = vphi %v803_v32, %v3710_v32   ;;  %v2460_v5 = vphi %v804_v5, %v3709_v5   ;;  %v2456_v56 = vphi %v805_v56, %v3281_v56   ;;  %v2452_v8 = vphi %v806_v8, %v3289_v8   ;;  %v2448_v7 = vphi %v807_v7, %v3295_v7   ;;  %v2444_v10 = vphi %v808_v10, %v3309_v10   ;;  %v2440_v9 = vphi %v809_v9, %v3315_v9   ;;  %v2436_v51 = vphi %v810_v51, %v3323_v51   ;;  %v2432_v6 = vphi %v811_v6, %v3341_v6   ;;  %v2428_v18 = vphi %v2799_v18, %v3708_v18   ;;  %v2424_v43 = vphi %v2797_v43, %v3707_v43   ;;  %v2420_v17 = vphi %v2795_v17, %v3706_v17  }
 0x233   : >> { %v3631_v3 = vld [vmem:[#allocation12_spill] sm:$0xff]  ;;  %v3632_v0 = vld [vmem:[#allocation11_spill] sm:$0xff]  ;;  %3634 = vst [vmem:[#allocation24_spill] sm:$0xff] %v2404_v14  ;;  %3635 = vst [vmem:[#allocation25_spill] sm:$0xff] %v2408_v15  ;;  %p3462_p5 = scmp.ge.s32.totalorder %s1152_s5, 4  }
 0x234   : >> { %3636 = vst [vmem:[#allocation26_spill] sm:$0xff] %v2412_v42  ;;  %3637 = vst [vmem:[#allocation27_spill] sm:$0xff] %v2416_v16  ;;  %v1181_v39 = vmax.f32 %v1177_v24, %v2460_v5  ;;  %v1182_v40 = vmax.f32 %v1178_v25, %v2456_v56  ;;  %v1183_v60 = vmax.f32 %v1179_v31, %v2452_v8  ;;  %v3568_v25 = vmov 0  }
 0x235   : >> { %3638 = vst [vmem:[#allocation28_spill] sm:$0xff] %v2420_v17  ;;  %3639 = vst [vmem:[#allocation29_spill] sm:$0xff] %v2424_v43  ;;  %v1184_v4 = vmax.f32 %v1180_v33, %v2448_v7  ;;  %1501 = vmatprep.mubr.bf16.mxu0 %v3568_v25  ;;  %1521 = vmatprep.mubr.bf16.mxu1 %v3568_v25 }
 0x236   : >> { %3640 = vst [vmem:[#allocation30_spill] sm:$0xff] %v2428_v18  ;;  %v1185_v37 = vmax.f32 %v1181_v39, %v2444_v10  ;;  %v1186_v2 = vmax.f32 %v1182_v40, %v2440_v9  ;;  %v1187_v28 = vmax.f32 %v1183_v60, %v2436_v51 }
 0x237   : >> { %v1188_v27 = vmax.f32 %v1184_v4, %v2432_v6 }
 0x238   : >> { %v1189_v38 = vmax.f32 %v1185_v37, %v1186_v2 }
 0x239   : >> { %v1190_v11 = vmax.f32 %v1187_v28, %v1188_v27 }
 0x23b   : >> { %v1191_v19 = vmax.f32 %v1189_v38, %v1190_v11 }
 0x23d   : >> { %v1192_v12 = vrot.slane %v1191_v19, 4 }
 0x23f   : >> { %v1193_v13 = vmax.f32 %v1191_v19, %v1192_v12 }
 0x241   : >> { %v1194_v24 = vrot.slane %v1193_v13, 2 }
 0x243   : >> { %v1195_v16 = vmax.f32 %v1193_v13, %v1194_v24 }
 0x245   : >> { %v1196_v31 = vrot.slane %v1195_v16, 1 }
 0x247   : >> { %v1197_v33 = vmax.f32 %v1195_v16, %v1196_v31 }
 0x249   : >> { %vm1198_vm2 = vcmp.eq.f32.partialorder %v2492_v46, %v1197_v33  ;;  %vm1199_vm3 = vcmp.eq.f32.partialorder %v2488_v44, %v1197_v33  ;;  %vm1200_vm4 = vcmp.eq.f32.partialorder %v2484_v52, %v1197_v33  ;;  %vm1201_vm5 = vcmp.eq.f32.partialorder %v2480_v1, %v1197_v33 }
 0x24a   : >> { %vm1202_vm6 = vcmp.eq.f32.partialorder %v2476_v23, %v1197_v33  ;;  %vm1203_vm7 = vcmp.eq.f32.partialorder %v2472_v30, %v1197_v33  ;;  %vm1204_vm8 = vcmp.eq.f32.partialorder %v2468_v34, %v1197_v33  ;;  %vm1205_vm9 = vcmp.eq.f32.partialorder %v2464_v32, %v1197_v33 }
 0x24b   : >> { %vm1206_vm10 = vcmp.eq.f32.partialorder %v2460_v5, %v1197_v33  ;;  %vm1207_vm11 = vcmp.eq.f32.partialorder %v2456_v56, %v1197_v33  ;;  %vm1208_vm12 = vcmp.eq.f32.partialorder %v2452_v8, %v1197_v33  ;;  %vm1209_vm13 = vcmp.eq.f32.partialorder %v2448_v7, %v1197_v33 }
 0x24c   : >> { %v1214_v13 = vsel %vm1198_vm2, %v3630_v45, 128.0  ;;  %v1215_v16 = vsel %vm1199_vm3, %v3629_v47, 128.0  ;;  %v1216_v39 = vsel %vm1200_vm4, %v3628_v48, 128.0  ;;  %v1217_v40 = vsel %vm1201_vm5, %v2706_v49, 128.0 }
 0x24d   : >> { %v1218_v60 = vsel %vm1202_vm6, %v2708_v50, 128.0  ;;  %v1219_v4 = vsel %vm1203_vm7, %v2712_v53, 128.0  ;;  %v1220_v37 = vsel %vm1204_vm8, %v2714_v54, 128.0  ;;  %v1221_v2 = vsel %vm1205_vm9, %v2716_v55, 128.0 }
 0x24e   : >> { %vm1210_vm14 = vcmp.eq.f32.partialorder %v2444_v10, %v1197_v33  ;;  %vm1211_vm15 = vcmp.eq.f32.partialorder %v2440_v9, %v1197_v33  ;;  %vm1212_vm0 = vcmp.eq.f32.partialorder %v2436_v51, %v1197_v33  ;;  %vm1213_vm1 = vcmp.eq.f32.partialorder %v2432_v6, %v1197_v33 }
 0x24f   : >> { %v1222_v28 = vsel %vm1206_vm10, %v2720_v57, 128.0  ;;  %v1223_v27 = vsel %vm1207_vm11, %v2722_v58, 128.0  ;;  %v1224_v38 = vsel %vm1208_vm12, %v2724_v59, 128.0  ;;  %v1225_v11 = vsel %vm1209_vm13, %v2726_v61, 128.0 }
 0x250   : >> { %v1230_v19 = vmin.f32 %v1214_v13, %v1218_v60  ;;  %v1231_v12 = vmin.f32 %v1215_v16, %v1219_v4  ;;  %v1232_v24 = vmin.f32 %v1216_v39, %v1220_v37  ;;  %v1233_v31 = vmin.f32 %v1217_v40, %v1221_v2 }
 0x251   : >> { %v1226_v25 = vsel %vm1210_vm14, %v2728_v62, 128.0  ;;  %v1227_v14 = vsel %vm1211_vm15, %v2730_v63, 128.0  ;;  %v1228_v17 = vsel %vm1212_vm0, %v3632_v0, 128.0  ;;  %v1229_v22 = vsel %vm1213_vm1, %v3631_v3, 128.0 }
 0x252   : >> { %v1234_v15 = vmin.f32 %v1230_v19, %v1222_v28  ;;  %v1235_v43 = vmin.f32 %v1231_v12, %v1223_v27  ;;  %v1236_v42 = vmin.f32 %v1232_v24, %v1224_v38  ;;  %v1237_v18 = vmin.f32 %v1233_v31, %v1225_v11 }
 0x254   : >> { %v1238_v41 = vmin.f32 %v1234_v15, %v1226_v25  ;;  %v1239_v29 = vmin.f32 %v1235_v43, %v1227_v14  ;;  %v1240_v33 = vmin.f32 %v1236_v42, %v1228_v17  ;;  %v1241_v26 = vmin.f32 %v1237_v18, %v1229_v22 }
 0x255   : >> { %v3645_v18 = vmov 0 }
 0x256   : >> { %v1242_v13 = vmin.f32 %v1238_v41, %v1239_v29  ;;  %v1243_v16 = vmin.f32 %v1240_v33, %v1241_v26 }
 0x258   : >> { %v1244_v39 = vmin.f32 %v1242_v13, %v1243_v16 }
 0x25a   : >> { %v1245_v40 = vrot.slane %v1244_v39, 4 }
 0x25c   : >> { %v1246_v60 = vmin.f32 %v1244_v39, %v1245_v40 }
 0x25e   : >> { %v1247_v4 = vrot.slane %v1246_v60, 2 }
 0x260   : >> { %v1248_v37 = vmin.f32 %v1246_v60, %v1247_v4 }
 0x262   : >> { %v1249_v2 = vrot.slane %v1248_v37, 1 }
 0x264   : >> { %v2977_v36 = vmin.f32 %v1248_v37, %v1249_v2 }
 0x266   : >> { %vm3584_vm2 = vcmp.eq.f32.partialorder %v3630_v45, %v2977_v36  ;;  %vm3583_vm3 = vcmp.eq.f32.partialorder %v3629_v47, %v2977_v36  ;;  %vm3582_vm4 = vcmp.eq.f32.partialorder %v3628_v48, %v2977_v36  ;;  %vm3581_vm5 = vcmp.eq.f32.partialorder %v2706_v49, %v2977_v36 }
 0x267   : >> { %vm3580_vm6 = vcmp.eq.f32.partialorder %v2708_v50, %v2977_v36  ;;  %vm3579_vm7 = vcmp.eq.f32.partialorder %v2712_v53, %v2977_v36  ;;  %vm3578_vm8 = vcmp.eq.f32.partialorder %v2714_v54, %v2977_v36  ;;  %vm3575_vm9 = vcmp.eq.f32.partialorder %v2716_v55, %v2977_v36 }
 0x268   : >> { %vm3576_vm10 = vcmp.eq.f32.partialorder %v2720_v57, %v2977_v36  ;;  %vm3577_vm11 = vcmp.eq.f32.partialorder %v2722_v58, %v2977_v36  ;;  %vm1261_vm12 = vcmp.eq.f32.partialorder %v2724_v59, %v2977_v36  ;;  %vm1262_vm13 = vcmp.eq.f32.partialorder %v2726_v61, %v2977_v36 }
 0x269   : >> { %v3007_v26 = vsel %vm3584_vm2, -inf, %v2492_v46  ;;  %v3013_v29 = vsel %vm3583_vm3, -inf, %v2488_v44  ;;  %v3019_v41 = vsel %vm3582_vm4, -inf, %v2484_v52  ;;  %v3025_v22 = vsel %vm3581_vm5, -inf, %v2480_v1 }
 0x26a   : >> { %v3031_v14 = vsel %vm3580_vm6, -inf, %v2476_v23  ;;  %v3037_v15 = vsel %vm3579_vm7, -inf, %v2472_v30  ;;  %v3043_v52 = vsel %vm3578_vm8, -inf, %v2468_v34  ;;  %v3049_v42 = vsel %vm3575_vm9, -inf, %v2464_v32  ;;  %vm3065_vm9 = vmpackc.low %vm1262_vm13, %vm1261_vm12  ;;  %v3668_v32 = vld [vmem:[#allocation15_spill] sm:$0xff] }
 0x26b   : >> { %vm1263_vm14 = vcmp.eq.f32.partialorder %v2728_v62, %v2977_v36  ;;  %vm1264_vm15 = vcmp.eq.f32.partialorder %v2730_v63, %v2977_v36  ;;  %vm1265_vm0 = vcmp.eq.f32.partialorder %v3632_v0, %v2977_v36  ;;  %vm1266_vm1 = vcmp.eq.f32.partialorder %v3631_v3, %v2977_v36 }
 0x26c   : >> { %v3073_v23 = vsel %vm3576_vm10, -inf, %v2460_v5  ;;  %v3079_v30 = vsel %vm3577_vm11, -inf, %v2456_v56  ;;  %v3085_v34 = vsel %vm1261_vm12, -inf, %v2452_v8  ;;  %v3091_v17 = vsel %vm1262_vm13, -inf, %v2448_v7  ;;  %vm3096_vm10 = vmpackc.low %vm1264_vm15, %vm1263_vm14 }
 0x26d   : >> { %v1283_v56 = vmax.f32 %v3007_v26, %v3031_v14  ;;  %v1284_v8 = vmax.f32 %v3013_v29, %v3037_v15  ;;  %v1285_v43 = vmax.f32 %v3019_v41, %v3043_v52  ;;  %v1286_v7 = vmax.f32 %v3025_v22, %v3049_v42  ;;  %vm3108_vm12 = vmpackc.low %vm1266_vm1, %vm1265_vm0 }
 0x26e   : >> { %v3646_v18 = vsel %vm3108_vm12, 4294967295, %v3645_v18  ;;  %v3116_v1 = vsel %vm1263_vm14, -inf, %v2444_v10  ;;  %v3119_v44 = vsel %vm1264_vm15, -inf, %v2440_v9  ;;  %v3122_v46 = vsel %vm1265_vm0, -inf, %v2436_v51 }
 0x26f   : >> { %3647 = vst [vmem:[#allocation31_spill] sm:$0xff] %v3646_v18  ;;  %v3125_v25 = vsel %vm1266_vm1, -inf, %v2432_v6  ;;  %v1287_v28 = vmax.f32 %v1283_v56, %v3073_v23  ;;  %v1288_v27 = vmax.f32 %v1284_v8, %v3079_v30  ;;  %v1289_v38 = vmax.f32 %v1285_v43, %v3085_v34 }
 0x270   : >> { %v1290_v11 = vmax.f32 %v1286_v7, %v3091_v17  ;;  %v3673_v5 = vmov 0  }
 0x271   : >> { %v1291_v10 = vmax.f32 %v1287_v28, %v3116_v1  ;;  %v1292_v19 = vmax.f32 %v1288_v27, %v3119_v44  ;;  %v1293_v9 = vmax.f32 %v1289_v38, %v3122_v46 }
 0x272   : >> { %v1294_v51 = vmax.f32 %v1290_v11, %v3125_v25 }
 0x273   : >> { %v1295_v12 = vmax.f32 %v1291_v10, %v1292_v19 }
 0x274   : >> { %v1296_v24 = vmax.f32 %v1293_v9, %v1294_v51 }
 0x276   : >> { %v1297_v6 = vmax.f32 %v1295_v12, %v1296_v24 }
 0x278   : >> { %v1298_v31 = vrot.slane %v1297_v6, 4 }
 0x27a   : >> { %v1299_v33 = vmax.f32 %v1297_v6, %v1298_v31 }
 0x27c   : >> { %v1300_v13 = vrot.slane %v1299_v33, 2 }
 0x27e   : >> { %v1301_v16 = vmax.f32 %v1299_v33, %v1300_v13 }
 0x280   : >> { %v1302_v39 = vrot.slane %v1301_v16, 1 }
 0x282   : >> { %v1303_v40 = vmax.f32 %v1301_v16, %v1302_v39 }
 0x284   : >> { %vm1304_vm13 = vcmp.eq.f32.partialorder %v3007_v26, %v1303_v40  ;;  %vm1305_vm14 = vcmp.eq.f32.partialorder %v3013_v29, %v1303_v40  ;;  %vm1306_vm15 = vcmp.eq.f32.partialorder %v3019_v41, %v1303_v40  ;;  %vm1307_vm0 = vcmp.eq.f32.partialorder %v3025_v22, %v1303_v40 }
 0x285   : >> { %vm1308_vm1 = vcmp.eq.f32.partialorder %v3031_v14, %v1303_v40  ;;  %vm1309_vm11 = vcmp.eq.f32.partialorder %v3037_v15, %v1303_v40  ;;  %vm1310_vm8 = vcmp.eq.f32.partialorder %v3043_v52, %v1303_v40  ;;  %vm1311_vm7 = vcmp.eq.f32.partialorder %v3049_v42, %v1303_v40 }
 0x286   : >> { %vm1312_vm6 = vcmp.eq.f32.partialorder %v3073_v23, %v1303_v40  ;;  %vm1313_vm5 = vcmp.eq.f32.partialorder %v3079_v30, %v1303_v40  ;;  %vm1314_vm4 = vcmp.eq.f32.partialorder %v3085_v34, %v1303_v40  ;;  %v1320_v60 = vsel %vm1304_vm13, %v3630_v45, 128.0 }
 0x287   : >> { %v1321_v4 = vsel %vm1305_vm14, %v3629_v47, 128.0  ;;  %v1322_v37 = vsel %vm1306_vm15, %v3628_v48, 128.0  ;;  %v1323_v2 = vsel %vm1307_vm0, %v2706_v49, 128.0  ;;  %v1324_v56 = vsel %vm1308_vm1, %v2708_v50, 128.0 }
 0x288   : >> { %v1325_v8 = vsel %vm1309_vm11, %v2712_v53, 128.0  ;;  %v1326_v43 = vsel %vm1310_vm8, %v2714_v54, 128.0  ;;  %v1327_v7 = vsel %vm1311_vm7, %v2716_v55, 128.0  ;;  %vm1316_vm2 = vcmp.eq.f32.partialorder %v3116_v1, %v1303_v40 }
 0x289   : >> { %vm1317_vm3 = vcmp.eq.f32.partialorder %v3119_v44, %v1303_v40  ;;  %vm1318_vm13 = vcmp.eq.f32.partialorder %v3122_v46, %v1303_v40  ;;  %vm1319_vm14 = vcmp.eq.f32.partialorder %v3125_v25, %v1303_v40  ;;  %v1328_v28 = vsel %vm1312_vm6, %v2720_v57, 128.0 }
 0x28a   : >> { %v1329_v27 = vsel %vm1313_vm5, %v2722_v58, 128.0  ;;  %v1330_v38 = vsel %vm1314_vm4, %v2724_v59, 128.0  ;;  %vm3648_vm7 = vcmp.eq.f32.partialorder %v3091_v17, %v1303_v40  ;;  %v1336_v10 = vmin.f32 %v1320_v60, %v1324_v56 }
 0x28b   : >> { %v1331_v11 = vsel %vm3648_vm7, %v2726_v61, 128.0  ;;  %v1337_v19 = vmin.f32 %v1321_v4, %v1325_v8  ;;  %v1338_v9 = vmin.f32 %v1322_v37, %v1326_v43  ;;  %v1339_v51 = vmin.f32 %v1323_v2, %v1327_v7 }
 0x28c   : >> { %v1332_v12 = vsel %vm1316_vm2, %v2728_v62, 128.0  ;;  %v1333_v24 = vsel %vm1317_vm3, %v2730_v63, 128.0  ;;  %v1334_v6 = vsel %vm1318_vm13, %v3632_v0, 128.0  ;;  %v1335_v31 = vsel %vm1319_vm14, %v3631_v3, 128.0 }
 0x28d   : >> { %v1340_v33 = vmin.f32 %v1336_v10, %v1328_v28  ;;  %v1341_v13 = vmin.f32 %v1337_v19, %v1329_v27  ;;  %v1342_v16 = vmin.f32 %v1338_v9, %v1330_v38  ;;  %v1343_v39 = vmin.f32 %v1339_v51, %v1331_v11 }
 0x28e   : >> { %vm3649_vm4 = vcmp.eq.f32.partialorder %v3630_v45, %v2977_v36  ;;  %vm3650_vm5 = vcmp.eq.f32.partialorder %v3629_v47, %v2977_v36  ;;  %v2501_v38 = vmov 1.0|1.0  }
 0x28f   : >> { %v1344_v35 = vmin.f32 %v1340_v33, %v1332_v12  ;;  %v1345_v21 = vmin.f32 %v1341_v13, %v1333_v24  ;;  %v1346_v40 = vmin.f32 %v1342_v16, %v1334_v6  ;;  %v1347_v20 = vmin.f32 %v1343_v39, %v1335_v31  ;;  %vm3187_vm6 = vmpackc.low %vm3650_vm5, %vm3649_vm4  ;;  %v3680_v24 = vld [vmem:[#allocation3_spill] sm:$0xff]  ;;  %v3681_v33 = vld [vmem:[#allocation10_spill] sm:$0xff] }
 0x291   : >> { %v1348_v60 = vmin.f32 %v1344_v35, %v1345_v21  ;;  %v1349_v4 = vmin.f32 %v1346_v40, %v1347_v20  ;;  %v3682_v20 = vld [vmem:[#allocation2_spill] sm:$0xff] }
 0x293   : >> { %v1350_v37 = vmin.f32 %v1348_v60, %v1349_v4 }
 0x295   : >> { %v1351_v2 = vrot.slane %v1350_v37, 4 }
 0x297   : >> { %v1352_v56 = vmin.f32 %v1350_v37, %v1351_v2 }
 0x299   : >> { %v1353_v8 = vrot.slane %v1352_v56, 2 }
 0x29b   : >> { %v1354_v43 = vmin.f32 %v1352_v56, %v1353_v8 }
 0x29d   : >> { %v1355_v7 = vrot.slane %v1354_v43, 1 }
 0x29f   : >> { %v3175_v18 = vmin.f32 %v1354_v43, %v1355_v7 }
 0x2a1   : >> { %vm1357_vm2 = vcmp.eq.f32.partialorder %v3630_v45, %v3175_v18  ;;  %vm1358_vm3 = vcmp.eq.f32.partialorder %v3629_v47, %v3175_v18  ;;  %vm1359_vm8 = vcmp.eq.f32.partialorder %v3628_v48, %v3175_v18  ;;  %vm1360_vm11 = vcmp.eq.f32.partialorder %v2706_v49, %v3175_v18 }
 0x2a2   : >> { %v3196_v21 = vsel %vm1357_vm2, -inf, %v3007_v26   ;;  %v3199_v35 = vsel %vm1358_vm3, -inf, %v3013_v29   ;;  %vm1860_vm15 = vmpackc.low %vm1358_vm3, %vm1357_vm2  ;;  %v3202_v28 = vsel %vm1359_vm8, -inf, %v3019_v41   ;;  %v3205_v27 = vsel %vm1360_vm11, -inf, %v3025_v22  }
 0x2a3   : >> { %1861 = vmatprep.subr.msk.bf16.mxu0 %vm1860_vm15, %v2501_v38  ;;  %2027 = vmatprep.subr.msk.bf16.mxu1 %vm1860_vm15, %v2501_v38  ;;  %vm1864_vm0 = vmpackc.low %vm1360_vm11, %vm1359_vm8  ;;  %vm1361_vm1 = vcmp.eq.f32.partialorder %v2708_v50, %v3175_v18  ;;  %vm1362_vm13 = vcmp.eq.f32.partialorder %v2712_v53, %v3175_v18  ;;  %vm1363_vm14 = vcmp.eq.f32.partialorder %v2714_v54, %v3175_v18 }
 0x2a4   : >> { %1863 = vmatpush1.bf16.msk.msra.mxu0 %vm3187_vm6, %v2501_v38  ;;  %2035 = vmatpush1.bf16.msk.msra.mxu1 %vm3187_vm6, %v2501_v38  ;;  %v3225_v26 = vsel %vm1361_vm1, -inf, %v3031_v14   ;;  %v3231_v29 = vsel %vm1362_vm13, -inf, %v3037_v15   ;;  %vm1364_vm7 = vcmp.eq.f32.partialorder %v2716_v55, %v3175_v18  ;;  %v3239_v41 = vsel %vm1363_vm14, -inf, %v3043_v52   ;;  %vm3267_vm11 = vmpackc.low %vm1362_vm13, %vm1361_vm1  ;;  %v3683_v14 = vld [vmem:[#allocation9_spill] sm:$0xff] }
 0x2a5   : >> { %1865 = vmatprep.subr.msk.bf16.mxu0 %vm1864_vm0, %v2501_v38  ;;  %2028 = vmatprep.subr.msk.bf16.mxu1 %vm1864_vm0, %v2501_v38  ;;  %vm3653_vm2 = vcmp.eq.f32.partialorder %v3628_v48, %v2977_v36  ;;  %vm3654_vm3 = vcmp.eq.f32.partialorder %v2706_v49, %v2977_v36  ;;  %v3253_v22 = vsel %vm1364_vm7, -inf, %v3049_v42   ;;  %vm1365_vm5 = vcmp.eq.f32.partialorder %v2720_v57, %v3175_v18  ;;  %v3667_v42 = vld [vmem:[#allocation14_spill] sm:$0xff]  ;;  %v3698_v48 = vld [vmem:[#allocation27_spill] sm:$0xff] }
 0x2a6   : >> { %vm1866_vm4 = vmpackc.low %vm3654_vm3, %vm3653_vm2  ;;  %vm1366_vm6 = vcmp.eq.f32.partialorder %v2722_v58, %v3175_v18  ;;  %vm1367_vm8 = vcmp.eq.f32.partialorder %v2724_v59, %v3175_v18  ;;  %v3275_v15 = vsel %vm1365_vm5, -inf, %v3073_v23   ;;  %vm1368_vm15 = vcmp.eq.f32.partialorder %v2726_v61, %v3175_v18 }
 0x2a7   : >> { %v3657_v52 = vmov %v3275_v15  ;;  %v3281_v56 = vsel %vm1366_vm6, -inf, %v3079_v30   ;;  %v3289_v8 = vsel %vm1367_vm8, -inf, %v3085_v34   ;;  %v3295_v7 = vsel %vm1368_vm15, -inf, %v3091_v17   ;;  %v3670_v30 = vld [vmem:[#allocation18_spill] sm:$0xff]  ;;  %v3671_v34 = vld [vmem:[#allocation19_spill] sm:$0xff] }
 0x2a8   : >> { %vm1369_vm0 = vcmp.eq.f32.partialorder %v2728_v62, %v3175_v18  ;;  %vm3590_vm1 = vcmp.eq.f32.partialorder %v2730_v63, %v3175_v18  ;;  %vm1371_vm13 = vcmp.eq.f32.partialorder %v3632_v0, %v3175_v18  ;;  %1867 = vmatpush1.bf16.msk.msra.mxu0 %vm1866_vm4, %v2501_v38  ;;  %2036 = vmatpush1.bf16.msk.msra.mxu1 %vm1866_vm4, %v2501_v38 }
 0x2a9   : >> { %v3309_v10 = vsel %vm1369_vm0, -inf, %v3116_v1   ;;  %v3315_v9 = vsel %vm3590_vm1, -inf, %v3119_v44   ;;  %vm3591_vm2 = vcmp.eq.f32.partialorder %v3631_v3, %v3175_v18  ;;  %v3323_v51 = vsel %vm1371_vm13, -inf, %v3122_v46   ;;  %1869 = vmatprep.subr.msk.bf16.mxu0 %vm3267_vm11, %v2501_v38  ;;  %2029 = vmatprep.subr.msk.bf16.mxu1 %vm3267_vm11, %v2501_v38  ;;  %vm1872_vm11 = vmpackc.low %vm1364_vm7, %vm1363_vm14  ;;  %v3675_v1 = vld [vmem:[#allocation17_spill] sm:$0xff]  ;;  %v3677_v46 = vld [vmem:[#allocation20_spill] sm:$0xff] }
 0x2aa   : >> { %vm3658_vm3 = vcmp.eq.f32.partialorder %v2708_v50, %v2977_v36  ;;  %vm3659_vm4 = vcmp.eq.f32.partialorder %v2712_v53, %v2977_v36  ;;  %v3341_v6 = vsel %vm3591_vm2, -inf, %v3125_v25   ;;  %vm1876_vm14 = vmpackc.low %vm1366_vm6, %vm1365_vm5  ;;  %vm3662_vm7 = vcmp.eq.f32.partialorder %v2720_v57, %v2977_v36  ;;  %v3678_v25 = vld [vmem:[#allocation21_spill] sm:$0xff] }
 0x2ab   : >> { %vm1870_vm1 = vmpackc.low %vm3659_vm4, %vm3658_vm3  ;;  %vm3660_vm3 = vcmp.eq.f32.partialorder %v2714_v54, %v2977_v36  ;;  %vm3661_vm4 = vcmp.eq.f32.partialorder %v2716_v55, %v2977_v36  ;;  %vm3664_vm6 = vcmp.eq.f32.partialorder %v2730_v63, %v3175_v18  ;;  %v3669_v23 = vpack.c.bf16 %v3667_v42, %v3668_v32 }
 0x2ac   : >> { %1871 = vmatpush1.bf16.msk.msra.mxu0 %vm1870_vm1, %v2501_v38  ;;  %2037 = vmatpush1.bf16.msk.msra.mxu1 %vm1870_vm1, %v2501_v38  ;;  %vm1874_vm2 = vmpackc.low %vm3661_vm4, %vm3660_vm3  ;;  %vm3663_vm1 = vcmp.eq.f32.partialorder %v2722_v58, %v2977_v36  ;;  %v3672_v17 = vpack.c.bf16 %v3670_v30, %v3671_v34  ;;  %v3679_v11 = vpack.c.bf16 %v3677_v46, %v3678_v25 }
 0x2ad   : >> { %1873 = vmatprep.subr.msk.bf16.mxu0 %vm1872_vm11, %v2501_v38  ;;  %2030 = vmatprep.subr.msk.bf16.mxu1 %vm1872_vm11, %v2501_v38  ;;  %vm1878_vm11 = vmpackc.low %vm3663_vm1, %vm3662_vm7  ;;  %v3684_v36 = vmov %v3683_v14 }
 0x2ae   : >> { %vm1880_vm5 = vmpackc.low %vm1368_vm15, %vm1367_vm8  ;;  %vm3665_vm8 = vcmp.eq.f32.partialorder %v3631_v3, %v3175_v18  ;;  %v3674_v18 = vld [vmem:[#allocation16_spill] sm:$0xff] }
 0x2af   : >> { %vm1888_vm15 = vmpackc.low %vm3665_vm8, %vm1371_vm13  ;;  %v3676_v44 = vpack.c.bf16 %v3674_v18, %v3675_v1 }
 0x2b0   : >> { %1875 = vmatpush1.bf16.msk.msra.mxu0 %vm1874_vm2, %v2501_v38  ;;  %2038 = vmatpush1.bf16.msk.msra.mxu1 %vm1874_vm2, %v2501_v38  ;;  %vm1884_vm2 = vmpackc.low %vm3664_vm6, %vm1369_vm0 }
 0x2b1   : >> { %1877 = vmatprep.subr.msk.bf16.mxu0 %vm1876_vm14, %v2501_v38  ;;  %2031 = vmatprep.subr.msk.bf16.mxu1 %vm1876_vm14, %v2501_v38 }
 0x2b4   : >> { %1879 = vmatpush1.bf16.msk.msra.mxu0 %vm1878_vm11, %v2501_v38  ;;  %2039 = vmatpush1.bf16.msk.msra.mxu1 %vm1878_vm11, %v2501_v38 }
 0x2b5   : >> { %1881 = vmatprep.subr.msk.bf16.mxu0 %vm1880_vm5, %v2501_v38  ;;  %2032 = vmatprep.subr.msk.bf16.mxu1 %vm1880_vm5, %v2501_v38 }
 0x2b8   : >> { %1883 = vmatpush1.bf16.msk.msra.mxu0 %vm3065_vm9, %v2501_v38  ;;  %2040 = vmatpush1.bf16.msk.msra.mxu1 %vm3065_vm9, %v2501_v38 }
 0x2b9   : >> { %1885 = vmatprep.subr.msk.bf16.mxu0 %vm1884_vm2, %v2501_v38  ;;  %2033 = vmatprep.subr.msk.bf16.mxu1 %vm1884_vm2, %v2501_v38 }
 0x2bc   : >> { %1887 = vmatpush1.bf16.msk.msra.mxu0 %vm3096_vm10, %v2501_v38  ;;  %2041 = vmatpush1.bf16.msk.msra.mxu1 %vm3096_vm10, %v2501_v38 }
 0x2bd   : >> { %1889 = vmatprep.subr.msk.bf16.mxu0 %vm1888_vm15, %v2501_v38  ;;  %2034 = vmatprep.subr.msk.bf16.mxu1 %vm1888_vm15, %v2501_v38 }
 0x2c0   : >> { %1891 = vmatpush1.bf16.msk.msra.mxu0 %vm3108_vm12, %v2501_v38  ;;  %2042 = vmatpush1.bf16.msk.msra.mxu1 %vm3108_vm12, %v2501_v38 }
 0x2c3   : >> { %1502 = vmatmul.mubr.bf16.vlgmr.msra.gmra.mrb[0].mxu0 %v3669_v23  ;;  %1522 = vmatmul.mubr.bf16.vlgmr.msra.gmra.mrb[0].mxu1 %v3672_v17 }
 0x2c4   : >> { %1511 = vmatprep.mubr.bf16.mxu0 %v3673_v5  ;;  %1531 = vmatprep.mubr.bf16.mxu1 %v3673_v5 }
 0x2cb   : >> { %1512 = vmatmul.mubr.bf16.gmra.mrb[4].mxu0 %v3676_v44  ;;  %1532 = vmatmul.mubr.bf16.gmra.mrb[4].mxu1 %v3679_v11 }
 0x396   : >> { %v1503_v19 = vpop.f32.mrb[0].mxu0  ;;  %v1523_v12 = vpop.f32.mrb[0].mxu1 }
 0x397   : >> { %v1542_v31 = vadd.f32 %v1503_v19, %v3680_v24  ;;  %v1546_v13 = vadd.f32 %v1523_v12, %v3681_v33  ;;  %v1505_v16 = vpop.f32.mrb[1].mxu0  ;;  %v1525_v39 = vpop.f32.mrb[1].mxu1 }
 0x398   : >> { %v1566_v40 = vadd.f32 %v1505_v16, %v3680_v24  ;;  %v1570_v60 = vadd.f32 %v1525_v39, %v3681_v33  ;;  %v1507_v4 = vpop.f32.mrb[2].mxu0  ;;  %v1527_v37 = vpop.f32.mrb[2].mxu1  ;;  %v3685_v24 = vld [vmem:[#allocation5_spill] sm:$0xff] }
 0x399   : >> { %v1550_v2 = vmul.f32 0.2, %v1542_v31  ;;  %v1554_v43 = vmul.f32 0.2, %v1546_v13  ;;  %v1543_v38 = vadd.f32 %v1507_v4, %v3682_v20  ;;  %v1547_v15 = vadd.f32 %v1527_v37, %v3683_v14  ;;  %v1509_v42 = vpop.f32.mrb[3].mxu0  ;;  %v1529_v32 = vpop.f32.mrb[3].mxu1 }
 0x39a   : >> { %v1574_v23 = vmul.f32 0.2, %v1566_v40  ;;  %v1578_v30 = vmul.f32 0.2, %v1570_v60  ;;  %v1567_v34 = vadd.f32 %v1509_v42, %v3682_v20  ;;  %v1571_v17 = vadd.f32 %v1529_v32, %v3684_v36  ;;  %v3686_v20 = vld [vmem:[#allocation13_spill] sm:$0xff] }
 0x39b   : >> { %v1558_v5 = vmax.f32 %v1542_v31, %v1550_v2  ;;  %v1562_v18 = vmax.f32 %v1546_v13, %v1554_v43  ;;  %v1551_v1 = vmul.f32 0.2, %v1543_v38  ;;  %v1555_v44 = vmul.f32 0.2, %v1547_v15  ;;  %v3687_v2 = vld [vmem:[#allocation30_spill] sm:$0xff] }
 0x39c   : >> { %v1582_v46 = vmax.f32 %v1566_v40, %v1574_v23  ;;  %v1586_v25 = vmax.f32 %v1570_v60, %v1578_v30  ;;  %v1575_v11 = vmul.f32 0.2, %v1567_v34  ;;  %v1579_v19 = vmul.f32 0.2, %v1571_v17  ;;  %v3689_v60 = vld [vmem:[#allocation26_spill] sm:$0xff] }
 0x39d   : >> { %v1559_v12 = vmax.f32 %v1543_v38, %v1551_v1  ;;  %v1563_v16 = vmax.f32 %v1547_v15, %v1555_v44  ;;  %v3691_v44 = vld [vmem:[#allocation29_spill] sm:$0xff] }
 0x39e   : >> { %v1590_v39 = vmax.f32 %v1558_v5, %v1582_v46  ;;  %v1594_v4 = vmax.f32 %v1562_v18, %v1586_v25  ;;  %v1583_v37 = vmax.f32 %v1567_v34, %v1575_v11  ;;  %v1587_v14 = vmax.f32 %v1571_v17, %v1579_v19  ;;  %v1513_v0 = vpop.f32.mrb[4].mxu0  ;;  %v1533_v3 = vpop.f32.mrb[4].mxu1  ;;  %v3692_v46 = vld [vmem:[#allocation25_spill] sm:$0xff] }
 0x39f   : >> { %v1544_v42 = vadd.f32 %v1513_v0, %v3685_v24  ;;  %v1548_v32 = vadd.f32 %v1533_v3, %v3686_v20  ;;  %v1515_v31 = vpop.f32.mrb[5].mxu0  ;;  %v1535_v13 = vpop.f32.mrb[5].mxu1 }
 0x3a0   : >> { %v3444_v18 = vmax.f32 %v3687_v2, %v1590_v39   ;;  %v3447_v43 = vmax.f32 %v3689_v60, %v1594_v4   ;;  %v1591_v38 = vmax.f32 %v1559_v12, %v1583_v37  ;;  %v1595_v15 = vmax.f32 %v1563_v16, %v1587_v14  ;;  %v1517_v23 = vpop.f32.mrb[6].mxu0  ;;  %v1537_v30 = vpop.f32.mrb[6].mxu1  ;;  %v3695_v4 = vld [vmem:[#allocation22_spill] sm:$0xff] }
 0x3a1   : >> { %v1552_v34 = vmul.f32 0.2, %v1544_v42  ;;  %v1556_v17 = vmul.f32 0.2, %v1548_v32  ;;  %v1568_v5 = vadd.f32 %v1515_v31, %v3685_v24  ;;  %v1572_v0 = vadd.f32 %v1535_v13, %v3686_v20  ;;  %v1519_v1 = vpop.f32.mrb[7].mxu0  ;;  %v1539_v3 = vpop.f32.mrb[7].mxu1 }
 0x3a2   : >> { %v3688_v40 = vmov %v3444_v18  ;;  %v3690_v33 = vmov %v3447_v43  ;;  %v1599_v25 = vmax.f32 %v3691_v44, %v1591_v38   ;;  %v1603_v11 = vmax.f32 %v3692_v46, %v1595_v15   ;;  %v3693_v18 = vld [vmem:[#allocation4_spill] sm:$0xff] }
 0x3a3   : >> { %v3694_v19 = vmov %v3693_v18  ;;  %v1545_v39 = vadd.f32 %v1517_v23, %v3693_v18  ;;  %v1549_v2 = vadd.f32 %v1537_v30, %v3695_v4  ;;  %v1560_v12 = vmax.f32 %v1544_v42, %v1552_v34  ;;  %v3696_v42 = vld [vmem:[#allocation28_spill] sm:$0xff]  ;;  %1606 = vst [vmem:[%s2551_s26] sm:$0xff] (%p3462_p5), %v3688_v40  ;;  %1610 = vst [vmem:[%s2551_s26 + $0x20] sm:$0xff] (%p3462_p5), %v3690_v33 }
 0x3a4   : >> { %v1564_v16 = vmax.f32 %v1548_v32, %v1556_v17  ;;  %v1576_v37 = vmul.f32 0.2, %v1568_v5  ;;  %v1580_v14 = vmul.f32 0.2, %v1572_v0  ;;  %v1569_v31 = vadd.f32 %v1519_v1, %v3694_v19  ;;  %v3697_v32 = vld [vmem:[#allocation24_spill] sm:$0xff]  ;;  %v3699_v1 = vld [vmem:[#allocation23_spill] sm:$0xff] }
 0x3a5   : >> { %v1553_v60 = vmul.f32 0.2, %v1545_v39  ;;  %v1557_v43 = vmul.f32 0.2, %v1549_v2  ;;  %v1573_v13 = vadd.f32 %v1539_v3, %v3695_v4  ;;  %1607 = vst [vmem:[%s2551_s26 + $0x8] sm:$0xff] (%p3462_p5), %v1599_v25  ;;  %1611 = vst [vmem:[%s2551_s26 + $0x28] sm:$0xff] (%p3462_p5), %v1603_v11 }
 0x3a6   : >> { %v1584_v20 = vmax.f32 %v1568_v5, %v1576_v37  ;;  %v1588_v24 = vmax.f32 %v1572_v0, %v1580_v14  ;;  %v1577_v44 = vmul.f32 0.2, %v1569_v31  ;;  %v3709_v5 = vmov %v3657_v52 }
 0x3a7   : >> { %v1561_v36 = vmax.f32 %v1545_v39, %v1553_v60  ;;  %v1565_v38 = vmax.f32 %v1549_v2, %v1557_v43  ;;  %v1581_v15 = vmul.f32 0.2, %v1573_v13  ;;  %v3707_v43 = vmov %v1599_v25 }
 0x3a8   : >> { %v1592_v46 = vmax.f32 %v1560_v12, %v1584_v20  ;;  %v1596_v23 = vmax.f32 %v1564_v16, %v1588_v24  ;;  %v1585_v18 = vmax.f32 %v1569_v31, %v1577_v44  ;;  %v3715_v52 = vmov %v3202_v28 }
 0x3a9   : >> { %v1589_v30 = vmax.f32 %v1573_v13, %v1581_v15  ;;  %v3703_v15 = vmov %v1603_v11  ;;  %v3716_v44 = vmov %v3199_v35  ;;  %1151 = sbr.rel (!%p3462_p5) target bundleno = 562 (0x232), region = 73 }
 0x3aa   : >> { %v1600_v45 = vmax.f32 %v3696_v42, %v1592_v46   ;;  %v1604_v47 = vmax.f32 %v3697_v32, %v1596_v23   ;;  %v1593_v34 = vmax.f32 %v1561_v36, %v1585_v18  ;;  %v3704_v42 = vmov %v3690_v33 }
 0x3ab   : >> { %v1597_v17 = vmax.f32 %v1565_v38, %v1589_v30  ;;  %v3708_v18 = vmov %v3688_v40  ;;  %v3710_v32 = vmov %v3253_v22  ;;  %v3712_v30 = vmov %v3231_v29 }
 0x3ac   : >> { %v1601_v19 = vmax.f32 %v3698_v48, %v1593_v34   ;;  %v3702_v14 = vmov %v1604_v47  ;;  %v3711_v34 = vmov %v3239_v41  ;;  %v3713_v23 = vmov %v3225_v26  ;;  %1608 = vst [vmem:[%s2551_s26 + $0x10] sm:$0xff] (%p3462_p5), %v1600_v45  ;;  %1612 = vst [vmem:[%s2551_s26 + $0x30] sm:$0xff] (%p3462_p5), %v1604_v47 }
 0x3ad   : >> { %v1605_v3 = vmax.f32 %v3699_v1, %v1597_v17   ;;  %v3706_v17 = vmov %v1600_v45  ;;  %v3714_v1 = vmov %v3205_v27  ;;  %v3717_v46 = vmov %v3196_v21 }
 0x3ae   : >> { %v3705_v16 = vmov %v1601_v19  ;;  %1609 = vst [vmem:[%s2551_s26 + $0x18] sm:$0xff] (%p3462_p5), %v1601_v19 }
 0x3af   : >> { %v3701_v13 = vmov %v1605_v3  ;;  %1613 = vst [vmem:[%s2551_s26 + $0x38] sm:$0xff] (%p3462_p5), %v1605_v3 }
 0x3b0 PF: > { %s14_s17 = sadd.s32 1, %s2396_s17   ;;  %s3718_s15 = smov %s2392_s16 }
 0x3b1   : > { %p11_p6 = scmp.ge.s32.totalorder %s14_s17, 4   ;;  %s3719_s16 = smov %s3721_s18 }
 0x3b3   :  { %13 = sbr.rel (!%p11_p6) target bundleno = 2 (0x2), region = 84 }

// kernel: contrastive_ae_forward.4
= control target key start
LH: loop header
LB: loop body
LE: loop exit
PB: predicated region body
PF: predicated region fallthrough
CT: control target
= control target key end

     0   :  { %s3427_s24 = smov 0   ;;  %s3429_s25 = smov 0   ;;  %s4741_s0 = inlined_call_operand.vmem [shape: f32[2,64,128], index: 0, kind: input, shape index: {}]   ;;  %s4742_s1 = inlined_call_operand.vmem [shape: f32[64,64], index: 1, kind: input, shape index: {}]   ;;  %s4743_s2 = inlined_call_operand.vmem [shape: f32[64,64], index: 2, kind: input, shape index: {}]   ;;  %s4744_s3 = inlined_call_operand.vmem [shape: f32[64,1], index: 3, kind: input, shape index: {}]   ;;  %s4745_s4 = inlined_call_operand.vmem [shape: f32[64,64], index: 4, kind: input, shape index: {}]   ;;  %s4746_s5 = inlined_call_operand.vmem [shape: f32[64,64], index: 5, kind: input, shape index: {}]   ;;  %s4747_s6 = inlined_call_operand.vmem [shape: f32[1,64], index: 6, kind: input, shape index: {}]   ;;  %s4748_s7 = inlined_call_operand.vmem [shape: f32[2,1,64], index: 7, kind: output, shape index: {}]  }
   0x1   :  { %s3431_s26 = smov 0  }
   0x2 LB: > { %s29_s27 = sadd.s32 1, %s3277_s25  ;;  %p2313_p0 = scmp.ge.s32.totalorder %s3281_s26, 1  ;;  %s3281_s26 = sphi %s3431_s26, %s17_s26   ;;  %s3277_s25 = sphi %s3429_s25, %s5013_s25   ;;  %s3273_s24 = sphi %s3427_s24, %s5012_s24  }
   0x3   : > { %p31_p1 = scmp.ge.s32.totalorder %s29_s27, 2  ;;  %p249_p2 = scmp.lt.s32.totalorder %s3281_s26, 3 }
   0x5   : > { %s5015_s27 = smov (%p31_p1, %s29_s27), 0  ;;  %p250_p3 = pnand %p2313_p0, %p249_p2 }
   0x7   : > { %253 = sbr.rel (%p250_p3) target bundleno = 1362 (0x552), region = 48 }
   0xe   : > { %p279_p4 = scmp.lt.s32.totalorder %s3273_s24, 1  ;;  %v3383_v0 = vmov 1.0|1.0   ;;  %v3384_v21 = vmov 0   ;;  %v312_v22 = vld [vmem:[%s4744_s3] sm:$0xff]  ;;  %v314_v23 = vld [vmem:[%s4744_s3 + $0x10] sm:$0xff] }
   0xf   : > { %2824 = vmatprep.subr.bf16.mxu1 %v3383_v0  ;;  %v316_v24 = vld [vmem:[%s4744_s3 + $0x20] sm:$0xff]  ;;  %v313_v25 = vld [vmem:[%s4744_s3 + $0x8] sm:$0xff]  ;;  %v315_v26 = vld [vmem:[%s4744_s3 + $0x18] sm:$0xff]  ;;  %vm4780_vm0 = vcmask 523264  }
  0x10   : > { %s5017_s24 = smov (!%p279_p4, %s3273_s24), 1  ;;  %2825 = vmatpush3.bf16.msra.mxu1 %v3383_v0  ;;  %v317_v27 = vld [vmem:[%s4744_s3 + $0x28] sm:$0xff]  ;;  %v296_v58 = vld [vmem:[%s4742_s1] sm:$0xff]  ;;  %v298_v63 = vld [vmem:[%s4742_s1 + $0x10] sm:$0xff] }
  0x11   : > { %2826 = vmatprep.subr.bf16.mxu1 %v3383_v0  ;;  %s2463_s28 = sshll.u32 %s5017_s24, 6  ;;  %s286_s8 = scalar_lea.vmem %s4748_s7, %s5017_s24  ;;  %v304_v60 = vld [vmem:[%s4743_s2] sm:$0xff]  ;;  %v297_v62 = vld [vmem:[%s4742_s1 + $0x8] sm:$0xff] }
  0x12   : > { %s283_s11 = scalar_lea.vmem %s4741_s0, %s2463_s28  ;;  %s3856_s28 = smov 0  }
  0x13   : > { %v288_v1 = vld [vmem:[%s283_s11] sm:$0xff]  ;;  %v289_v2 = vld [vmem:[%s283_s11 + $0x8] sm:$0xff]  ;;  %v290_v5 = vld [vmem:[%s283_s11 + $0x10] sm:$0xff] }
  0x14   : > { %2827 = vmatpush3.bf16.msra.mxu1 %v3383_v0  ;;  %v546_v3 = vmul.f32 %v288_v1, %v288_v1  ;;  %v3455_v4 = vpack.c.bf16 %v289_v2, %v288_v1  ;;  %320 = vxpose.xlu1.b32.start [1/8] (short) %v288_v1, 128  ;;  %v291_v6 = vld [vmem:[%s283_s11 + $0x18] sm:$0xff]  ;;  %v547_v7 = vmul.f32 %v289_v2, %v289_v2  ;;  %v292_v9 = vld [vmem:[%s283_s11 + $0x20] sm:$0xff]  ;;  %v293_v10 = vld [vmem:[%s283_s11 + $0x28] sm:$0xff] }
  0x15   : > { %2828 = vmatprep.subr.bf16.mxu1 %v3383_v0  ;;  %v3457_v8 = vpack.c.bf16 %v291_v6, %v290_v5  ;;  %v548_v11 = vmul.f32 %v290_v5, %v290_v5  ;;  %v3461_v12 = vpack.c.bf16 %v293_v10, %v292_v9  ;;  %v294_v13 = vld [vmem:[%s283_s11 + $0x30] sm:$0xff]  ;;  %v295_v14 = vld [vmem:[%s283_s11 + $0x38] sm:$0xff]  ;;  %v549_v15 = vmul.f32 %v291_v6, %v291_v6 }
  0x16   : > { %554 = vxpose.xlu0.b32.start [1/8] (short) %v546_v3, 128  ;;  %2809 = vmatprep.subr.bf16.mxu0 %v3455_v4  ;;  %v3466_v16 = vpack.c.bf16 %v295_v14, %v294_v13  ;;  %v550_v17 = vmul.f32 %v292_v9, %v292_v9  ;;  %v551_v18 = vmul.f32 %v293_v10, %v293_v10  ;;  %v306_v1 = vld [vmem:[%s4743_s2 + $0x10] sm:$0xff]  ;;  %v300_v3 = vld [vmem:[%s4742_s1 + $0x20] sm:$0xff] }
  0x17   : > { %2811 = vmatpush3.bf16.msra.mxu0 %v3455_v4  ;;  %v552_v19 = vmul.f32 %v294_v13, %v294_v13  ;;  %v553_v20 = vmul.f32 %v295_v14, %v295_v14 }
  0x18   : > { %2829 = vmatpush3.bf16.msra.mxu1 %v3383_v0  ;;  %321 = vxpose.xlu1.b32.cont [2/8] (short) %v289_v2, 128  ;;  %v299_v2 = vld [vmem:[%s4742_s1 + $0x18] sm:$0xff] }
  0x19   : > { %2830 = vmatprep.subr.bf16.mxu1 %v3383_v0  ;;  %2813 = vmatprep.subr.bf16.mxu0 %v3457_v8 }
  0x1a   : > { %555 = vxpose.xlu0.b32.cont [2/8] (short) %v547_v7, 128  ;;  %v302_v7 = vld [vmem:[%s4742_s1 + $0x30] sm:$0xff] }
  0x1b   : > { %2815 = vmatpush3.bf16.msra.mxu0 %v3457_v8 }
  0x1c   : > { %2831 = vmatpush3.bf16.msra.mxu1 %v3383_v0  ;;  %322 = vxpose.xlu1.b32.cont [3/8] (short) %v290_v5, 128  ;;  %v305_v0 = vld [vmem:[%s4743_s2 + $0x8] sm:$0xff]  ;;  %v308_v5 = vld [vmem:[%s4743_s2 + $0x20] sm:$0xff] }
  0x1d   : > { %2849 = vmatprep.subr.bf16.mxu1 %v3455_v4  ;;  %2817 = vmatprep.subr.bf16.mxu0 %v3461_v12 }
  0x1e   : > { %556 = vxpose.xlu0.b32.cont [3/8] (short) %v548_v11, 128  ;;  %v311_v11 = vld [vmem:[%s4743_s2 + $0x38] sm:$0xff] }
  0x1f   : > { %2819 = vmatpush3.bf16.msra.mxu0 %v3461_v12 }
  0x20   : > { %323 = vxpose.xlu1.b32.cont [4/8] (short) %v291_v6, 128  ;;  %2821 = vmatprep.subr.bf16.mxu0 %v3466_v16  ;;  %v301_v6 = vld [vmem:[%s4742_s1 + $0x28] sm:$0xff] }
  0x22   : > { %557 = vxpose.xlu0.b32.cont [4/8] (short) %v549_v15, 128 }
  0x23   : > { %2823 = vmatpush3.bf16.msra.mxu0 %v3466_v16 }
  0x24   : > { %324 = vxpose.xlu1.b32.cont [5/8] (short) %v292_v9, 128  ;;  %2833 = vmatprep.subr.bf16.mxu0 %v3455_v4  ;;  %v310_v9 = vld [vmem:[%s4743_s2 + $0x30] sm:$0xff] }
  0x26   : > { %558 = vxpose.xlu0.b32.cont [5/8] (short) %v550_v17, 128 }
  0x28   : > { %325 = vxpose.xlu1.b32.cont [6/8] (short) %v293_v10, 128  ;;  %v303_v10 = vld [vmem:[%s4742_s1 + $0x38] sm:$0xff] }
  0x2a   : > { %559 = vxpose.xlu0.b32.cont [6/8] (short) %v551_v18, 128 }
  0x2c   : > { %326 = vxpose.xlu1.b32.cont [7/8] (short) %v294_v13, 128 }
  0x2e   : > { %560 = vxpose.xlu0.b32.cont [7/8] (short) %v552_v19, 128 }
  0x30   : > { %327 = vxpose.xlu1.b32.end [8/8] (short) %v295_v14, 128 }
  0x32   : > { %561 = vxpose.xlu0.b32.end [8/8] (short) %v553_v20, 128 }
  0x4e   : > { %3157 = vset.pattern.permute.xlu1 %v3384_v21 }
  0x5b   : > { %3158 = vset.pattern.permute.xlu0 %v3384_v21 }
  0x6e   : > { %1026 = vperm.xlu1 %3157, %v312_v22  }
  0x72   : > { %1036 = vperm.xlu1 %3157, %v314_v23  }
  0x76   : > { %1046 = vperm.xlu1 %3157, %v316_v24  }
  0x7b   : > { %1031 = vperm.xlu0 %3158, %v313_v25  }
  0x7f   : > { %1041 = vperm.xlu0 %3158, %v315_v26  }
  0x83   : > { %1051 = vperm.xlu0 %3158, %v317_v27  }
  0x94   : > { %v3491_v28 = vpop.trf.xlu1 }
  0x95   : > { %4808 = vst [vmem:[#allocation2_spill] sm:$0xff] %v3491_v28  ;;  %2608 = vmatprep.mubr.msk.f32.mxu0 %vm4780_vm0, %v3491_v28 }
  0x96   : > { %v570_v29 = vpop.trf.xlu0 }
  0x97   : > { %2648 = vmatprep.mubr.msk.f32.mxu1 %vm4780_vm0, %v570_v29 }
  0x98   : > { %v3496_v30 = vpop.trf.xlu1 }
  0x99   : > { %4809 = vst [vmem:[#allocation3_spill] sm:$0xff] %v3496_v30  ;;  %2609 = vmatmul.mubr.msk.f32.vlgmr.msra.gmra.mrb[0].mxu0 %vm4780_vm0, %v3496_v30 }
  0x9a   : > { %v571_v31 = vpop.trf.xlu0  ;;  %2835 = vmatpush3.bf16.msra.mxu0 %v3455_v4 }
  0x9b   : > { %2649 = vmatmul.mubr.msk.f32.vlgmr.msra.gmra.mrb[0].mxu1 %vm4780_vm0, %v571_v31  ;;  %2837 = vmatprep.subr.bf16.mxu0 %v3457_v8 }
  0x9c   : > { %2851 = vmatpush3.bf16.msra.mxu1 %v3455_v4  ;;  %v3504_v32 = vpop.trf.xlu1  ;;  %v307_v4 = vld [vmem:[%s4743_s2 + $0x18] sm:$0xff] }
  0x9d   : > { %4810 = vst [vmem:[#allocation4_spill] sm:$0xff] %v3504_v32  ;;  %2611 = vmatprep.mubr.msk.f32.mxu0 %vm4780_vm0, %v3504_v32  ;;  %2853 = vmatprep.subr.bf16.mxu1 %v3457_v8 }
  0x9e   : > { %v572_v33 = vpop.trf.xlu0  ;;  %2839 = vmatpush3.bf16.msra.mxu0 %v3457_v8 }
  0x9f   : > { %2651 = vmatprep.mubr.msk.f32.mxu1 %vm4780_vm0, %v572_v33  ;;  %2841 = vmatprep.subr.bf16.mxu0 %v3461_v12 }
  0xa0   : > { %2855 = vmatpush3.bf16.msra.mxu1 %v3457_v8  ;;  %v3513_v34 = vpop.trf.xlu1  ;;  %v309_v8 = vld [vmem:[%s4743_s2 + $0x28] sm:$0xff] }
  0xa1   : > { %4811 = vst [vmem:[#allocation5_spill] sm:$0xff] %v3513_v34  ;;  %2612 = vmatmul.mubr.msk.f32.gmra.mrb[2].mxu0 %vm4780_vm0, %v3513_v34  ;;  %2857 = vmatprep.subr.bf16.mxu1 %v3461_v12 }
  0xa2   : > { %v573_v35 = vpop.trf.xlu0  ;;  %2843 = vmatpush3.bf16.msra.mxu0 %v3461_v12 }
  0xa3   : > { %2652 = vmatmul.mubr.msk.f32.gmra.mrb[2].mxu1 %vm4780_vm0, %v573_v35  ;;  %2845 = vmatprep.subr.bf16.mxu0 %v3466_v16 }
  0xa4   : > { %2859 = vmatpush3.bf16.msra.mxu1 %v3461_v12  ;;  %v3522_v36 = vpop.trf.xlu1 }
  0xa5   : > { %4812 = vst [vmem:[#allocation6_spill] sm:$0xff] %v3522_v36  ;;  %2614 = vmatprep.mubr.msk.f32.mxu0 %vm4780_vm0, %v3522_v36  ;;  %2861 = vmatprep.subr.bf16.mxu1 %v3466_v16 }
  0xa6   : > { %v574_v37 = vpop.trf.xlu0  ;;  %2847 = vmatpush3.bf16.msra.mxu0 %v3466_v16 }
  0xa7   : > { %2654 = vmatprep.mubr.msk.f32.mxu1 %vm4780_vm0, %v574_v37 }
  0xa8   : > { %2863 = vmatpush3.bf16.msra.mxu1 %v3466_v16  ;;  %v3530_v38 = vpop.trf.xlu1 }
  0xa9   : > { %4813 = vst [vmem:[#allocation7_spill] sm:$0xff] %v3530_v38  ;;  %2615 = vmatmul.mubr.msk.f32.gmra.mrb[4].mxu0 %vm4780_vm0, %v3530_v38 }
  0xaa   : > { %v575_v39 = vpop.trf.xlu0 }
  0xab   : > { %2655 = vmatmul.mubr.msk.f32.gmra.mrb[4].mxu1 %vm4780_vm0, %v575_v39 }
  0xac   : > { %v3535_v40 = vpop.trf.xlu1 }
  0xad   : > { %4814 = vst [vmem:[#allocation8_spill] sm:$0xff] %v3535_v40  ;;  %2617 = vmatprep.mubr.msk.f32.mxu0 %vm4780_vm0, %v3535_v40 }
  0xae   : > { %v576_v41 = vpop.trf.xlu0 }
  0xaf   : > { %2657 = vmatprep.mubr.msk.f32.mxu1 %vm4780_vm0, %v576_v41 }
  0xb0   : > { %v3540_v42 = vpop.trf.xlu1 }
  0xb1   : > { %4815 = vst [vmem:[#allocation9_spill] sm:$0xff] %v3540_v42  ;;  %2618 = vmatmul.mubr.msk.f32.gmra.mrb[6].mxu0 %vm4780_vm0, %v3540_v42 }
  0xb2   : > { %v577_v43 = vpop.trf.xlu0 }
  0xb3   : > { %2658 = vmatmul.mubr.msk.f32.gmra.mrb[6].mxu1 %vm4780_vm0, %v577_v43 }
  0xb4   : > { %v3545_v44 = vpop.trf.xlu1 }
  0xb5   : > { %4816 = vst [vmem:[#allocation10_spill] sm:$0xff] %v3545_v44  ;;  %2620 = vmatprep.mubr.msk.f32.mxu0 %vm4780_vm0, %v3545_v44 }
  0xb6   : > { %v578_v45 = vpop.trf.xlu0 }
  0xb7   : > { %2660 = vmatprep.mubr.msk.f32.mxu1 %vm4780_vm0, %v578_v45 }
  0xb8   : > { %v3550_v46 = vpop.trf.xlu1 }
  0xb9   : > { %4817 = vst [vmem:[#allocation11_spill] sm:$0xff] %v3550_v46  ;;  %2621 = vmatmul.mubr.msk.f32.gmra.mrb[8].mxu0 %vm4780_vm0, %v3550_v46 }
  0xba   : > { %v579_v47 = vpop.trf.xlu0 }
  0xbb   : > { %2661 = vmatmul.mubr.msk.f32.gmra.mrb[8].mxu1 %vm4780_vm0, %v579_v47 }
  0xbc   : > { %v3555_v48 = vpop.trf.xlu1 }
  0xbd   : > { %4818 = vst [vmem:[#allocation12_spill] sm:$0xff] %v3555_v48  ;;  %2623 = vmatprep.mubr.msk.f32.mxu0 %vm4780_vm0, %v3555_v48 }
  0xbe   : > { %v580_v49 = vpop.trf.xlu0 }
  0xbf   : > { %2663 = vmatprep.mubr.msk.f32.mxu1 %vm4780_vm0, %v580_v49 }
  0xc0   : > { %v3560_v50 = vpop.trf.xlu1 }
  0xc1   : > { %4819 = vst [vmem:[#allocation13_spill] sm:$0xff] %v3560_v50  ;;  %2624 = vmatmul.mubr.msk.f32.gmra.mrb[10].mxu0 %vm4780_vm0, %v3560_v50 }
  0xc2   : > { %v581_v51 = vpop.trf.xlu0 }
  0xc3   : > { %2664 = vmatmul.mubr.msk.f32.gmra.mrb[10].mxu1 %vm4780_vm0, %v581_v51 }
  0xc4   : > { %v3565_v52 = vpop.trf.xlu1 }
  0xc5   : > { %4820 = vst [vmem:[#allocation14_spill] sm:$0xff] %v3565_v52  ;;  %2626 = vmatprep.mubr.msk.f32.mxu0 %vm4780_vm0, %v3565_v52 }
  0xc6   : > { %v582_v53 = vpop.trf.xlu0 }
  0xc7   : > { %2666 = vmatprep.mubr.msk.f32.mxu1 %vm4780_vm0, %v582_v53 }
  0xc8   : > { %v3570_v54 = vpop.trf.xlu1 }
  0xc9   : > { %4821 = vst [vmem:[#allocation15_spill] sm:$0xff] %v3570_v54  ;;  %2627 = vmatmul.mubr.msk.f32.gmra.mrb[12].mxu0 %vm4780_vm0, %v3570_v54 }
  0xca   : > { %v583_v55 = vpop.trf.xlu0 }
  0xcb   : > { %2667 = vmatmul.mubr.msk.f32.gmra.mrb[12].mxu1 %vm4780_vm0, %v583_v55 }
  0xcc   : > { %v3575_v56 = vpop.trf.xlu1 }
  0xcd   : > { %4822 = vst [vmem:[#allocation16_spill] sm:$0xff] %v3575_v56  ;;  %2629 = vmatprep.mubr.msk.f32.mxu0 %vm4780_vm0, %v3575_v56 }
  0xce   : > { %v584_v57 = vpop.trf.xlu0 }
  0xcf   : > { %2669 = vmatprep.mubr.msk.f32.mxu1 %vm4780_vm0, %v584_v57 }
  0xd0   : > { %v3583_v59 = vpop.trf.xlu1 }
  0xd1   : > { %4823 = vst [vmem:[#allocation17_spill] sm:$0xff] %v3583_v59  ;;  %2630 = vmatmul.mubr.msk.f32.gmra.mrb[14].mxu0 %vm4780_vm0, %v3583_v59 }
  0xd2   : > { %v585_v61 = vpop.trf.xlu0  ;;  %2688 = vmatprep.mubr.msk.f32.mxu0 %vm4780_vm0, %v296_v58 }
  0xd3   : > { %2670 = vmatmul.mubr.msk.f32.gmra.mrb[14].mxu1 %vm4780_vm0, %v585_v61 }
  0xd4   : > { %2716 = vmatprep.mubr.msk.f32.mxu1 %vm4780_vm0, %v304_v60  ;;  %v1193_v60 = vlaneseq }
  0xd5   : > { %2689 = vmatmul.mubr.msk.f32.vlgmr.msra.gmra.mrb[16].mxu0 %vm4780_vm0, %v297_v62 }
  0xd6   : > { %2691 = vmatprep.mubr.msk.f32.mxu0 %vm4780_vm0, %v298_v63  ;;  %v319_v63 = vld [vmem:[%s4744_s3 + $0x38] sm:$0xff] }
  0xd7   : > { %2717 = vmatmul.mubr.msk.f32.vlgmr.msra.gmra.mrb[16].mxu1 %vm4780_vm0, %v305_v0 }
  0xd8   : > { %2719 = vmatprep.mubr.msk.f32.mxu1 %vm4780_vm0, %v306_v1  ;;  %v1194_v1 = vshrl.u32 %v1193_v60, 7 }
  0xd9   : > { %2692 = vmatmul.mubr.msk.f32.gmra.mrb[18].mxu0 %vm4780_vm0, %v299_v2  ;;  %v318_v2 = vld [vmem:[%s4744_s3 + $0x30] sm:$0xff] }
  0xda   : > { %2694 = vmatprep.mubr.msk.f32.mxu0 %vm4780_vm0, %v300_v3  ;;  %v1208_v60 = vadd.s32 112, %v1194_v1 }
  0xdb   : > { %2720 = vmatmul.mubr.msk.f32.gmra.mrb[18].mxu1 %vm4780_vm0, %v307_v4 }
  0xdc   : > { %2722 = vmatprep.mubr.msk.f32.mxu1 %vm4780_vm0, %v308_v5  ;;  %v3743_v48 = vcvt.s32.f32 %v1208_v60 }
  0xdd   : > { %2695 = vmatmul.mubr.msk.f32.gmra.mrb[20].mxu0 %vm4780_vm0, %v301_v6  ;;  %v1195_v6 = vadd.s32 8, %v1194_v1 }
  0xde   : > { %2697 = vmatprep.mubr.msk.f32.mxu0 %vm4780_vm0, %v302_v7  ;;  %v1196_v7 = vadd.s32 16, %v1194_v1 }
  0xdf   : > { %2723 = vmatmul.mubr.msk.f32.gmra.mrb[20].mxu1 %vm4780_vm0, %v309_v8  ;;  %v1197_v8 = vadd.s32 24, %v1194_v1 }
  0xe0   : > { %2725 = vmatprep.mubr.msk.f32.mxu1 %vm4780_vm0, %v310_v9 }
  0xe1   : > { %2698 = vmatmul.mubr.msk.f32.gmra.mrb[22].mxu0 %vm4780_vm0, %v303_v10  ;;  %v3711_v5 = vcvt.s32.f32 %v1197_v8 }
  0xe3   : > { %2726 = vmatmul.mubr.msk.f32.gmra.mrb[22].mxu1 %vm4780_vm0, %v311_v11  ;;  %v1198_v11 = vadd.s32 32, %v1194_v1  ;;  %4833 = vst [vmem:[#allocation27_spill] sm:$0xff] %v3711_v5 }
  0xe5   : > { %v3717_v54 = vcvt.s32.f32 %v1198_v11 }
  0xed   : > { %v1027_v62 = vpop.permute.xlu1 %1026 }
  0xfa   : > { %v1032_v58 = vpop.permute.xlu0 %1031 }
 0x16c   : > { %v3649_v12 = vpop.f32.mrb[0].mxu0 }
 0x16d   : > { %v3651_v13 = vpop.f32.mrb[1].mxu0  ;;  %v3756_v11 = vmul.f32 2.0, %v3649_v12 }
 0x16e   : > { %v2650_v14 = vpop.f32.mrb[0].mxu1 }
 0x16f   : > { %802 = vperm.xlu1 %3157, %v2650_v14   ;;  %v700_v15 = vpop.f32.mrb[1].mxu1  ;;  %v1199_v14 = vadd.s32 40, %v1194_v1 }
 0x170   : > { %797 = vperm.xlu0 %3158, %v700_v15   ;;  %v1200_v15 = vadd.s32 48, %v1194_v1 }
 0x172   : > { %v3721_v52 = vcvt.s32.f32 %v1200_v15 }
 0x174   : > { %v3653_v16 = vpop.f32.mrb[2].mxu0 }
 0x175   : > { %v3655_v17 = vpop.f32.mrb[3].mxu0 }
 0x176   : > { %v2653_v18 = vpop.f32.mrb[2].mxu1 }
 0x177   : > { %812 = vperm.xlu1 %3157, %v2653_v18   ;;  %v710_v19 = vpop.f32.mrb[3].mxu1  ;;  %v1042_v18 = vpop.permute.xlu0 %1041 }
 0x17b   : > { %807 = vperm.xlu1 %3157, %v710_v19  }
 0x17c   : > { %v3657_v20 = vpop.f32.mrb[4].mxu0 }
 0x17d   : > { %v3659_v21 = vpop.f32.mrb[5].mxu0  ;;  %v784_v40 = vmul.f32 2.0, %v3657_v20 }
 0x17e   : > { %v2656_v22 = vpop.f32.mrb[4].mxu1 }
 0x17f   : > { %822 = vperm.xlu0 %3158, %v2656_v22   ;;  %v720_v23 = vpop.f32.mrb[5].mxu1 }
 0x180   : > { %817 = vperm.xlu1 %3157, %v720_v23   ;;  %v1201_v23 = vadd.s32 56, %v1194_v1 }
 0x184   : > { %v3661_v24 = vpop.f32.mrb[6].mxu0 }
 0x185   : > { %v3663_v25 = vpop.f32.mrb[7].mxu0  ;;  %v786_v32 = vmul.f32 2.0, %v3661_v24 }
 0x186   : > { %v2659_v26 = vpop.f32.mrb[6].mxu1  ;;  %v785_v12 = vmul.f32 2.0, %v3663_v25 }
 0x187   : > { %832 = vperm.xlu0 %3158, %v2659_v26   ;;  %v730_v27 = vpop.f32.mrb[7].mxu1  ;;  %v1202_v26 = vadd.s32 64, %v1194_v1 }
 0x188   : > { %827 = vperm.xlu1 %3157, %v730_v27   ;;  %v1203_v27 = vadd.s32 72, %v1194_v1 }
 0x18c   : > { %v3665_v29 = vpop.f32.mrb[8].mxu0 }
 0x18d   : > { %v3667_v31 = vpop.f32.mrb[9].mxu0 }
 0x18e   : > { %v2662_v33 = vpop.f32.mrb[8].mxu1 }
 0x18f   : > { %842 = vperm.xlu0 %3158, %v2662_v33   ;;  %v740_v35 = vpop.f32.mrb[9].mxu1  ;;  %v1037_v33 = vpop.permute.xlu1 %1036 }
 0x190   : > { %837 = vperm.xlu1 %3157, %v740_v35  }
 0x193   : > { %v1047_v50 = vpop.permute.xlu1 %1046 }
 0x194   : > { %v3669_v37 = vpop.f32.mrb[10].mxu0 }
 0x195   : > { %v3671_v39 = vpop.f32.mrb[11].mxu0 }
 0x196   : > { %v2665_v41 = vpop.f32.mrb[10].mxu1 }
 0x197   : > { %852 = vperm.xlu0 %3158, %v2665_v41   ;;  %v750_v43 = vpop.f32.mrb[11].mxu1  ;;  %v1204_v41 = vadd.s32 80, %v1194_v1 }
 0x198   : > { %847 = vperm.xlu1 %3157, %v750_v43   ;;  %v1205_v43 = vadd.s32 88, %v1194_v1 }
 0x199   : > { %v3731_v8 = vcvt.s32.f32 %v1204_v41 }
 0x19b   : > { %4839 = vst [vmem:[#allocation33_spill] sm:$0xff] %v3731_v8 }
 0x19c   : > { %v3673_v45 = vpop.f32.mrb[12].mxu0 }
 0x19d   : > { %v3675_v47 = vpop.f32.mrb[13].mxu0 }
 0x19e   : > { %v2668_v49 = vpop.f32.mrb[12].mxu1 }
 0x19f   : > { %862 = vperm.xlu0 %3158, %v2668_v49   ;;  %v760_v51 = vpop.f32.mrb[13].mxu1  ;;  %v1206_v49 = vadd.s32 96, %v1194_v1 }
 0x1a0   : > { %857 = vperm.xlu1 %3157, %v760_v51   ;;  %v1207_v51 = vadd.s32 104, %v1194_v1 }
 0x1a2   : > { %v3739_v15 = vcvt.s32.f32 %v1207_v51 }
 0x1a4   : > { %v3677_v53 = vpop.f32.mrb[14].mxu0 }
 0x1a5   : > { %v3679_v55 = vpop.f32.mrb[15].mxu0 }
 0x1a6   : > { %v2671_v57 = vpop.f32.mrb[14].mxu1 }
 0x1a7   : > { %872 = vperm.xlu0 %3158, %v2671_v57   ;;  %v770_v61 = vpop.f32.mrb[15].mxu1 }
 0x1a8   : > { %867 = vperm.xlu1 %3157, %v770_v61   ;;  %v3684_v0 = vpop.f32.mrb[16].mxu0  ;;  %v1209_v61 = vadd.s32 120, %v1194_v1 }
 0x1a9   : > { %4824 = vst [vmem:[#allocation18_spill] sm:$0xff] %v3684_v0  ;;  %v3689_v3 = vpop.f32.mrb[17].mxu0 }
 0x1aa   : > { %4825 = vst [vmem:[#allocation19_spill] sm:$0xff] %v3689_v3  ;;  %v2718_v4 = vpop.f32.mrb[16].mxu1 }
 0x1ab   : > { %1061 = vperm.xlu0 %3158, %v319_v63   ;;  %v3693_v9 = vadd.f32 %v2718_v4, %v1032_v58  ;;  %v1154_v10 = vpop.f32.mrb[17].mxu1  ;;  %v3707_v4 = vcvt.s32.f32 %v1195_v6  ;;  %v3719_v58 = vcvt.s32.f32 %v1199_v14  ;;  %v3727_v6 = vcvt.s32.f32 %v1202_v26 }
 0x1ac   : > { %1056 = vperm.xlu1 %3157, %v318_v2   ;;  %v3695_v19 = vadd.f32 %v1154_v10, %v1027_v62  ;;  %v3697_v22 = vpop.f32.mrb[18].mxu0  ;;  %v3703_v62 = vcvt.s32.f32 %v1194_v1  ;;  %v3709_v10 = vcvt.s32.f32 %v1196_v7  ;;  %v3729_v7 = vcvt.s32.f32 %v1203_v27 }
 0x1ad   : > { %4826 = vst [vmem:[#allocation20_spill] sm:$0xff] %v3693_v9  ;;  %4828 = vst [vmem:[#allocation22_spill] sm:$0xff] %v3697_v22  ;;  %v3699_v35 = vpop.f32.mrb[19].mxu0  ;;  %v3737_v14 = vcvt.s32.f32 %v1206_v49  ;;  %v3745_v27 = vcvt.s32.f32 %v1209_v61 }
 0x1ae   : > { %4827 = vst [vmem:[#allocation21_spill] sm:$0xff] %v3695_v19  ;;  %4829 = vst [vmem:[#allocation23_spill] sm:$0xff] %v3699_v35  ;;  %v2721_v57 = vpop.f32.mrb[18].mxu1 }
 0x1af   : > { %v3705_v63 = vadd.f32 %v2721_v57, %v1042_v18  ;;  %v1164_v2 = vpop.f32.mrb[19].mxu1  ;;  %4831 = vst [vmem:[#allocation25_spill] sm:$0xff] %v3707_v4  ;;  %4832 = vst [vmem:[#allocation26_spill] sm:$0xff] %v3709_v10  ;;  %v3725_v18 = vcvt.s32.f32 %v1201_v23 }
 0x1b0   : > { %v3713_v59 = vadd.f32 %v1164_v2, %v1037_v33  ;;  %v3715_v56 = vpop.f32.mrb[20].mxu0  ;;  %4837 = vst [vmem:[#allocation31_spill] sm:$0xff] %v3727_v6  ;;  %4838 = vst [vmem:[#allocation32_spill] sm:$0xff] %v3729_v7  ;;  %v1052_v33 = vpop.permute.xlu0 %1051  ;;  %v3735_v2 = vcvt.s32.f32 %v1205_v43 }
 0x1b1   : > { %4830 = vst [vmem:[#allocation24_spill] sm:$0xff] %v3705_v63  ;;  %4835 = vst [vmem:[#allocation29_spill] sm:$0xff] %v3715_v56  ;;  %v3723_v1 = vpop.f32.mrb[21].mxu0 }
 0x1b2   : > { %4834 = vst [vmem:[#allocation28_spill] sm:$0xff] %v3713_v59  ;;  %4836 = vst [vmem:[#allocation30_spill] sm:$0xff] %v3723_v1  ;;  %v2724_v57 = vpop.f32.mrb[20].mxu1  ;;  %v788_v59 = vmul.f32 2.0, %v3665_v29 }
 0x1b3   : > { %4840 = vst [vmem:[#allocation34_spill] sm:$0xff] %v3735_v2  ;;  %4841 = vst [vmem:[#allocation35_spill] sm:$0xff] %v3737_v14  ;;  %v3741_v23 = vadd.f32 %v2724_v57, %v1052_v33  ;;  %v1174_v26 = vpop.f32.mrb[21].mxu1  ;;  %v3759_v33 = vmul.f32 2.0, %v3651_v13  ;;  %v3777_v13 = vmul.f32 2.0, %v3655_v17  ;;  %v783_v57 = vmul.f32 2.0, %v3659_v21 }
 0x1b4   : > { %v3747_v41 = vadd.f32 %v1174_v26, %v1047_v50  ;;  %v3749_v46 = vpop.f32.mrb[22].mxu0  ;;  %v3770_v26 = vmul.f32 2.0, %v3653_v16 }
 0x1b5   : > { %4842 = vst [vmem:[#allocation36_spill] sm:$0xff] %v3741_v23  ;;  %4844 = vst [vmem:[#allocation38_spill] sm:$0xff] %v3749_v46  ;;  %v3751_v44 = vpop.f32.mrb[23].mxu0 }
 0x1b6   : > { %4843 = vst [vmem:[#allocation37_spill] sm:$0xff] %v3747_v41  ;;  %4845 = vst [vmem:[#allocation39_spill] sm:$0xff] %v3751_v44  ;;  %v2727_v43 = vpop.f32.mrb[22].mxu1 }
 0x1b7   : > { %v1184_v51 = vpop.f32.mrb[23].mxu1 }
 0x1ee   : > { %v3761_v60 = vpop.permute.xlu1 %802 }
 0x1ef   : > { %v3765_v61 = vpop.permute.xlu0 %797 }
 0x1f6   : > { %v3772_v49 = vpop.permute.xlu1 %812 }
 0x1fa   : > { %v3779_v42 = vpop.permute.xlu1 %807 }
 0x1fb   : > { %v877_v50 = vsub.f32 %v3777_v13, %v3779_v42   ;;  %v787_v42 = vmul.f32 2.0, %v3667_v31 }
 0x1fe   : > { %v823_v38 = vpop.permute.xlu0 %822 }
 0x1ff   : > { %v880_v16 = vsub.f32 %v784_v40, %v823_v38   ;;  %v818_v36 = vpop.permute.xlu1 %817  ;;  %v790_v38 = vmul.f32 2.0, %v3669_v37 }
 0x200   : > { %v879_v34 = vsub.f32 %v783_v57, %v818_v36   ;;  %v789_v36 = vmul.f32 2.0, %v3671_v39 }
 0x206   : > { %v833_v30 = vpop.permute.xlu0 %832 }
 0x207   : > { %v882_v17 = vsub.f32 %v786_v32, %v833_v30   ;;  %v828_v28 = vpop.permute.xlu1 %827  ;;  %v792_v30 = vmul.f32 2.0, %v3673_v45  ;;  %v3799_v45 = vmov -inf  }
 0x208   : > { %v881_v63 = vsub.f32 %v785_v12, %v828_v28   ;;  %v791_v28 = vmul.f32 2.0, %v3675_v47  ;;  %v3801_v47 = vmov -inf  }
 0x20e   : > { %v843_v13 = vpop.permute.xlu0 %842 }
 0x20f   : > { %v884_v20 = vsub.f32 %v788_v59, %v843_v13   ;;  %v838_v23 = vpop.permute.xlu1 %837  ;;  %v794_v59 = vmul.f32 2.0, %v3677_v53  ;;  %v3807_v53 = vmov -inf  }
 0x210   : > { %v883_v21 = vsub.f32 %v787_v42, %v838_v23   ;;  %v793_v23 = vmul.f32 2.0, %v3679_v55  ;;  %v3809_v55 = vmov -inf  }
 0x216   : > { %v853_v40 = vpop.permute.xlu0 %852 }
 0x217   : > { %v886_v24 = vsub.f32 %v790_v38, %v853_v40   ;;  %v848_v57 = vpop.permute.xlu1 %847 }
 0x218   : > { %v885_v25 = vsub.f32 %v789_v36, %v848_v57   ;;  %v3803_v57 = vmov -inf  }
 0x21e   : > { %v863_v32 = vpop.permute.xlu0 %862 }
 0x21f   : > { %v888_v29 = vsub.f32 %v792_v30, %v863_v32   ;;  %v858_v12 = vpop.permute.xlu1 %857  ;;  %v3805_v30 = vmov -inf   ;;  %v3813_v32 = vmov -inf  }
 0x220   : > { %v887_v31 = vsub.f32 %v791_v28, %v858_v12   ;;  %v3811_v28 = vmov -inf  }
 0x226   : > { %v873_v42 = vpop.permute.xlu0 %872 }
 0x227   : > { %v890_v37 = vsub.f32 %v794_v59, %v873_v42   ;;  %v868_v13 = vpop.permute.xlu1 %867 }
 0x228   : > { %v889_v39 = vsub.f32 %v793_v23, %v868_v13  }
 0x22a   : > { %v1062_v9 = vpop.permute.xlu0 %1061 }
 0x22b   : > { %v3795_v38 = vadd.f32 %v2727_v43, %v1062_v9  ;;  %v1057_v36 = vpop.permute.xlu1 %1056  ;;  %v4848_v9 = vsub.f32 %v3770_v26, %v3772_v49   ;;  %v4849_v43 = vsub.f32 %v3756_v11, %v3761_v60  }
 0x22c   : > { %v3797_v40 = vadd.f32 %v1184_v51, %v1057_v36  ;;  %v4850_v51 = vsub.f32 %v3759_v33, %v3765_v61  }
 0x22d   : > { %4846 = vst [vmem:[#allocation40_spill] sm:$0xff] %v3795_v38 }
 0x22e   : > { %4847 = vst [vmem:[#allocation41_spill] sm:$0xff] %v3797_v40 }
 0x22f LB: >> { %v4851_v14 = vld [vmem:[#allocation35_spill] sm:$0xff]  ;;  %v4852_v10 = vld [vmem:[#allocation26_spill] sm:$0xff]  ;;  %v4853_v8 = vld [vmem:[#allocation33_spill] sm:$0xff]  ;;  %4859 = vst [vmem:[#allocation42_spill] sm:$0xff] %v3285_v45  ;;  %v1256_v11 = vmax.f32 %v3377_v51, %v3361_v34  ;;  %v1257_v49 = vmax.f32 %v3373_v43, %v3357_v16  ;;  %v1258_v33 = vmax.f32 %v3369_v50, %v3353_v63  ;;  %v1259_v60 = vmax.f32 %v3365_v9, %v3349_v17  ;;  %s1231_s28 = sadd.s32 1, %s3381_s28   ;;  %v3313_v32 = vphi %v3813_v32, %v4940_v32   ;;  %v3309_v28 = vphi %v3811_v28, %v4939_v28   ;;  %v3305_v55 = vphi %v3809_v55, %v4938_v55   ;;  %v3301_v53 = vphi %v3807_v53, %v4937_v53   ;;  %v3297_v30 = vphi %v3805_v30, %v4936_v30   ;;  %v3293_v57 = vphi %v3803_v57, %v4935_v57   ;;  %v3289_v47 = vphi %v3801_v47, %v4934_v47   ;;  %v3285_v45 = vphi %v3799_v45, %v4933_v45   ;;  %s3381_s28 = sphi %s3856_s28, %s1231_s28   ;;  %v3377_v51 = vphi %v4850_v51, %v4949_v51   ;;  %v3373_v43 = vphi %v4849_v43, %v4948_v43   ;;  %v3369_v50 = vphi %v877_v50, %v4947_v50   ;;  %v3365_v9 = vphi %v4848_v9, %v4946_v9   ;;  %v3361_v34 = vphi %v879_v34, %v4945_v34   ;;  %v3357_v16 = vphi %v880_v16, %v4944_v16   ;;  %v3353_v63 = vphi %v881_v63, %v4943_v63   ;;  %v3349_v17 = vphi %v882_v17, %v4942_v17   ;;  %v3345_v21 = vphi %v883_v21, %v4941_v21   ;;  %v3341_v20 = vphi %v884_v20, %v4295_v20   ;;  %v3337_v25 = vphi %v885_v25, %v4303_v25   ;;  %v3333_v24 = vphi %v886_v24, %v4309_v24   ;;  %v3329_v31 = vphi %v887_v31, %v4323_v31   ;;  %v3325_v29 = vphi %v888_v29, %v4329_v29   ;;  %v3321_v39 = vphi %v889_v39, %v4337_v39   ;;  %v3317_v37 = vphi %v890_v37, %v4355_v37  }
 0x230   : >> { %v4854_v7 = vld [vmem:[#allocation32_spill] sm:$0xff]  ;;  %v4855_v6 = vld [vmem:[#allocation31_spill] sm:$0xff]  ;;  %v4857_v4 = vld [vmem:[#allocation25_spill] sm:$0xff]  ;;  %4860 = vst [vmem:[#allocation43_spill] sm:$0xff] %v3289_v47  ;;  %p4488_p5 = scmp.ge.s32.totalorder %s1231_s28, 4  }
 0x231   : >> { %v4856_v5 = vld [vmem:[#allocation27_spill] sm:$0xff]  ;;  %v4858_v2 = vld [vmem:[#allocation34_spill] sm:$0xff]  ;;  %4861 = vst [vmem:[#allocation44_spill] sm:$0xff] %v3293_v57  ;;  %4862 = vst [vmem:[#allocation45_spill] sm:$0xff] %v3297_v30  ;;  %v1260_v61 = vmax.f32 %v1256_v11, %v3345_v21  ;;  %v1261_v26 = vmax.f32 %v1257_v49, %v3341_v20  ;;  %v1262_v12 = vmax.f32 %v1258_v33, %v3337_v25  ;;  %v4770_v49 = vmov 0  }
 0x232   : >> { %4863 = vst [vmem:[#allocation46_spill] sm:$0xff] %v3301_v53  ;;  %4864 = vst [vmem:[#allocation47_spill] sm:$0xff] %v3305_v55  ;;  %v1263_v59 = vmax.f32 %v1259_v60, %v3333_v24  ;;  %1580 = vmatprep.mubr.bf16.mxu0 %v4770_v49  ;;  %1600 = vmatprep.mubr.bf16.mxu1 %v4770_v49 }
 0x233   : >> { %4865 = vst [vmem:[#allocation48_spill] sm:$0xff] %v3309_v28  ;;  %4866 = vst [vmem:[#allocation49_spill] sm:$0xff] %v3313_v32  ;;  %v1264_v23 = vmax.f32 %v1260_v61, %v3329_v31  ;;  %v1265_v42 = vmax.f32 %v1261_v26, %v3325_v29  ;;  %v1266_v13 = vmax.f32 %v1262_v12, %v3321_v39 }
 0x234   : >> { %v1267_v36 = vmax.f32 %v1263_v59, %v3317_v37 }
 0x235   : >> { %v1268_v45 = vmax.f32 %v1264_v23, %v1265_v42 }
 0x236   : >> { %v1269_v53 = vmax.f32 %v1266_v13, %v1267_v36 }
 0x238   : >> { %v1270_v47 = vmax.f32 %v1268_v45, %v1269_v53 }
 0x23a   : >> { %v1271_v55 = vrot.slane %v1270_v47, 4 }
 0x23c   : >> { %v1272_v38 = vmax.f32 %v1270_v47, %v1271_v55 }
 0x23e   : >> { %v1273_v11 = vrot.slane %v1272_v38, 2 }
 0x240   : >> { %v1274_v57 = vmax.f32 %v1272_v38, %v1273_v11 }
 0x242   : >> { %v1275_v33 = vrot.slane %v1274_v57, 1 }
 0x244   : >> { %v1276_v60 = vmax.f32 %v1274_v57, %v1275_v33 }
 0x246   : >> { %vm1277_vm1 = vcmp.eq.f32.partialorder %v3377_v51, %v1276_v60  ;;  %vm1278_vm2 = vcmp.eq.f32.partialorder %v3373_v43, %v1276_v60  ;;  %vm1279_vm3 = vcmp.eq.f32.partialorder %v3369_v50, %v1276_v60  ;;  %vm1280_vm4 = vcmp.eq.f32.partialorder %v3365_v9, %v1276_v60 }
 0x247   : >> { %vm1281_vm5 = vcmp.eq.f32.partialorder %v3361_v34, %v1276_v60  ;;  %vm1282_vm6 = vcmp.eq.f32.partialorder %v3357_v16, %v1276_v60  ;;  %vm1283_vm7 = vcmp.eq.f32.partialorder %v3353_v63, %v1276_v60  ;;  %vm1284_vm8 = vcmp.eq.f32.partialorder %v3349_v17, %v1276_v60 }
 0x248   : >> { %vm1285_vm9 = vcmp.eq.f32.partialorder %v3345_v21, %v1276_v60  ;;  %vm1286_vm10 = vcmp.eq.f32.partialorder %v3341_v20, %v1276_v60  ;;  %vm1287_vm11 = vcmp.eq.f32.partialorder %v3337_v25, %v1276_v60  ;;  %vm1288_vm12 = vcmp.eq.f32.partialorder %v3333_v24, %v1276_v60 }
 0x249   : >> { %v1293_v38 = vsel %vm1277_vm1, %v3703_v62, 128.0  ;;  %v1294_v45 = vsel %vm1278_vm2, %v4857_v4, 128.0  ;;  %v1295_v47 = vsel %vm1279_vm3, %v4852_v10, 128.0  ;;  %v1296_v57 = vsel %vm1280_vm4, %v4856_v5, 128.0 }
 0x24a   : >> { %v1297_v53 = vsel %vm1281_vm5, %v3717_v54, 128.0  ;;  %v1298_v55 = vsel %vm1282_vm6, %v3719_v58, 128.0  ;;  %v1299_v61 = vsel %vm1283_vm7, %v3721_v52, 128.0  ;;  %v1300_v26 = vsel %vm1284_vm8, %v3725_v18, 128.0 }
 0x24b   : >> { %vm1289_vm13 = vcmp.eq.f32.partialorder %v3329_v31, %v1276_v60  ;;  %vm1290_vm14 = vcmp.eq.f32.partialorder %v3325_v29, %v1276_v60  ;;  %vm1291_vm15 = vcmp.eq.f32.partialorder %v3321_v39, %v1276_v60  ;;  %vm1292_vm1 = vcmp.eq.f32.partialorder %v3317_v37, %v1276_v60 }
 0x24c   : >> { %v1301_v12 = vsel %vm1285_vm9, %v4855_v6, 128.0  ;;  %v1302_v59 = vsel %vm1286_vm10, %v4854_v7, 128.0  ;;  %v1303_v23 = vsel %vm1287_vm11, %v4853_v8, 128.0  ;;  %v1304_v42 = vsel %vm1288_vm12, %v4858_v2, 128.0 }
 0x24d   : >> { %v1309_v13 = vmin.f32 %v1293_v38, %v1297_v53  ;;  %v1310_v36 = vmin.f32 %v1294_v45, %v1298_v55  ;;  %v1311_v11 = vmin.f32 %v1295_v47, %v1299_v61  ;;  %v1312_v33 = vmin.f32 %v1296_v57, %v1300_v26 }
 0x24e   : >> { %v1305_v49 = vsel %vm1289_vm13, %v4851_v14, 128.0  ;;  %v1306_v28 = vsel %vm1290_vm14, %v3739_v15, 128.0  ;;  %v1307_v30 = vsel %vm1291_vm15, %v3743_v48, 128.0  ;;  %v1308_v32 = vsel %vm1292_vm1, %v3745_v27, 128.0 }
 0x24f   : >> { %v1313_v40 = vmin.f32 %v1309_v13, %v1301_v12  ;;  %v1314_v41 = vmin.f32 %v1310_v36, %v1302_v59  ;;  %v1315_v19 = vmin.f32 %v1311_v11, %v1303_v23  ;;  %v1316_v44 = vmin.f32 %v1312_v33, %v1304_v42 }
 0x251   : >> { %v1317_v46 = vmin.f32 %v1313_v40, %v1305_v49  ;;  %v1318_v35 = vmin.f32 %v1314_v41, %v1306_v28  ;;  %v1319_v60 = vmin.f32 %v1315_v19, %v1307_v30  ;;  %v1320_v22 = vmin.f32 %v1316_v44, %v1308_v32 }
 0x252   : >> { %v4871_v32 = vmov 0 }
 0x253   : >> { %v1321_v38 = vmin.f32 %v1317_v46, %v1318_v35  ;;  %v1322_v45 = vmin.f32 %v1319_v60, %v1320_v22 }
 0x255   : >> { %v1323_v47 = vmin.f32 %v1321_v38, %v1322_v45 }
 0x257   : >> { %v1324_v57 = vrot.slane %v1323_v47, 4 }
 0x259   : >> { %v1325_v53 = vmin.f32 %v1323_v47, %v1324_v57 }
 0x25b   : >> { %v1326_v55 = vrot.slane %v1325_v53, 2 }
 0x25d   : >> { %v1327_v61 = vmin.f32 %v1325_v53, %v1326_v55 }
 0x25f   : >> { %v1328_v26 = vrot.slane %v1327_v61, 1 }
 0x261   : >> { %v3991_v1 = vmin.f32 %v1327_v61, %v1328_v26 }
 0x263   : >> { %vm4790_vm2 = vcmp.eq.f32.partialorder %v3703_v62, %v3991_v1  ;;  %vm4789_vm3 = vcmp.eq.f32.partialorder %v4857_v4, %v3991_v1  ;;  %vm4788_vm4 = vcmp.eq.f32.partialorder %v4852_v10, %v3991_v1  ;;  %vm4787_vm5 = vcmp.eq.f32.partialorder %v4856_v5, %v3991_v1 }
 0x264   : >> { %vm4786_vm6 = vcmp.eq.f32.partialorder %v3717_v54, %v3991_v1  ;;  %vm4785_vm7 = vcmp.eq.f32.partialorder %v3719_v58, %v3991_v1  ;;  %vm4784_vm8 = vcmp.eq.f32.partialorder %v3721_v52, %v3991_v1  ;;  %vm4781_vm9 = vcmp.eq.f32.partialorder %v3725_v18, %v3991_v1 }
 0x265   : >> { %vm4782_vm10 = vcmp.eq.f32.partialorder %v4855_v6, %v3991_v1  ;;  %vm4783_vm11 = vcmp.eq.f32.partialorder %v4854_v7, %v3991_v1  ;;  %vm1340_vm12 = vcmp.eq.f32.partialorder %v4853_v8, %v3991_v1  ;;  %vm1341_vm13 = vcmp.eq.f32.partialorder %v4858_v2, %v3991_v1 }
 0x266   : >> { %v4021_v44 = vsel %vm4790_vm2, -inf, %v3377_v51  ;;  %v4027_v46 = vsel %vm4789_vm3, -inf, %v3373_v43  ;;  %v4033_v19 = vsel %vm4788_vm4, -inf, %v3369_v50  ;;  %v4039_v22 = vsel %vm4787_vm5, -inf, %v3365_v9 }
 0x267   : >> { %v4045_v35 = vsel %vm4786_vm6, -inf, %v3361_v34  ;;  %v4051_v41 = vsel %vm4785_vm7, -inf, %v3357_v16  ;;  %v4057_v50 = vsel %vm4784_vm8, -inf, %v3353_v63  ;;  %v4063_v40 = vsel %vm4781_vm9, -inf, %v3349_v17  ;;  %vm4079_vm9 = vmpackc.low %vm1341_vm13, %vm1340_vm12 }
 0x268   : >> { %vm1342_vm14 = vcmp.eq.f32.partialorder %v4851_v14, %v3991_v1  ;;  %vm1343_vm15 = vcmp.eq.f32.partialorder %v3739_v15, %v3991_v1  ;;  %vm1344_vm1 = vcmp.eq.f32.partialorder %v3743_v48, %v3991_v1  ;;  %vm1345_vm0 = vcmp.eq.f32.partialorder %v3745_v27, %v3991_v1 }
 0x269   : >> { %v4087_v63 = vsel %vm4782_vm10, -inf, %v3345_v21  ;;  %v4093_v16 = vsel %vm4783_vm11, -inf, %v3341_v20  ;;  %v4099_v17 = vsel %vm1340_vm12, -inf, %v3337_v25  ;;  %v4105_v30 = vsel %vm1341_vm13, -inf, %v3333_v24  ;;  %vm4110_vm10 = vmpackc.low %vm1343_vm15, %vm1342_vm14  ;;  %v4899_v21 = vld [vmem:[#allocation22_spill] sm:$0xff] }
 0x26a   : >> { %v1362_v20 = vmax.f32 %v4021_v44, %v4045_v35  ;;  %v1363_v25 = vmax.f32 %v4027_v46, %v4051_v41  ;;  %v1364_v28 = vmax.f32 %v4033_v19, %v4057_v50  ;;  %v1365_v24 = vmax.f32 %v4039_v22, %v4063_v40  ;;  %vm4122_vm12 = vmpackc.low %vm1345_vm0, %vm1344_vm1 }
 0x26b   : >> { %v4872_v32 = vsel %vm4122_vm12, 4294967295, %v4871_v32  ;;  %v4130_v9 = vsel %vm1342_vm14, -inf, %v3329_v31  ;;  %v4133_v43 = vsel %vm1343_vm15, -inf, %v3325_v29  ;;  %v4136_v51 = vsel %vm1344_vm1, -inf, %v3321_v39 }
 0x26c   : >> { %4873 = vst [vmem:[#allocation50_spill] sm:$0xff] %v4872_v32  ;;  %v4139_v49 = vsel %vm1345_vm0, -inf, %v3317_v37  ;;  %v1366_v12 = vmax.f32 %v1362_v20, %v4087_v63  ;;  %v1367_v59 = vmax.f32 %v1363_v25, %v4093_v16  ;;  %v1368_v23 = vmax.f32 %v1364_v28, %v4099_v17 }
 0x26d   : >> { %v1369_v42 = vmax.f32 %v1365_v24, %v4105_v30 }
 0x26e   : >> { %v1370_v31 = vmax.f32 %v1366_v12, %v4130_v9  ;;  %v1371_v13 = vmax.f32 %v1367_v59, %v4133_v43  ;;  %v1372_v29 = vmax.f32 %v1368_v23, %v4136_v51 }
 0x26f   : >> { %v1373_v39 = vmax.f32 %v1369_v42, %v4139_v49 }
 0x270   : >> { %v1374_v36 = vmax.f32 %v1370_v31, %v1371_v13 }
 0x271   : >> { %v1375_v11 = vmax.f32 %v1372_v29, %v1373_v39 }
 0x273   : >> { %v1376_v37 = vmax.f32 %v1374_v36, %v1375_v11 }
 0x275   : >> { %v1377_v33 = vrot.slane %v1376_v37, 4 }
 0x277   : >> { %v1378_v60 = vmax.f32 %v1376_v37, %v1377_v33 }
 0x279   : >> { %v1379_v38 = vrot.slane %v1378_v60, 2 }
 0x27b   : >> { %v1380_v45 = vmax.f32 %v1378_v60, %v1379_v38 }
 0x27d   : >> { %v1381_v47 = vrot.slane %v1380_v45, 1 }
 0x27f   : >> { %v1382_v57 = vmax.f32 %v1380_v45, %v1381_v47 }
 0x281   : >> { %vm1383_vm0 = vcmp.eq.f32.partialorder %v4021_v44, %v1382_v57  ;;  %vm1384_vm13 = vcmp.eq.f32.partialorder %v4027_v46, %v1382_v57  ;;  %vm1385_vm14 = vcmp.eq.f32.partialorder %v4033_v19, %v1382_v57  ;;  %vm1386_vm15 = vcmp.eq.f32.partialorder %v4039_v22, %v1382_v57 }
 0x282   : >> { %vm1387_vm1 = vcmp.eq.f32.partialorder %v4045_v35, %v1382_v57  ;;  %vm1388_vm11 = vcmp.eq.f32.partialorder %v4051_v41, %v1382_v57  ;;  %vm1389_vm8 = vcmp.eq.f32.partialorder %v4057_v50, %v1382_v57  ;;  %vm1390_vm7 = vcmp.eq.f32.partialorder %v4063_v40, %v1382_v57 }
 0x283   : >> { %vm1391_vm6 = vcmp.eq.f32.partialorder %v4087_v63, %v1382_v57  ;;  %vm1392_vm5 = vcmp.eq.f32.partialorder %v4093_v16, %v1382_v57  ;;  %vm1393_vm4 = vcmp.eq.f32.partialorder %v4099_v17, %v1382_v57  ;;  %v1399_v53 = vsel %vm1383_vm0, %v3703_v62, 128.0 }
 0x284   : >> { %v1400_v55 = vsel %vm1384_vm13, %v4857_v4, 128.0  ;;  %v1401_v61 = vsel %vm1385_vm14, %v4852_v10, 128.0  ;;  %v1402_v26 = vsel %vm1386_vm15, %v4856_v5, 128.0  ;;  %v1403_v20 = vsel %vm1387_vm1, %v3717_v54, 128.0 }
 0x285   : >> { %v1404_v25 = vsel %vm1388_vm11, %v3719_v58, 128.0  ;;  %v1405_v28 = vsel %vm1389_vm8, %v3721_v52, 128.0  ;;  %v1406_v24 = vsel %vm1390_vm7, %v3725_v18, 128.0  ;;  %vm1395_vm2 = vcmp.eq.f32.partialorder %v4130_v9, %v1382_v57 }
 0x286   : >> { %vm1396_vm3 = vcmp.eq.f32.partialorder %v4133_v43, %v1382_v57  ;;  %vm1397_vm0 = vcmp.eq.f32.partialorder %v4136_v51, %v1382_v57  ;;  %vm1398_vm13 = vcmp.eq.f32.partialorder %v4139_v49, %v1382_v57  ;;  %v1407_v12 = vsel %vm1391_vm6, %v4855_v6, 128.0 }
 0x287   : >> { %v1408_v59 = vsel %vm1392_vm5, %v4854_v7, 128.0  ;;  %v1409_v23 = vsel %vm1393_vm4, %v4853_v8, 128.0  ;;  %vm4874_vm7 = vcmp.eq.f32.partialorder %v4105_v30, %v1382_v57  ;;  %v1415_v31 = vmin.f32 %v1399_v53, %v1403_v20 }
 0x288   : >> { %v1410_v42 = vsel %vm4874_vm7, %v4858_v2, 128.0  ;;  %v1416_v13 = vmin.f32 %v1400_v55, %v1404_v25  ;;  %v1417_v29 = vmin.f32 %v1401_v61, %v1405_v28  ;;  %v1418_v39 = vmin.f32 %v1402_v26, %v1406_v24 }
 0x289   : >> { %v1411_v36 = vsel %vm1395_vm2, %v4851_v14, 128.0  ;;  %v1412_v11 = vsel %vm1396_vm3, %v3739_v15, 128.0  ;;  %v1413_v37 = vsel %vm1397_vm0, %v3743_v48, 128.0  ;;  %v1414_v33 = vsel %vm1398_vm13, %v3745_v27, 128.0 }
 0x28a   : >> { %v1419_v60 = vmin.f32 %v1415_v31, %v1407_v12  ;;  %v1420_v38 = vmin.f32 %v1416_v13, %v1408_v59  ;;  %v1421_v45 = vmin.f32 %v1417_v29, %v1409_v23  ;;  %v1422_v47 = vmin.f32 %v1418_v39, %v1410_v42 }
 0x28b   : >> { %vm4875_vm4 = vcmp.eq.f32.partialorder %v3703_v62, %v3991_v1  ;;  %vm4876_vm5 = vcmp.eq.f32.partialorder %v4857_v4, %v3991_v1  ;;  %v3386_v23 = vmov 1.0|1.0  }
 0x28c   : >> { %v1423_v56 = vmin.f32 %v1419_v60, %v1411_v36  ;;  %v1424_v3 = vmin.f32 %v1420_v38, %v1412_v11  ;;  %v1425_v57 = vmin.f32 %v1421_v45, %v1413_v37  ;;  %v1426_v0 = vmin.f32 %v1422_v47, %v1414_v33  ;;  %vm4201_vm6 = vmpackc.low %vm4876_vm5, %vm4875_vm4  ;;  %v4905_v36 = vld [vmem:[#allocation21_spill] sm:$0xff] }
 0x28d   : >> { %v4906_v33 = vld [vmem:[#allocation37_spill] sm:$0xff] }
 0x28e   : >> { %v1427_v53 = vmin.f32 %v1423_v56, %v1424_v3  ;;  %v1428_v55 = vmin.f32 %v1425_v57, %v1426_v0 }
 0x290   : >> { %v1429_v61 = vmin.f32 %v1427_v53, %v1428_v55 }
 0x292   : >> { %v1430_v26 = vrot.slane %v1429_v61, 4 }
 0x294   : >> { %v1431_v20 = vmin.f32 %v1429_v61, %v1430_v26 }
 0x296   : >> { %v1432_v25 = vrot.slane %v1431_v20, 2 }
 0x298   : >> { %v1433_v28 = vmin.f32 %v1431_v20, %v1432_v25 }
 0x29a   : >> { %v1434_v24 = vrot.slane %v1433_v28, 1 }
 0x29c   : >> { %v4189_v32 = vmin.f32 %v1433_v28, %v1434_v24  ;;  %v4907_v28 = vld [vmem:[#allocation20_spill] sm:$0xff] }
 0x29d   : >> { %v4908_v56 = vmov %v4907_v28 }
 0x29e   : >> { %vm1436_vm2 = vcmp.eq.f32.partialorder %v3703_v62, %v4189_v32  ;;  %vm1437_vm3 = vcmp.eq.f32.partialorder %v4857_v4, %v4189_v32  ;;  %vm1438_vm8 = vcmp.eq.f32.partialorder %v4852_v10, %v4189_v32  ;;  %vm1439_vm11 = vcmp.eq.f32.partialorder %v4856_v5, %v4189_v32 }
 0x29f   : >> { %v4210_v0 = vsel %vm1436_vm2, -inf, %v4021_v44   ;;  %v4213_v3 = vsel %vm1437_vm3, -inf, %v4027_v46   ;;  %vm2396_vm14 = vmpackc.low %vm1437_vm3, %vm1436_vm2  ;;  %v4216_v12 = vsel %vm1438_vm8, -inf, %v4033_v19   ;;  %v4219_v59 = vsel %vm1439_vm11, -inf, %v4039_v22  }
 0x2a0   : >> { %2397 = vmatprep.subr.msk.bf16.mxu0 %vm2396_vm14, %v3386_v23  ;;  %2896 = vmatprep.subr.msk.bf16.mxu1 %vm2396_vm14, %v3386_v23  ;;  %vm2400_vm15 = vmpackc.low %vm1439_vm11, %vm1438_vm8  ;;  %vm1440_vm1 = vcmp.eq.f32.partialorder %v3717_v54, %v4189_v32  ;;  %vm1441_vm0 = vcmp.eq.f32.partialorder %v3719_v58, %v4189_v32  ;;  %vm1442_vm13 = vcmp.eq.f32.partialorder %v3721_v52, %v4189_v32 }
 0x2a1   : >> { %2399 = vmatpush1.bf16.msk.msra.mxu0 %vm4201_vm6, %v3386_v23  ;;  %2904 = vmatpush1.bf16.msk.msra.mxu1 %vm4201_vm6, %v3386_v23  ;;  %v4239_v44 = vsel %vm1440_vm1, -inf, %v4045_v35   ;;  %v4245_v46 = vsel %vm1441_vm0, -inf, %v4051_v41   ;;  %vm1443_vm7 = vcmp.eq.f32.partialorder %v3725_v18, %v4189_v32  ;;  %v4253_v19 = vsel %vm1442_vm13, -inf, %v4057_v50   ;;  %vm4281_vm11 = vmpackc.low %vm1441_vm0, %vm1440_vm1  ;;  %v4892_v50 = vld [vmem:[#allocation18_spill] sm:$0xff]  ;;  %v4909_v35 = vld [vmem:[#allocation36_spill] sm:$0xff] }
 0x2a2   : >> { %2401 = vmatprep.subr.msk.bf16.mxu0 %vm2400_vm15, %v3386_v23  ;;  %2897 = vmatprep.subr.msk.bf16.mxu1 %vm2400_vm15, %v3386_v23  ;;  %vm4879_vm2 = vcmp.eq.f32.partialorder %v4852_v10, %v3991_v1  ;;  %vm4880_vm3 = vcmp.eq.f32.partialorder %v4856_v5, %v3991_v1  ;;  %v4267_v22 = vsel %vm1443_vm7, -inf, %v4063_v40   ;;  %vm1444_vm5 = vcmp.eq.f32.partialorder %v4855_v6, %v4189_v32  ;;  %v4893_v40 = vld [vmem:[#allocation19_spill] sm:$0xff]  ;;  %v4910_v5 = vld [vmem:[#allocation28_spill] sm:$0xff] }
 0x2a3   : >> { %vm2402_vm4 = vmpackc.low %vm4880_vm3, %vm4879_vm2  ;;  %vm1445_vm6 = vcmp.eq.f32.partialorder %v4854_v7, %v4189_v32  ;;  %vm1446_vm8 = vcmp.eq.f32.partialorder %v4853_v8, %v4189_v32  ;;  %v4289_v41 = vsel %vm1444_vm5, -inf, %v4087_v63   ;;  %vm1447_vm14 = vcmp.eq.f32.partialorder %v4858_v2, %v4189_v32  ;;  %v4895_v63 = vld [vmem:[#allocation29_spill] sm:$0xff] }
 0x2a4   : >> { %v4295_v20 = vsel %vm1445_vm6, -inf, %v4093_v16   ;;  %v4303_v25 = vsel %vm1446_vm8, -inf, %v4099_v17   ;;  %v4309_v24 = vsel %vm1447_vm14, -inf, %v4105_v30   ;;  %vm1448_vm15 = vcmp.eq.f32.partialorder %v4851_v14, %v4189_v32  ;;  %v4896_v16 = vld [vmem:[#allocation30_spill] sm:$0xff] }
 0x2a5   : >> { %vm4796_vm1 = vcmp.eq.f32.partialorder %v3739_v15, %v4189_v32  ;;  %vm1450_vm0 = vcmp.eq.f32.partialorder %v3743_v48, %v4189_v32  ;;  %2403 = vmatpush1.bf16.msk.msra.mxu0 %vm2402_vm4, %v3386_v23  ;;  %2905 = vmatpush1.bf16.msk.msra.mxu1 %vm2402_vm4, %v3386_v23  ;;  %v4323_v31 = vsel %vm1448_vm15, -inf, %v4130_v9   ;;  %vm4797_vm2 = vcmp.eq.f32.partialorder %v3745_v27, %v4189_v32  ;;  %v1686_v48 = vld [vmem:[%s4745_s4 + $0x8] sm:$0xff] (%p4488_p5)  ;;  %v1699_v24 = vld [vmem:[%s4746_s5 + $0x30] sm:$0xff] (%p4488_p5) }
 0x2a6   : >> { %v4329_v29 = vsel %vm4796_vm1, -inf, %v4133_v43   ;;  %v4337_v39 = vsel %vm1450_vm0, -inf, %v4136_v51   ;;  %2405 = vmatprep.subr.msk.bf16.mxu0 %vm4281_vm11, %v3386_v23  ;;  %2898 = vmatprep.subr.msk.bf16.mxu1 %vm4281_vm11, %v3386_v23  ;;  %vm4883_vm3 = vcmp.eq.f32.partialorder %v3717_v54, %v3991_v1  ;;  %vm4884_vm4 = vcmp.eq.f32.partialorder %v3719_v58, %v3991_v1  ;;  %vm2408_vm11 = vmpackc.low %vm1443_vm7, %vm1442_vm13  ;;  %v4902_v43 = vld [vmem:[#allocation38_spill] sm:$0xff]  ;;  %v4903_v51 = vld [vmem:[#allocation39_spill] sm:$0xff] }
 0x2a7   : >> { %vm2406_vm1 = vmpackc.low %vm4884_vm4, %vm4883_vm3  ;;  %v4355_v37 = vsel %vm4797_vm2, -inf, %v4139_v49   ;;  %vm4885_vm3 = vcmp.eq.f32.partialorder %v3721_v52, %v3991_v1  ;;  %vm4886_vm4 = vcmp.eq.f32.partialorder %v3725_v18, %v3991_v1  ;;  %vm4887_vm7 = vcmp.eq.f32.partialorder %v4855_v6, %v3991_v1  ;;  %v4911_v6 = vld [vmem:[#allocation41_spill] sm:$0xff]  ;;  %v1695_v52 = vld [vmem:[%s4746_s5 + $0x10] sm:$0xff] (%p4488_p5) }
 0x2a8   : >> { %vm2410_vm2 = vmpackc.low %vm4886_vm4, %vm4885_vm3  ;;  %v4894_v34 = vpack.c.bf16 %v4892_v50, %v4893_v40  ;;  %v4897_v17 = vpack.c.bf16 %v4895_v63, %v4896_v16  ;;  %v4898_v30 = vmov 0   ;;  %v4904_v49 = vpack.c.bf16 %v4902_v43, %v4903_v51  ;;  %v1696_v54 = vld [vmem:[%s4746_s5 + $0x18] sm:$0xff] (%p4488_p5)  ;;  %v1687_v18 = vld [vmem:[%s4745_s4 + $0x10] sm:$0xff] (%p4488_p5) }
 0x2a9   : >> { %2407 = vmatpush1.bf16.msk.msra.mxu0 %vm2406_vm1, %v3386_v23  ;;  %2906 = vmatpush1.bf16.msk.msra.mxu1 %vm2406_vm1, %v3386_v23  ;;  %vm2412_vm13 = vmpackc.low %vm1445_vm6, %vm1444_vm5  ;;  %vm4888_vm1 = vcmp.eq.f32.partialorder %v4854_v7, %v3991_v1  ;;  %vm4889_vm6 = vcmp.eq.f32.partialorder %v3739_v15, %v4189_v32  ;;  %v2868_v62 = vpack.c.bf16 (%p4488_p5), %v1696_v54, %v1695_v52  ;;  %v1688_v15 = vld [vmem:[%s4745_s4 + $0x18] sm:$0xff] (%p4488_p5)  ;;  %v1698_v29 = vld [vmem:[%s4746_s5 + $0x28] sm:$0xff] (%p4488_p5) }
 0x2aa   : >> { %2409 = vmatprep.subr.msk.bf16.mxu0 %vm2408_vm11, %v3386_v23  ;;  %2899 = vmatprep.subr.msk.bf16.mxu1 %vm2408_vm11, %v3386_v23  ;;  %vm2414_vm11 = vmpackc.low %vm4888_vm1, %vm4887_vm7  ;;  %v2884_v31 = vpack.c.bf16 (%p4488_p5), %v1688_v15, %v1687_v18  ;;  %v1689_v39 = vld [vmem:[%s4745_s4 + $0x20] sm:$0xff] (%p4488_p5)  ;;  %v1690_v37 = vld [vmem:[%s4745_s4 + $0x28] sm:$0xff] (%p4488_p5) }
 0x2ab   : >> { %vm2416_vm5 = vmpackc.low %vm1447_vm14, %vm1446_vm8  ;;  %vm4890_vm8 = vcmp.eq.f32.partialorder %v3745_v27, %v4189_v32  ;;  %v4900_v32 = vld [vmem:[#allocation23_spill] sm:$0xff]  ;;  %v1697_v27 = vld [vmem:[%s4746_s5 + $0x20] sm:$0xff] (%p4488_p5)  ;;  %v2888_v25 = vpack.c.bf16 (%p4488_p5), %v1690_v37, %v1689_v39 }
 0x2ac   : >> { %vm2424_vm14 = vmpackc.low %vm4890_vm8, %vm1450_vm0  ;;  %v4901_v9 = vpack.c.bf16 %v4899_v21, %v4900_v32  ;;  %v2872_v20 = vpack.c.bf16 (%p4488_p5), %v1698_v29, %v1697_v27 }
 0x2ad   : >> { %2411 = vmatpush1.bf16.msk.msra.mxu0 %vm2410_vm2, %v3386_v23  ;;  %2907 = vmatpush1.bf16.msk.msra.mxu1 %vm2410_vm2, %v3386_v23  ;;  %vm2420_vm2 = vmpackc.low %vm4889_vm6, %vm1448_vm15 }
 0x2ae   : >> { %2413 = vmatprep.subr.msk.bf16.mxu0 %vm2412_vm13, %v3386_v23  ;;  %2900 = vmatprep.subr.msk.bf16.mxu1 %vm2412_vm13, %v3386_v23 }
 0x2b1   : >> { %2415 = vmatpush1.bf16.msk.msra.mxu0 %vm2414_vm11, %v3386_v23  ;;  %2908 = vmatpush1.bf16.msk.msra.mxu1 %vm2414_vm11, %v3386_v23 }
 0x2b2   : >> { %2417 = vmatprep.subr.msk.bf16.mxu0 %vm2416_vm5, %v3386_v23  ;;  %2901 = vmatprep.subr.msk.bf16.mxu1 %vm2416_vm5, %v3386_v23 }
 0x2b5   : >> { %2419 = vmatpush1.bf16.msk.msra.mxu0 %vm4079_vm9, %v3386_v23  ;;  %2909 = vmatpush1.bf16.msk.msra.mxu1 %vm4079_vm9, %v3386_v23  ;;  %vm4951_vm9 = vcmask (%p4488_p5), 523264  }
 0x2b6   : >> { %2421 = vmatprep.subr.msk.bf16.mxu0 %vm2420_vm2, %v3386_v23  ;;  %2902 = vmatprep.subr.msk.bf16.mxu1 %vm2420_vm2, %v3386_v23  ;;  %vm4957_vm15 = vmmov (%p4488_p5), %vm4951_vm9 }
 0x2b7   : > { %vm4959_vm0 = vmmov (%p4488_p5), %vm4951_vm9 }
 0x2b8   : > { %vm4961_vm3 = vmmov (%p4488_p5), %vm4959_vm0 }
 0x2b9   : >> { %2423 = vmatpush1.bf16.msk.msra.mxu0 %vm4110_vm10, %v3386_v23  ;;  %2910 = vmatpush1.bf16.msk.msra.mxu1 %vm4110_vm10, %v3386_v23  ;;  %vm4953_vm10 = vmmov (%p4488_p5), %vm4951_vm9 }
 0x2ba   : >> { %2425 = vmatprep.subr.msk.bf16.mxu0 %vm2424_vm14, %v3386_v23  ;;  %2903 = vmatprep.subr.msk.bf16.mxu1 %vm2424_vm14, %v3386_v23  ;;  %vm4963_vm4 = vmmov (%p4488_p5), %vm4959_vm0 }
 0x2bb   : > { %vm4965_vm13 = vmmov (%p4488_p5), %vm4959_vm0 }
 0x2bc   : > { %vm4967_vm7 = vmmov (%p4488_p5), %vm4959_vm0 }
 0x2bd   : >> { %2427 = vmatpush1.bf16.msk.msra.mxu0 %vm4122_vm12, %v3386_v23  ;;  %2911 = vmatpush1.bf16.msk.msra.mxu1 %vm4122_vm12, %v3386_v23  ;;  %vm4955_vm12 = vmmov (%p4488_p5), %vm4951_vm9 }
 0x2be   : > { %vm4969_vm1 = vmmov (%p4488_p5), %vm4959_vm0 }
 0x2bf   : > { %vm4971_vm11 = vmmov (%p4488_p5), %vm4959_vm0 }
 0x2c0   : >> { %1581 = vmatmul.mubr.bf16.vlgmr.msra.gmra.mrb[0].mxu0 %v4894_v34  ;;  %1601 = vmatmul.mubr.bf16.vlgmr.msra.gmra.mrb[0].mxu1 %v4897_v17  ;;  %vm4973_vm5 = vmmov (%p4488_p5), %vm4959_vm0 }
 0x2c1   : >> { %1590 = vmatprep.mubr.bf16.mxu0 %v4898_v30  ;;  %1610 = vmatprep.mubr.bf16.mxu1 %v4898_v30  ;;  %vm4975_vm6 = vmmov (%p4488_p5), %vm4959_vm0 }
 0x2c2   : > { %vm4977_vm2 = vmmov (%p4488_p5), %vm4959_vm0 }
 0x2c3   : > { %vm4979_vm8 = vmmov (%p4488_p5), %vm4959_vm0 }
 0x2c4   : > { %vm4981_vm14 = vmmov (%p4488_p5), %vm4959_vm0 }
 0x2c8   : >> { %1591 = vmatmul.mubr.bf16.gmra.mrb[4].mxu0 %v4901_v9  ;;  %1611 = vmatmul.mubr.bf16.gmra.mrb[4].mxu1 %v4904_v49 }
 0x393   : >> { %v1582_v42 = vpop.f32.mrb[0].mxu0  ;;  %v1602_v13 = vpop.f32.mrb[0].mxu1 }
 0x394   : >> { %v1621_v11 = vadd.f32 %v1582_v42, %v4905_v36  ;;  %v1625_v60 = vadd.f32 %v1602_v13, %v4906_v33  ;;  %v1584_v38 = vpop.f32.mrb[1].mxu0  ;;  %v1604_v45 = vpop.f32.mrb[1].mxu1 }
 0x395   : >> { %v1645_v47 = vadd.f32 %v1584_v38, %v4905_v36  ;;  %v1649_v57 = vadd.f32 %v1604_v45, %v4906_v33  ;;  %v1586_v53 = vpop.f32.mrb[2].mxu0  ;;  %v1606_v55 = vpop.f32.mrb[2].mxu1  ;;  %v4956_v36 = vld [vmem:[#allocation5_spill] sm:$0xff] (%p4488_p5)  ;;  %v4958_v33 = vld [vmem:[#allocation6_spill] sm:$0xff] (%p4488_p5) }
 0x396   : >> { %v1629_v61 = vmul.f32 0.2, %v1621_v11  ;;  %v1633_v26 = vmul.f32 0.2, %v1625_v60  ;;  %v1622_v23 = vadd.f32 %v1586_v53, %v4907_v28  ;;  %v1626_v1 = vadd.f32 %v1606_v55, %v4909_v35  ;;  %v1588_v50 = vpop.f32.mrb[3].mxu0  ;;  %v1608_v40 = vpop.f32.mrb[3].mxu1 }
 0x397   : >> { %v1653_v34 = vmul.f32 0.2, %v1645_v47  ;;  %v1657_v63 = vmul.f32 0.2, %v1649_v57  ;;  %v1646_v16 = vadd.f32 %v1588_v50, %v4908_v56  ;;  %v1650_v17 = vadd.f32 %v1608_v40, %v4909_v35  ;;  %v4962_v56 = vld [vmem:[#allocation8_spill] sm:$0xff] (%p4488_p5)  ;;  %v4964_v35 = vld [vmem:[#allocation9_spill] sm:$0xff] (%p4488_p5) }
 0x398   : >> { %v1637_v30 = vmax.f32 %v1621_v11, %v1629_v61  ;;  %v1641_v21 = vmax.f32 %v1625_v60, %v1633_v26  ;;  %v1630_v32 = vmul.f32 0.2, %v1622_v23  ;;  %v1634_v9 = vmul.f32 0.2, %v1626_v1  ;;  %v4912_v61 = vld [vmem:[#allocation49_spill] sm:$0xff] }
 0x399   : >> { %v1661_v43 = vmax.f32 %v1645_v47, %v1653_v34  ;;  %v1665_v51 = vmax.f32 %v1649_v57, %v1657_v63  ;;  %v1654_v49 = vmul.f32 0.2, %v1646_v16  ;;  %v1658_v42 = vmul.f32 0.2, %v1650_v17  ;;  %v4914_v47 = vld [vmem:[#allocation45_spill] sm:$0xff] }
 0x39a   : >> { %v1638_v13 = vmax.f32 %v1622_v23, %v1630_v32  ;;  %v1642_v38 = vmax.f32 %v1626_v1, %v1634_v9  ;;  %v4916_v9 = vld [vmem:[#allocation48_spill] sm:$0xff] }
 0x39b   : >> { %v1669_v45 = vmax.f32 %v1637_v30, %v1661_v43  ;;  %v1673_v53 = vmax.f32 %v1641_v21, %v1665_v51  ;;  %v1662_v55 = vmax.f32 %v1646_v16, %v1654_v49  ;;  %v1666_v28 = vmax.f32 %v1650_v17, %v1658_v42  ;;  %v1592_v2 = vpop.f32.mrb[4].mxu0  ;;  %v1612_v4 = vpop.f32.mrb[4].mxu1  ;;  %v4918_v43 = vld [vmem:[#allocation44_spill] sm:$0xff] }
 0x39c   : >> { %v1623_v50 = vadd.f32 %v1592_v2, %v4910_v5  ;;  %v1627_v40 = vadd.f32 %v1612_v4, %v4911_v6  ;;  %v1594_v11 = vpop.f32.mrb[5].mxu0  ;;  %v1614_v60 = vpop.f32.mrb[5].mxu1  ;;  %v4922_v51 = vld [vmem:[#allocation40_spill] sm:$0xff] }
 0x39d   : >> { %v4458_v32 = vmax.f32 %v4912_v61, %v1669_v45   ;;  %v4461_v30 = vmax.f32 %v4914_v47, %v1673_v53   ;;  %v1670_v57 = vmax.f32 %v1638_v13, %v1662_v55  ;;  %v1674_v23 = vmax.f32 %v1642_v38, %v1666_v28  ;;  %v1596_v1 = vpop.f32.mrb[6].mxu0  ;;  %v1616_v34 = vpop.f32.mrb[6].mxu1 }
 0x39e   : >> { %v1631_v63 = vmul.f32 0.2, %v1623_v50  ;;  %v1635_v16 = vmul.f32 0.2, %v1627_v40  ;;  %v1647_v17 = vadd.f32 %v1594_v11, %v4910_v5  ;;  %v1651_v2 = vadd.f32 %v1614_v60, %v4911_v6  ;;  %v1598_v21 = vpop.f32.mrb[7].mxu0  ;;  %v1618_v4 = vpop.f32.mrb[7].mxu1 }
 0x39f   : >> { %v4913_v26 = vmov %v4458_v32  ;;  %v4915_v7 = vmov %v4461_v30  ;;  %v4466_v28 = vmax.f32 %v4916_v9, %v1670_v57   ;;  %v4469_v57 = vmax.f32 %v4918_v43, %v1674_v23   ;;  %v4920_v32 = vld [vmem:[#allocation24_spill] sm:$0xff] }
 0x3a0   : >> { %v4921_v61 = vmov %v4920_v32  ;;  %v1624_v30 = vadd.f32 %v1596_v1, %v4920_v32  ;;  %v4923_v13 = vmov %v4922_v51  ;;  %v1628_v38 = vadd.f32 %v1616_v34, %v4922_v51  ;;  %v4928_v51 = vld [vmem:[#allocation46_spill] sm:$0xff]  ;;  %1701 = vxpose.xlu0.b32.start [1/8] (short) (%p4488_p5), %v4913_v26, 128 }
 0x3a1   : >> { %v4917_v49 = vmov %v4466_v28  ;;  %v4919_v42 = vmov %v4469_v57  ;;  %v1639_v45 = vmax.f32 %v1623_v50, %v1631_v63  ;;  %v1643_v53 = vmax.f32 %v1627_v40, %v1635_v16  ;;  %v4924_v50 = vld [vmem:[#allocation47_spill] sm:$0xff] }
 0x3a2   : >> { %v1655_v55 = vmul.f32 0.2, %v1647_v17  ;;  %v1659_v47 = vmul.f32 0.2, %v1651_v2  ;;  %v1632_v8 = vmul.f32 0.2, %v1624_v30  ;;  %v1648_v60 = vadd.f32 %v1598_v21, %v4921_v61 }
 0x3a3   : >> { %v1636_v11 = vmul.f32 0.2, %v1628_v38  ;;  %v1652_v5 = vadd.f32 %v1618_v4, %v4923_v13  ;;  %v4926_v63 = vld [vmem:[#allocation43_spill] sm:$0xff]  ;;  %v4980_v13 = vld [vmem:[#allocation17_spill] sm:$0xff] (%p4488_p5) }
 0x3a4   : >> { %v1663_v6 = vmax.f32 %v1647_v17, %v1655_v55  ;;  %v1667_v9 = vmax.f32 %v1651_v2, %v1659_v47  ;;  %v1640_v28 = vmax.f32 %v1624_v30, %v1632_v8  ;;  %v1656_v23 = vmul.f32 0.2, %v1648_v60  ;;  %v4930_v17 = vld [vmem:[#allocation42_spill] sm:$0xff]  ;;  %1702 = vxpose.xlu0.b32.cont [2/8] (short) (%p4488_p5), %v4917_v49, 128  ;;  %v4970_v2 = vld [vmem:[#allocation12_spill] sm:$0xff] (%p4488_p5)  ;;  %v4976_v61 = vld [vmem:[#allocation15_spill] sm:$0xff] (%p4488_p5) }
 0x3a5   : >> { %v1644_v10 = vmax.f32 %v1628_v38, %v1636_v11  ;;  %v1660_v57 = vmul.f32 0.2, %v1652_v5  ;;  %v4936_v30 = vmov %v4915_v7 }
 0x3a6   : >> { %v1671_v43 = vmax.f32 %v1639_v45, %v1663_v6  ;;  %v1675_v1 = vmax.f32 %v1643_v53, %v1667_v9  ;;  %v1664_v32 = vmax.f32 %v1648_v60, %v1656_v23  ;;  %v4946_v9 = vmov %v4219_v59  ;;  %v1685_v6 = vld [vmem:[%s4745_s4] sm:$0xff] (%p4488_p5)  ;;  %v1691_v59 = vld [vmem:[%s4745_s4 + $0x30] sm:$0xff] (%p4488_p5) }
 0x3a7   : >> { %v1668_v34 = vmax.f32 %v1652_v5, %v1660_v57  ;;  %v4935_v57 = vmov %v4919_v42  ;;  %v1693_v5 = vld [vmem:[%s4746_s5] sm:$0xff] (%p4488_p5)  ;;  %v2880_v58 = vpack.c.bf16 (%p4488_p5), %v1686_v48, %v1685_v6  ;;  %v4978_v30 = vld [vmem:[#allocation16_spill] sm:$0xff] (%p4488_p5) }
 0x3a8   : >> { %v4476_v55 = vmax.f32 %v4924_v50, %v1671_v43   ;;  %v4479_v47 = vmax.f32 %v4926_v63, %v1675_v1   ;;  %v1672_v16 = vmax.f32 %v1640_v28, %v1664_v32  ;;  %v4939_v28 = vmov %v4917_v49  ;;  %1230 = sbr.rel (!%p4488_p5) target bundleno = 559 (0x22f), region = 93  ;;  %v4972_v49 = vld [vmem:[#allocation13_spill] sm:$0xff] (%p4488_p5) }
 0x3a9   : >> { %v1676_v21 = vmax.f32 %v1644_v10, %v1668_v34  ;;  %v4940_v32 = vmov %v4913_v26  ;;  %v4943_v63 = vmov %v4253_v19  ;;  %v4945_v34 = vmov %v4239_v44  ;;  %v1694_v10 = vld [vmem:[%s4746_s5 + $0x8] sm:$0xff] (%p4488_p5)  ;;  %2881 = vmatprep.subr.bf16.mxu0 (%p4488_p5), %v2880_v58  ;;  %v1692_v44 = vld [vmem:[%s4745_s4 + $0x38] sm:$0xff] (%p4488_p5)  ;;  %v4966_v26 = vld [vmem:[#allocation10_spill] sm:$0xff] (%p4488_p5) }
 0x3aa   : >> { %v4925_v40 = vmov %v4476_v55  ;;  %v4927_v14 = vmov %v4479_v47  ;;  %v4482_v53 = vmax.f32 %v4928_v51, %v1672_v16   ;;  %v4944_v16 = vmov %v4245_v46  ;;  %2883 = vmatpush3.bf16.msra.mxu0 (%p4488_p5), %v2880_v58 }
 0x3ab   : >> { %v4485_v45 = vmax.f32 %v4930_v17, %v1676_v21   ;;  %v4934_v47 = vmov %v4927_v14  ;;  %v4938_v55 = vmov %v4925_v40  ;;  %v4941_v21 = vmov %v4289_v41  ;;  %2885 = vmatprep.subr.bf16.mxu0 (%p4488_p5), %v2884_v31  ;;  %1703 = vxpose.xlu0.b32.cont [3/8] (short) (%p4488_p5), %v4925_v40, 128  ;;  %v4954_v41 = vld [vmem:[#allocation4_spill] sm:$0xff] (%p4488_p5) }
 0x3ac   : >> { %v4929_v4 = vmov %v4482_v53  ;;  %v4942_v17 = vmov %v4267_v22  ;;  %v4947_v50 = vmov %v4216_v12  ;;  %v4948_v43 = vmov %v4213_v3  ;;  %v4950_v3 = vld [vmem:[#allocation2_spill] sm:$0xff] (%p4488_p5)  ;;  %v1700_v12 = vld [vmem:[%s4746_s5 + $0x38] sm:$0xff] (%p4488_p5)  ;;  %v4952_v22 = vld [vmem:[#allocation3_spill] sm:$0xff] (%p4488_p5) }
 0x3ad   : >> { %v4931_v8 = vmov %v4485_v45  ;;  %v4937_v53 = vmov %v4929_v4  ;;  %v4949_v51 = vmov %v4210_v0  ;;  %2784 = vmatprep.mubr.msk.f32.mxu0 (%p4488_p5), %vm4951_vm9, %v4950_v3  ;;  %v2864_v0 = vpack.c.bf16 (%p4488_p5), %v1694_v10, %v1693_v5  ;;  %vm4982_vm9 = vmmov (%p4488_p5), %vm4959_vm0 }
 0x3ae   : >> { %v4933_v45 = vmov %v4931_v8  ;;  %2887 = vmatpush3.bf16.msra.mxu0 (%p4488_p5), %v2884_v31  ;;  %v2876_v46 = vpack.c.bf16 (%p4488_p5), %v1700_v12, %v1699_v24  ;;  %v2892_v19 = vpack.c.bf16 (%p4488_p5), %v1692_v44, %v1691_v59  ;;  %v4687_v31 = vld [vmem:[%s4747_s6] ss:$0 sm:$0xff] (%p4488_p5) }
 0x3af   : > { %2865 = vmatprep.subr.bf16.mxu1 %v2864_v0  ;;  %2889 = vmatprep.subr.bf16.mxu0 %v2888_v25 }
 0x3b0   : > { %2867 = vmatpush3.bf16.msra.mxu1 %v2864_v0  ;;  %1704 = vxpose.xlu0.b32.cont [4/8] (short) %v4929_v4, 128 }
 0x3b1   : > { %2869 = vmatprep.subr.bf16.mxu1 %v2868_v62 }
 0x3b2   : > { %2891 = vmatpush3.bf16.msra.mxu0 %v2888_v25 }
 0x3b3   : > { %2893 = vmatprep.subr.bf16.mxu0 %v2892_v19 }
 0x3b4   : > { %2871 = vmatpush3.bf16.msra.mxu1 %v2868_v62  ;;  %1705 = vxpose.xlu0.b32.cont [5/8] (short) %v4915_v7, 128  ;;  %v4960_v7 = vld [vmem:[#allocation7_spill] sm:$0xff] }
 0x3b5   : > { %2873 = vmatprep.subr.bf16.mxu1 %v2872_v20 }
 0x3b6   : > { %2895 = vmatpush3.bf16.msra.mxu0 %v2892_v19 }
 0x3b8   : > { %2875 = vmatpush3.bf16.msra.mxu1 %v2872_v20  ;;  %1706 = vxpose.xlu0.b32.cont [6/8] (short) %v4919_v42, 128  ;;  %v4974_v42 = vld [vmem:[#allocation14_spill] sm:$0xff] }
 0x3b9   : > { %2877 = vmatprep.subr.bf16.mxu1 %v2876_v46  ;;  %2785 = vmatmul.mubr.msk.f32.vlgmr.msra.gmra.mrb[0].mxu0 %vm4953_vm10, %v4952_v22  ;;  %vm4983_vm10 = vmmov %vm4959_vm0 }
 0x3ba   : > { %2787 = vmatprep.mubr.msk.f32.mxu0 %vm4955_vm12, %v4954_v41  ;;  %vm4984_vm12 = vmmov %vm4959_vm0 }
 0x3bc   : > { %2879 = vmatpush3.bf16.msra.mxu1 %v2876_v46  ;;  %1707 = vxpose.xlu0.b32.cont [7/8] (short) %v4927_v14, 128  ;;  %v4968_v14 = vld [vmem:[#allocation11_spill] sm:$0xff] }
 0x3bd   : > { %2788 = vmatmul.mubr.msk.f32.gmra.mrb[2].mxu0 %vm4957_vm15, %v4956_v36  ;;  %vm4985_vm15 = vmmov %vm4959_vm0 }
 0x3be   : > { %2790 = vmatprep.mubr.msk.f32.mxu0 %vm4959_vm0, %v4958_v33 }
 0x3c0   : > { %1708 = vxpose.xlu0.b32.end [8/8] (short) %v4931_v8, 128 }
 0x3c1   : > { %2791 = vmatmul.mubr.msk.f32.gmra.mrb[4].mxu0 %vm4961_vm3, %v4960_v7  ;;  %vm4986_vm3 = vmmov %vm4959_vm0 }
 0x3c2   : > { %2793 = vmatprep.mubr.msk.f32.mxu0 %vm4963_vm4, %v4962_v56  ;;  %vm4987_vm4 = vmmov %vm4959_vm0 }
 0x3c5   : > { %2794 = vmatmul.mubr.msk.f32.gmra.mrb[6].mxu0 %vm4965_vm13, %v4964_v35  ;;  %vm4988_vm13 = vmmov %vm4959_vm0 }
 0x3c6   : > { %2796 = vmatprep.mubr.msk.f32.mxu0 %vm4967_vm7, %v4966_v26  ;;  %vm4989_vm7 = vmmov %vm4959_vm0 }
 0x3c9   : > { %2797 = vmatmul.mubr.msk.f32.gmra.mrb[8].mxu0 %vm4969_vm1, %v4968_v14  ;;  %vm4990_vm1 = vmmov %vm4959_vm0 }
 0x3ca   : > { %2799 = vmatprep.mubr.msk.f32.mxu0 %vm4971_vm11, %v4970_v2  ;;  %vm4991_vm11 = vmmov %vm4959_vm0 }
 0x3cd   : > { %2800 = vmatmul.mubr.msk.f32.gmra.mrb[10].mxu0 %vm4973_vm5, %v4972_v49  ;;  %vm4992_vm5 = vmmov %vm4959_vm0 }
 0x3ce   : > { %2802 = vmatprep.mubr.msk.f32.mxu0 %vm4975_vm6, %v4974_v42  ;;  %vm4993_vm6 = vmmov %vm4959_vm0 }
 0x3d1   : > { %2803 = vmatmul.mubr.msk.f32.gmra.mrb[12].mxu0 %vm4977_vm2, %v4976_v61  ;;  %vm4994_vm2 = vmmov %vm4959_vm0 }
 0x3d2   : > { %2805 = vmatprep.mubr.msk.f32.mxu0 %vm4979_vm8, %v4978_v30  ;;  %vm4995_vm8 = vmmov %vm4959_vm0 }
 0x3d5   : > { %2806 = vmatmul.mubr.msk.f32.gmra.mrb[14].mxu0 %vm4981_vm14, %v4980_v13  ;;  %vm4996_vm14 = vmmov %vm4959_vm0 }
 0x424   : > { %v1717_v38 = vpop.trf.xlu0 }
 0x425   : > { %2744 = vmatprep.mubr.msk.f32.mxu1 %vm4982_vm9, %v1717_v38  ;;  %vm4997_vm9 = vmmov %vm4959_vm0 }
 0x428   : > { %v1718_v45 = vpop.trf.xlu0 }
 0x429   : > { %2745 = vmatmul.mubr.msk.f32.vlgmr.msra.gmra.mrb[0].mxu1 %vm4983_vm10, %v1718_v45  ;;  %vm4998_vm10 = vmmov %vm4959_vm0 }
 0x42c   : > { %v1719_v53 = vpop.trf.xlu0 }
 0x42d   : > { %2747 = vmatprep.mubr.msk.f32.mxu1 %vm4984_vm12, %v1719_v53  ;;  %vm4999_vm12 = vmmov %vm4959_vm0 }
 0x430   : > { %v1720_v55 = vpop.trf.xlu0 }
 0x431   : > { %2748 = vmatmul.mubr.msk.f32.gmra.mrb[2].mxu1 %vm4985_vm15, %v1720_v55  ;;  %vm5000_vm15 = vmmov %vm4959_vm0 }
 0x434   : > { %v1721_v47 = vpop.trf.xlu0 }
 0x435   : > { %2750 = vmatprep.mubr.msk.f32.mxu1 %vm4959_vm0, %v1721_v47 }
 0x438   : > { %v1722_v11 = vpop.trf.xlu0 }
 0x439   : > { %2751 = vmatmul.mubr.msk.f32.gmra.mrb[4].mxu1 %vm4986_vm3, %v1722_v11  ;;  %vm5001_vm3 = vmmov %vm4959_vm0 }
 0x43c   : > { %v1723_v60 = vpop.trf.xlu0 }
 0x43d   : > { %2753 = vmatprep.mubr.msk.f32.mxu1 %vm4987_vm4, %v1723_v60  ;;  %vm5002_vm4 = vmmov %vm4959_vm0 }
 0x440   : > { %v1724_v9 = vpop.trf.xlu0 }
 0x441   : > { %2754 = vmatmul.mubr.msk.f32.gmra.mrb[6].mxu1 %vm4988_vm13, %v1724_v9  ;;  %vm5003_vm13 = vmmov %vm4959_vm0 }
 0x444   : > { %v1725_v28 = vpop.trf.xlu0 }
 0x445   : > { %2756 = vmatprep.mubr.msk.f32.mxu1 %vm4989_vm7, %v1725_v28  ;;  %vm5004_vm7 = vmmov %vm4959_vm0 }
 0x448   : > { %v1726_v23 = vpop.trf.xlu0 }
 0x449   : > { %2757 = vmatmul.mubr.msk.f32.gmra.mrb[8].mxu1 %vm4990_vm1, %v1726_v23  ;;  %vm5005_vm1 = vmmov %vm4959_vm0 }
 0x44c   : > { %v1727_v57 = vpop.trf.xlu0 }
 0x44d   : > { %2759 = vmatprep.mubr.msk.f32.mxu1 %vm4991_vm11, %v1727_v57  ;;  %vm5006_vm11 = vmmov %vm4959_vm0 }
 0x450   : > { %v1728_v43 = vpop.trf.xlu0 }
 0x451   : > { %2760 = vmatmul.mubr.msk.f32.gmra.mrb[10].mxu1 %vm4992_vm5, %v1728_v43  ;;  %vm5007_vm5 = vmmov %vm4959_vm0 }
 0x454   : > { %v1729_v1 = vpop.trf.xlu0 }
 0x455   : > { %2762 = vmatprep.mubr.msk.f32.mxu1 %vm4993_vm6, %v1729_v1  ;;  %vm5008_vm6 = vmmov %vm4959_vm0 }
 0x458   : > { %v1730_v32 = vpop.trf.xlu0 }
 0x459   : > { %2763 = vmatmul.mubr.msk.f32.gmra.mrb[12].mxu1 %vm4994_vm2, %v1730_v32  ;;  %vm5009_vm2 = vmmov %vm4959_vm0 }
 0x45c   : > { %v1731_v34 = vpop.trf.xlu0 }
 0x45d   : > { %2765 = vmatprep.mubr.msk.f32.mxu1 %vm4995_vm8, %v1731_v34  ;;  %vm5010_vm8 = vmmov %vm4959_vm0 }
 0x460   : > { %v1732_v50 = vpop.trf.xlu0 }
 0x461   : > { %2766 = vmatmul.mubr.msk.f32.gmra.mrb[14].mxu1 %vm4996_vm14, %v1732_v50  ;;  %vm5011_vm14 = vmmov %vm4959_vm0 }
 0x48c   : > { %v2786_v40 = vpop.f32.mrb[0].mxu0 }
 0x48d   : > { %v1992_v63 = vpop.f32.mrb[1].mxu0 }
 0x490   : > { %v2789_v16 = vpop.f32.mrb[2].mxu0 }
 0x491   : > { %v2002_v21 = vpop.f32.mrb[3].mxu0 }
 0x494   : > { %v2792_v51 = vpop.f32.mrb[4].mxu0 }
 0x495   : > { %v2012_v4 = vpop.f32.mrb[5].mxu0 }
 0x498   : > { %v2795_v17 = vpop.f32.mrb[6].mxu0 }
 0x499   : > { %v2022_v8 = vpop.f32.mrb[7].mxu0 }
 0x49c   : > { %v2798_v5 = vpop.f32.mrb[8].mxu0 }
 0x49d   : > { %v2032_v10 = vpop.f32.mrb[9].mxu0 }
 0x4a0   : > { %v4672_v6 = vpop.f32.mrb[10].mxu0 }
 0x4a1   : > { %v4674_v3 = vpop.f32.mrb[11].mxu0 }
 0x4a4   : > { %v4676_v0 = vpop.f32.mrb[12].mxu0 }
 0x4a5   : > { %v4678_v48 = vpop.f32.mrb[13].mxu0 }
 0x4a8   : > { %v4680_v52 = vpop.f32.mrb[14].mxu0 }
 0x4a9   : > { %v4682_v54 = vpop.f32.mrb[15].mxu0 }
 0x4fc   : > { %v2746_v58 = vpop.f32.mrb[0].mxu1 }
 0x4fd   : > { %v1998_v62 = vadd.f32 %v2786_v40, %v2746_v58  ;;  %v1847_v18 = vpop.f32.mrb[1].mxu1 }
 0x4fe   : > { %v1993_v15 = vadd.f32 %v1992_v63, %v1847_v18 }
 0x4ff   : > { %v2079_v20 = vadd.f32 %v4687_v31, %v1998_v62 }
 0x500   : > { %v2078_v25 = vadd.f32 %v4687_v31, %v1993_v15 }
 0x501   : > { %v2095_v24 = vmul.f32 0.2, %v2079_v20 }
 0x502   : > { %v2094_v59 = vmul.f32 0.2, %v2078_v25 }
 0x503   : > { %v2111_v41 = vmax.f32 %v2079_v20, %v2095_v24 }
 0x504   : > { %v2749_v27 = vpop.f32.mrb[2].mxu1  ;;  %v2110_v33 = vmax.f32 %v2078_v25, %v2094_v59 }
 0x505   : > { %v2008_v29 = vadd.f32 %v2789_v16, %v2749_v27  ;;  %v1857_v39 = vpop.f32.mrb[3].mxu1  ;;  %v2127_v2 = vsel %vm4997_vm9, %v2111_v41, -inf  ;;  %vm2167_vm9 = vcmask 516096  }
 0x506   : > { %v2003_v37 = vadd.f32 %v2002_v21, %v1857_v39  ;;  %v2126_v61 = vsel %vm4998_vm10, %v2110_v33, -inf }
 0x507   : > { %v2081_v7 = vadd.f32 %v4687_v31, %v2008_v29 }
 0x508   : > { %v2080_v35 = vadd.f32 %v4687_v31, %v2003_v37 }
 0x509   : > { %v2097_v30 = vmul.f32 0.2, %v2081_v7 }
 0x50a   : > { %v2096_v53 = vmul.f32 0.2, %v2080_v35 }
 0x50b   : > { %v2113_v23 = vmax.f32 %v2081_v7, %v2097_v30 }
 0x50c   : > { %v2752_v12 = vpop.f32.mrb[4].mxu1  ;;  %v2112_v43 = vmax.f32 %v2080_v35, %v2096_v53 }
 0x50d   : > { %v2018_v44 = vadd.f32 %v2792_v51, %v2752_v12  ;;  %v1867_v46 = vpop.f32.mrb[5].mxu1  ;;  %v2129_v40 = vsel %vm4959_vm0, %v2113_v23, -inf }
 0x50e   : > { %v2013_v19 = vadd.f32 %v2012_v4, %v1867_v46  ;;  %v2128_v51 = vsel %vm5002_vm4, %v2112_v43, -inf }
 0x50f   : > { %v2083_v22 = vadd.f32 %v4687_v31, %v2018_v44 }
 0x510   : > { %v2082_v36 = vadd.f32 %v4687_v31, %v2013_v19 }
 0x511   : > { %v2099_v56 = vmul.f32 0.2, %v2083_v22 }
 0x512   : > { %v2098_v26 = vmul.f32 0.2, %v2082_v36 }
 0x513   : > { %v2115_v14 = vmax.f32 %v2083_v22, %v2099_v56 }
 0x514   : > { %v2114_v49 = vmax.f32 %v2082_v36, %v2098_v26  ;;  %v2755_v42 = vpop.f32.mrb[6].mxu1 }
 0x515   : > { %v2132_v13 = vsel %vm4999_vm12, %v2115_v14, -inf  ;;  %v2028_v38 = vadd.f32 %v2795_v17, %v2755_v42  ;;  %v1877_v45 = vpop.f32.mrb[7].mxu1 }
 0x516   : > { %v2133_v55 = vmax.f32 %v2127_v2, %v2132_v13  ;;  %v2130_v47 = vsel %vm5000_vm15, %v2114_v49, -inf  ;;  %v2023_v11 = vadd.f32 %v2022_v8, %v1877_v45 }
 0x517   : > { %v2131_v60 = vmax.f32 %v2126_v61, %v2130_v47  ;;  %v2085_v9 = vadd.f32 %v4687_v31, %v2028_v38 }
 0x518   : > { %v2084_v28 = vadd.f32 %v4687_v31, %v2023_v11 }
 0x519   : > { %v2101_v57 = vmul.f32 0.2, %v2085_v9 }
 0x51a   : > { %v2100_v1 = vmul.f32 0.2, %v2084_v28 }
 0x51b   : > { %v2117_v32 = vmax.f32 %v2085_v9, %v2101_v57 }
 0x51c   : > { %v2116_v34 = vmax.f32 %v2084_v28, %v2100_v1  ;;  %v2758_v50 = vpop.f32.mrb[8].mxu1 }
 0x51d   : > { %v2136_v63 = vsel %vm5001_vm3, %v2117_v32, -inf  ;;  %v2038_v16 = vadd.f32 %v2798_v5, %v2758_v50  ;;  %v1887_v21 = vpop.f32.mrb[9].mxu1 }
 0x51e   : > { %v2137_v4 = vmax.f32 %v2129_v40, %v2136_v63  ;;  %v2134_v17 = vsel %vm5003_vm13, %v2116_v34, -inf  ;;  %v2033_v8 = vadd.f32 %v2032_v10, %v1887_v21 }
 0x51f   : > { %v2135_v58 = vmax.f32 %v2128_v51, %v2134_v17  ;;  %v2087_v62 = vadd.f32 %v4687_v31, %v2038_v16 }
 0x520   : > { %v2086_v18 = vadd.f32 %v4687_v31, %v2033_v8 }
 0x521   : > { %v2103_v15 = vmul.f32 0.2, %v2087_v62 }
 0x522   : > { %v2102_v27 = vmul.f32 0.2, %v2086_v18 }
 0x523   : > { %v2119_v29 = vmax.f32 %v2087_v62, %v2103_v15 }
 0x524   : > { %v2118_v39 = vmax.f32 %v2086_v18, %v2102_v27  ;;  %v2761_v37 = vpop.f32.mrb[10].mxu1 }
 0x525   : > { %v2140_v20 = vsel %vm5004_vm7, %v2119_v29, -inf  ;;  %v2048_v5 = vadd.f32 %v4672_v6, %v2761_v37  ;;  %v1897_v25 = vpop.f32.mrb[11].mxu1 }
 0x526   : > { %v2141_v24 = vmax.f32 %v2133_v55, %v2140_v20  ;;  %v2138_v12 = vsel %vm5005_vm1, %v2118_v39, -inf  ;;  %v2043_v10 = vadd.f32 %v4674_v3, %v1897_v25 }
 0x527   : > { %v2139_v59 = vmax.f32 %v2131_v60, %v2138_v12  ;;  %v2089_v44 = vadd.f32 %v4687_v31, %v2048_v5 }
 0x528   : > { %v2088_v46 = vadd.f32 %v4687_v31, %v2043_v10 }
 0x529   : > { %v2105_v19 = vmul.f32 0.2, %v2089_v44 }
 0x52a   : > { %v2104_v22 = vmul.f32 0.2, %v2088_v46 }
 0x52b   : > { %v2121_v41 = vmax.f32 %v2089_v44, %v2105_v19 }
 0x52c   : > { %v2120_v36 = vmax.f32 %v2088_v46, %v2104_v22  ;;  %v2764_v33 = vpop.f32.mrb[12].mxu1 }
 0x52d   : > { %v2144_v7 = vsel %vm5006_vm11, %v2121_v41, -inf  ;;  %v2058_v6 = vadd.f32 %v4676_v0, %v2764_v33  ;;  %v1907_v56 = vpop.f32.mrb[13].mxu1 }
 0x52e   : > { %v2145_v35 = vmax.f32 %v2137_v4, %v2144_v7  ;;  %v2142_v26 = vsel %vm5007_vm5, %v2120_v36, -inf  ;;  %v2053_v3 = vadd.f32 %v4678_v48, %v1907_v56 }
 0x52f   : > { %v2143_v14 = vmax.f32 %v2135_v58, %v2142_v26  ;;  %v2091_v2 = vadd.f32 %v4687_v31, %v2058_v6 }
 0x530   : > { %v2090_v49 = vadd.f32 %v4687_v31, %v2053_v3 }
 0x531   : > { %v2107_v42 = vmul.f32 0.2, %v2091_v2 }
 0x532   : > { %v2106_v61 = vmul.f32 0.2, %v2090_v49 }
 0x533   : > { %v2123_v30 = vmax.f32 %v2091_v2, %v2107_v42 }
 0x534   : > { %v2122_v13 = vmax.f32 %v2090_v49, %v2106_v61  ;;  %v2767_v38 = vpop.f32.mrb[14].mxu1 }
 0x535   : > { %v2148_v45 = vsel %vm5008_vm6, %v2123_v30, -inf  ;;  %v2068_v0 = vadd.f32 %v4680_v52, %v2767_v38  ;;  %v1917_v53 = vpop.f32.mrb[15].mxu1 }
 0x536   : > { %v2149_v55 = vmax.f32 %v2141_v24, %v2148_v45  ;;  %v2146_v47 = vsel %vm5009_vm2, %v2122_v13, -inf  ;;  %v2063_v48 = vadd.f32 %v4682_v54, %v1917_v53 }
 0x537   : > { %v2147_v11 = vmax.f32 %v2139_v59, %v2146_v47  ;;  %v2093_v60 = vadd.f32 %v4687_v31, %v2068_v0 }
 0x538   : > { %v2092_v9 = vadd.f32 %v4687_v31, %v2063_v48 }
 0x539   : > { %v2154_v28 = vmax.f32 %v2147_v11, %v2149_v55  ;;  %v2109_v23 = vmul.f32 0.2, %v2093_v60 }
 0x53a   : > { %v2108_v57 = vmul.f32 0.2, %v2092_v9 }
 0x53b   : > { %v2125_v43 = vmax.f32 %v2093_v60, %v2109_v23 }
 0x53c   : > { %v2124_v1 = vmax.f32 %v2092_v9, %v2108_v57 }
 0x53d   : > { %v2152_v32 = vsel %vm5010_vm8, %v2125_v43, -inf }
 0x53e   : > { %v2153_v52 = vmax.f32 %v2145_v35, %v2152_v32  ;;  %v2150_v34 = vsel %vm5011_vm14, %v2124_v1, -inf }
 0x53f   : > { %v2151_v50 = vmax.f32 %v2143_v14, %v2150_v34 }
 0x541   : > { %v2155_v40 = vmax.f32 %v2151_v50, %v2153_v52 }
 0x543   : > { %v2156_v63 = vmax.f32 %v2154_v28, %v2155_v40 }
 0x545   : > { %v2157_v54 = vrot.slane %v2156_v63, 4 }
 0x547   : > { %v2158_v16 = vmax.f32 %v2156_v63, %v2157_v54 }
 0x549   : > { %v2159_v21 = vrot.slane %v2158_v16, 2 }
 0x54b   : > { %v2160_v51 = vmax.f32 %v2158_v16, %v2159_v21 }
 0x54d   : > { %v2161_v4 = vrot.slane %v2160_v51, 1 }
 0x54f   : > { %v2162_v31 = vmax.f32 %v2160_v51, %v2161_v4 }
 0x551   : > { %2168 = vst.msk [vmem:[%s286_s8] sm:$0x1] %vm2167_vm9, %v2162_v31 }
 0x552 PF: > { %s17_s26 = sadd.s32 1, %s3281_s26   ;;  %s5012_s24 = smov %s3277_s25 }
 0x553   : > { %p14_p6 = scmp.ge.s32.totalorder %s17_s26, 4   ;;  %s5013_s25 = smov %s5015_s27 }
 0x555   :  { %16 = sbr.rel (!%p14_p6) target bundleno = 2 (0x2), region = 104 }

</bundles_post_ra>
